<compile_context>
chip_gen: v7x
topology: tpu7x:2x2x1
jax: 0.10.0
libtpu: 0.0.40
codegen_flags: <defaults>
</compile_context>

<pallas_src>
import functools

import jax
import jax.numpy as jnp
from jax.experimental import pallas as pl
from jax.experimental.pallas import tpu as pltpu

_INV_SQRT2 = 0.7071067811865476  # 1/sqrt(2), hoisted


def _gelu_exact(v):
    # PyTorch nn.GELU() default (exact, erf based), computed in f32.
    return 0.5 * v * (1.0 + jax.lax.erf(v * _INV_SQRT2))


def _round_up(x, m):
    return ((x + m - 1) // m) * m


def _paths_tail(
    h_a, h_b,
    wa2_ref, ba2_ref,
    wb2_ref, bb2_ref, wb3_ref, bb3_ref,
    wc1a_ref, wc1b_ref, bc1_ref,
    wc2_ref, bc2_ref,
    o_ref, cdt,
):
    """Shared tail: second linears of both paths + combiner.

    h_a / h_b are the post-GELU outputs of the first layer of path_a / path_b,
    already in the compute (MXU input) dtype.
    """
    # path_a second linear; fold into the combiner partial immediately so the
    # f32 out_a does not stay live across the whole path_b computation.
    out_a = jnp.dot(h_a, wa2_ref[...], preferred_element_type=jnp.float32) + ba2_ref[...]
    comb = jnp.dot(out_a.astype(cdt), wc1a_ref[...], preferred_element_type=jnp.float32)

    # path_b: Linear -> GELU -> Linear
    h_b = _gelu_exact(
        jnp.dot(h_b, wb2_ref[...], preferred_element_type=jnp.float32) + bb2_ref[...]
    ).astype(cdt)
    out_b = jnp.dot(h_b, wb3_ref[...], preferred_element_type=jnp.float32) + bb3_ref[...]

    # combiner: (out_a|out_b) @ Wc1 + bc1 -> GELU -> Linear
    comb = comb + jnp.dot(out_b.astype(cdt), wc1b_ref[...],
                          preferred_element_type=jnp.float32) + bc1_ref[...]
    comb = _gelu_exact(comb).astype(cdt)
    out = jnp.dot(comb, wc2_ref[...], preferred_element_type=jnp.float32) + bc2_ref[...]
    o_ref[...] = out.astype(o_ref.dtype)


def _kernel_fused(
    x_ref,
    w1_ref, b1_ref,                 # fused first layer: [D, D+H], [1, D+H]
    wa2_ref, ba2_ref,
    wb2_ref, bb2_ref, wb3_ref, bb3_ref,
    wc1a_ref, wc1b_ref, bc1_ref,
    wc2_ref, bc2_ref,
    o_ref,
    *, d,
):
    cdt = w1_ref.dtype                       # MXU input dtype (bf16)
    x = x_ref[...].astype(cdt)               # in-kernel cast; input stays f32 in HBM

    # Fused first layers of path_a / path_b: x @ [wa1 | wb1].
    h1 = jnp.dot(x, w1_ref[...], preferred_element_type=jnp.float32) + b1_ref[...]
    # D and H are lane-aligned (checked in prepare_params) -> copy-free slices.
    h_a = _gelu_exact(h1[:, :d]).astype(cdt)
    h_b = _gelu_exact(h1[:, d:]).astype(cdt)

    _paths_tail(h_a, h_b, wa2_ref, ba2_ref, wb2_ref, bb2_ref, wb3_ref, bb3_ref,
                wc1a_ref, wc1b_ref, bc1_ref, wc2_ref, bc2_ref, o_ref, cdt)


def _kernel_unfused(
    x_ref,
    wa1_ref, ba1_ref, wb1_ref, bb1_ref,
    wa2_ref, ba2_ref,
    wb2_ref, bb2_ref, wb3_ref, bb3_ref,
    wc1a_ref, wc1b_ref, bc1_ref,
    wc2_ref, bc2_ref,
    o_ref,
):
    cdt = wa1_ref.dtype
    x = x_ref[...].astype(cdt)

    h_a = _gelu_exact(
        jnp.dot(x, wa1_ref[...], preferred_element_type=jnp.float32) + ba1_ref[...]
    ).astype(cdt)
    h_b = _gelu_exact(
        jnp.dot(x, wb1_ref[...], preferred_element_type=jnp.float32) + bb1_ref[...]
    ).astype(cdt)

    _paths_tail(h_a, h_b, wa2_ref, ba2_ref, wb2_ref, bb2_ref, wb3_ref, bb3_ref,
                wc1a_ref, wc1b_ref, bc1_ref, wc2_ref, bc2_ref, o_ref, cdt)


def init_params(key, model_dim):
    """Deterministic synthetic f32 parameters (PyTorch-equivalent, stored [in, out])."""
    d = model_dim
    h = model_dim // 2
    shapes = {
        "wa1": (d, d), "ba1": (1, d),
        "wa2": (d, d), "ba2": (1, d),
        "wb1": (d, h), "bb1": (1, h),
        "wb2": (h, h), "bb2": (1, h),
        "wb3": (h, d), "bb3": (1, d),
        "wc1a": (d, d), "wc1b": (d, d), "bc1": (1, d),   # Linear(2d, d) split in two
        "wc2": (d, d), "bc2": (1, d),
    }
    params = {}
    keys = jax.random.split(key, len(shapes))
    for (name, shape), k in zip(shapes.items(), keys):
        params[name] = 0.02 * jax.random.normal(k, shape, dtype=jnp.float32)
    return params


def prepare_params(params, compute_dtype=jnp.bfloat16):
    """Cast weights to the MXU input dtype; biases stay f32.

    When D and D//2 are lane-aligned (multiples of 128) the two first-layer
    weights are fused into one [D, D+H] matrix so path_a[0] and path_b[0]
    share a single matmul; otherwise they are kept separate (the in-kernel
    slice would force a per-tile relayout copy).
    """
    d = params["wa1"].shape[0]
    h = params["wb1"].shape[1]
    fused = (d % 128 == 0) and (h % 128 == 0)

    kp = {}
    if fused:
        kp["w1"] = jnp.concatenate([params["wa1"], params["wb1"]], axis=1).astype(compute_dtype)
        kp["b1"] = jnp.concatenate([params["ba1"], params["bb1"]], axis=1).astype(jnp.float32)
    else:
        kp["wa1"] = params["wa1"].astype(compute_dtype)
        kp["ba1"] = params["ba1"].astype(jnp.float32)
        kp["wb1"] = params["wb1"].astype(compute_dtype)
        kp["bb1"] = params["bb1"].astype(jnp.float32)

    for name in ("wa2", "wb2", "wb3", "wc1a", "wc1b", "wc2"):
        kp[name] = params[name].astype(compute_dtype)
    for name in ("ba2", "bb2", "bb3", "bc1", "bc2"):
        kp[name] = params[name].astype(jnp.float32)
    return kp


_PARAM_ORDER_FUSED = (
    "w1", "b1",
    "wa2", "ba2",
    "wb2", "bb2", "wb3", "bb3",
    "wc1a", "wc1b", "bc1",
    "wc2", "bc2",
)

_PARAM_ORDER_UNFUSED = (
    "wa1", "ba1", "wb1", "bb1",
    "wa2", "ba2",
    "wb2", "bb2", "wb3", "bb3",
    "wc1a", "wc1b", "bc1",
    "wc2", "bc2",
)


def _const_spec(shape, buffer_count):
    """BlockSpec for a grid-invariant (weight/bias) operand."""
    index_map = lambda i: (0,) * len(shape)
    if buffer_count is None:
        return pl.BlockSpec(shape, index_map)
    # Constant block index -> no re-DMA per step; single-buffer to halve weight VMEM.
    return pl.BlockSpec(shape, index_map, pipeline_mode=pl.Buffered(buffer_count=buffer_count))


@functools.partial(jax.jit, static_argnames=("tile_m", "weight_buffer_count"))
def enhanced_token_processor(x, kernel_params, *, tile_m=512, weight_buffer_count=1):
    """x: [batch, seq, model_dim] f32 -> [batch, seq, model_dim] f32."""
    batch, seq, d = x.shape
    fused = "w1" in kernel_params
    h = (kernel_params["w1"].shape[1] - d) if fused else kernel_params["wb1"].shape[1]
    dh = d + h
    m = batch * seq

    # ---- Row tiling -------------------------------------------------------
    # 16-aligned tiles (bf16 packs 16 sublanes per vreg).  When the whole
    # problem would otherwise be a single grid step, split it into >= 2 so
    # the "parallel" grid axis can shard across both v7x TensorCores.
    tile_m = max(16, _round_up(tile_m, 16))
    m16 = _round_up(m, 16)
    if 32 <= m16 <= tile_m:
        tile = _round_up((m16 + 1) // 2, 16)
    else:
        tile = min(tile_m, m16)
    m_pad = _round_up(m16, tile)
    grid = (m_pad // tile,)

    # Input stays f32; the kernel casts it to the MXU dtype in-VMEM (no extra
    # wrapper-side HBM pass).
    x2 = x.reshape(m, d)
    if m_pad != m:
        # Padded rows produce finite bias-only garbage and are sliced off below.
        x2 = jnp.pad(x2, ((0, m_pad - m), (0, 0)))

    row_spec = pl.BlockSpec((tile, d), lambda i: (i, 0))

    if fused:
        kernel = functools.partial(_kernel_fused, d=d)
        order = _PARAM_ORDER_FUSED
    else:
        kernel = _kernel_unfused
        order = _PARAM_ORDER_UNFUSED

    param_vals = [kernel_params[n] for n in order]
    param_specs = [
        _const_spec(tuple(kernel_params[n].shape), weight_buffer_count) for n in order
    ]
    weight_bytes = sum(int(v.size) * v.dtype.itemsize for v in param_vals)

    # ---- VMEM budget (never the full 64 MiB of a v7x TensorCore) -----------
    wb_factor = 2 if weight_buffer_count is None else max(1, int(weight_buffer_count))
    act_tile_bytes = tile * d * 4                     # f32 input tile
    out_tile_bytes = tile * d * 4                     # f32 output tile
    inter_bytes = tile * (dh + 4 * d + 2 * h) * 4     # generous f32 intermediates
    vmem_need = (weight_bytes * wb_factor
                 + 2 * (act_tile_bytes + out_tile_bytes)
                 + inter_bytes)
    vmem_limit = int(min(48 << 20, max(8 << 20, 2 * vmem_need)))

    # ---- Advisory cost estimate --------------------------------------------
    flops = 2 * m_pad * (d * dh + d * d + h * h + h * d + 3 * d * d)
    transcendentals = m_pad * (dh + h + d)            # erf evaluations
    bytes_accessed = m_pad * d * 8 + weight_bytes     # f32 in + f32 out + weights

    out = pl.pallas_call(
        kernel,
        out_shape=jax.ShapeDtypeStruct((m_pad, d), jnp.float32),
        grid_spec=pltpu.PrefetchScalarGridSpec(
            num_scalar_prefetch=0,
            grid=grid,
            in_specs=[row_spec] + param_specs,
            out_specs=row_spec,
        ),
        compiler_params=pltpu.CompilerParams(
            dimension_semantics=("parallel",),        # megacore / v7x: shard rows across TCs
            vmem_limit_bytes=vmem_limit,
        ),
        cost_estimate=pl.CostEstimate(
            flops=flops,
            transcendentals=transcendentals,
            bytes_accessed=bytes_accessed,
        ),
    )(x2, *param_vals)

    return out[:m].reshape(batch, seq, d)


def _dot_f32(a, b):
    return jnp.dot(a, b, precision=jax.lax.Precision.HIGHEST)


def _reference(x, params):
    """Pure-JAX f32 reference matching the PyTorch forward."""
    gelu = _gelu_exact
    out_a = _dot_f32(gelu(_dot_f32(x, params["wa1"]) + params["ba1"]), params["wa2"]) + params["ba2"]
    hb = gelu(_dot_f32(x, params["wb1"]) + params["bb1"])
    hb = gelu(_dot_f32(hb, params["wb2"]) + params["bb2"])
    out_b = _dot_f32(hb, params["wb3"]) + params["bb3"]
    wc1 = jnp.concatenate([params["wc1a"], params["wc1b"]], axis=0)
    comb = gelu(_dot_f32(jnp.concatenate([out_a, out_b], axis=-1), wc1) + params["bc1"])
    return _dot_f32(comb, params["wc2"]) + params["bc2"]


if __name__ == "__main__":
    key = jax.random.PRNGKey(0)
    k_x, k_p = jax.random.split(key)

    # model_dim multiple of 128 so D and D//2 are lane-aligned; batch*seq stays small.
    batch, seq, model_dim = 2, 8, 256
    x = jax.random.normal(k_x, (batch, seq, model_dim), dtype=jnp.float32)
    params = init_params(k_p, model_dim)
    kparams = prepare_params(params)

    try:
        out = jax.block_until_ready(
            enhanced_token_processor(x, kparams, tile_m=512, weight_buffer_count=1)
        )
    except Exception:
        # Fallback for JAX versions that reject BlockSpec pipeline_mode / Buffered(1).
        out = jax.block_until_ready(
            enhanced_token_processor(x, kparams, tile_m=512, weight_buffer_count=None)
        )

    ref = _reference(x, params)
    assert out.shape == (batch, seq, model_dim)
    # bf16 matmul inputs with f32 accumulation vs. the full-f32 reference.
    assert jnp.allclose(out, ref, atol=3e-3, rtol=3e-2), float(jnp.max(jnp.abs(out - ref)))

    print("KERNEL_OK")
</pallas_src>

<mosaic_0001>
module attributes {stable_mosaic.version = 11 : i64} {
  func.func @_kernel_fused(%arg0: i32, %arg1: memref<16x256xf32, #tpu.memory_space<vmem>>, %arg2: memref<256x384xbf16, #tpu.memory_space<vmem>>, %arg3: memref<1x384xf32, #tpu.memory_space<vmem>>, %arg4: memref<256x256xbf16, #tpu.memory_space<vmem>>, %arg5: memref<1x256xf32, #tpu.memory_space<vmem>>, %arg6: memref<128x128xbf16, #tpu.memory_space<vmem>>, %arg7: memref<1x128xf32, #tpu.memory_space<vmem>>, %arg8: memref<128x256xbf16, #tpu.memory_space<vmem>>, %arg9: memref<1x256xf32, #tpu.memory_space<vmem>>, %arg10: memref<256x256xbf16, #tpu.memory_space<vmem>>, %arg11: memref<256x256xbf16, #tpu.memory_space<vmem>>, %arg12: memref<1x256xf32, #tpu.memory_space<vmem>>, %arg13: memref<256x256xbf16, #tpu.memory_space<vmem>>, %arg14: memref<1x256xf32, #tpu.memory_space<vmem>>, %arg15: memref<16x256xf32, #tpu.memory_space<vmem>>) attributes {dimension_semantics = [#tpu.dimension_semantics<parallel>], iteration_bounds = array<i64: 1>, scalar_prefetch = 0 : i64, scratch_operands = 0 : i64, tpu.core_type = #tpu.core_type<tc>, window_params = [{transform_indices = @transform_0, window_bounds = array<i64: 16, 256>}, {pipeline_mode = #tpu.pipeline_mode<synchronous>, transform_indices = @transform_1, window_bounds = array<i64: 256, 384>}, {pipeline_mode = #tpu.pipeline_mode<synchronous>, transform_indices = @transform_2, window_bounds = array<i64: 1, 384>}, {pipeline_mode = #tpu.pipeline_mode<synchronous>, transform_indices = @transform_3, window_bounds = array<i64: 256, 256>}, {pipeline_mode = #tpu.pipeline_mode<synchronous>, transform_indices = @transform_4, window_bounds = array<i64: 1, 256>}, {pipeline_mode = #tpu.pipeline_mode<synchronous>, transform_indices = @transform_5, window_bounds = array<i64: 128, 128>}, {pipeline_mode = #tpu.pipeline_mode<synchronous>, transform_indices = @transform_6, window_bounds = array<i64: 1, 128>}, {pipeline_mode = #tpu.pipeline_mode<synchronous>, transform_indices = @transform_7, window_bounds = array<i64: 128, 256>}, {pipeline_mode = #tpu.pipeline_mode<synchronous>, transform_indices = @transform_8, window_bounds = array<i64: 1, 256>}, {pipeline_mode = #tpu.pipeline_mode<synchronous>, transform_indices = @transform_9, window_bounds = array<i64: 256, 256>}, {pipeline_mode = #tpu.pipeline_mode<synchronous>, transform_indices = @transform_10, window_bounds = array<i64: 256, 256>}, {pipeline_mode = #tpu.pipeline_mode<synchronous>, transform_indices = @transform_11, window_bounds = array<i64: 1, 256>}, {pipeline_mode = #tpu.pipeline_mode<synchronous>, transform_indices = @transform_12, window_bounds = array<i64: 256, 256>}, {pipeline_mode = #tpu.pipeline_mode<synchronous>, transform_indices = @transform_13, window_bounds = array<i64: 1, 256>}, {transform_indices = @transform_14, window_bounds = array<i64: 16, 256>}]} {
    %c0 = arith.constant 0 : index
    %c0_0 = arith.constant 0 : index
    %0 = vector.load %arg1[%c0, %c0_0] : memref<16x256xf32, #tpu.memory_space<vmem>>, vector<16x256xf32>
    %1 = arith.truncf %0 : vector<16x256xf32> to vector<16x256xbf16>
    %c0_1 = arith.constant 0 : index
    %c0_2 = arith.constant 0 : index
    %2 = vector.load %arg2[%c0_1, %c0_2] : memref<256x384xbf16, #tpu.memory_space<vmem>>, vector<256x384xbf16>
    %cst = arith.constant dense<0.000000e+00> : vector<16x384xf32>
    %3 = tpu.matmul %1, %2, %cst {dimension_numbers = #tpu.dot_dimension_numbers<[1], [0], [0], [1], [0, 0, 1, 1], [], []>} : vector<16x256xbf16>, vector<256x384xbf16>, vector<16x384xf32> -> vector<16x384xf32>
    %c0_3 = arith.constant 0 : index
    %c0_4 = arith.constant 0 : index
    %4 = vector.load %arg3[%c0_3, %c0_4] : memref<1x384xf32, #tpu.memory_space<vmem>>, vector<1x384xf32>
    %5 = vector.broadcast %4 : vector<1x384xf32> to vector<16x384xf32>
    %6 = arith.addf %3, %5 : vector<16x384xf32>
    %7 = vector.extract_strided_slice %6 {offsets = [0, 0], sizes = [16, 256], strides = [1, 1]} : vector<16x384xf32> to vector<16x256xf32>
    %cst_5 = arith.constant 5.000000e-01 : f32
    %8 = vector.broadcast %cst_5 : f32 to vector<16x256xf32>
    %9 = arith.mulf %8, %7 : vector<16x256xf32>
    %cst_6 = arith.constant 0.707106769 : f32
    %10 = vector.broadcast %cst_6 : f32 to vector<16x256xf32>
    %11 = arith.mulf %7, %10 : vector<16x256xf32>
    %12 = math.erf %11 : vector<16x256xf32>
    %cst_7 = arith.constant 1.000000e+00 : f32
    %13 = vector.broadcast %cst_7 : f32 to vector<16x256xf32>
    %14 = arith.addf %13, %12 : vector<16x256xf32>
    %15 = arith.mulf %9, %14 : vector<16x256xf32>
    %16 = arith.truncf %15 : vector<16x256xf32> to vector<16x256xbf16>
    %17 = vector.extract_strided_slice %6 {offsets = [0, 256], sizes = [16, 128], strides = [1, 1]} : vector<16x384xf32> to vector<16x128xf32>
    %cst_8 = arith.constant 5.000000e-01 : f32
    %18 = vector.broadcast %cst_8 : f32 to vector<16x128xf32>
    %19 = arith.mulf %18, %17 : vector<16x128xf32>
    %cst_9 = arith.constant 0.707106769 : f32
    %20 = vector.broadcast %cst_9 : f32 to vector<16x128xf32>
    %21 = arith.mulf %17, %20 : vector<16x128xf32>
    %22 = math.erf %21 : vector<16x128xf32>
    %cst_10 = arith.constant 1.000000e+00 : f32
    %23 = vector.broadcast %cst_10 : f32 to vector<16x128xf32>
    %24 = arith.addf %23, %22 : vector<16x128xf32>
    %25 = arith.mulf %19, %24 : vector<16x128xf32>
    %26 = arith.truncf %25 : vector<16x128xf32> to vector<16x128xbf16>
    %c0_11 = arith.constant 0 : index
    %c0_12 = arith.constant 0 : index
    %27 = vector.load %arg4[%c0_11, %c0_12] : memref<256x256xbf16, #tpu.memory_space<vmem>>, vector<256x256xbf16>
    %cst_13 = arith.constant dense<0.000000e+00> : vector<16x256xf32>
    %28 = tpu.matmul %16, %27, %cst_13 {dimension_numbers = #tpu.dot_dimension_numbers<[1], [0], [0], [1], [0, 0, 1, 1], [], []>} : vector<16x256xbf16>, vector<256x256xbf16>, vector<16x256xf32> -> vector<16x256xf32>
    %c0_14 = arith.constant 0 : index
    %c0_15 = arith.constant 0 : index
    %29 = vector.load %arg5[%c0_14, %c0_15] : memref<1x256xf32, #tpu.memory_space<vmem>>, vector<1x256xf32>
    %30 = vector.broadcast %29 : vector<1x256xf32> to vector<16x256xf32>
    %31 = arith.addf %28, %30 : vector<16x256xf32>
    %32 = arith.truncf %31 : vector<16x256xf32> to vector<16x256xbf16>
    %c0_16 = arith.constant 0 : index
    %c0_17 = arith.constant 0 : index
    %33 = vector.load %arg10[%c0_16, %c0_17] : memref<256x256xbf16, #tpu.memory_space<vmem>>, vector<256x256xbf16>
    %cst_18 = arith.constant dense<0.000000e+00> : vector<16x256xf32>
    %34 = tpu.matmul %32, %33, %cst_18 {dimension_numbers = #tpu.dot_dimension_numbers<[1], [0], [0], [1], [0, 0, 1, 1], [], []>} : vector<16x256xbf16>, vector<256x256xbf16>, vector<16x256xf32> -> vector<16x256xf32>
    %c0_19 = arith.constant 0 : index
    %c0_20 = arith.constant 0 : index
    %35 = vector.load %arg6[%c0_19, %c0_20] : memref<128x128xbf16, #tpu.memory_space<vmem>>, vector<128x128xbf16>
    %cst_21 = arith.constant dense<0.000000e+00> : vector<16x128xf32>
    %36 = tpu.matmul %26, %35, %cst_21 {dimension_numbers = #tpu.dot_dimension_numbers<[1], [0], [0], [1], [0, 0, 1, 1], [], []>} : vector<16x128xbf16>, vector<128x128xbf16>, vector<16x128xf32> -> vector<16x128xf32>
    %c0_22 = arith.constant 0 : index
    %c0_23 = arith.constant 0 : index
    %37 = vector.load %arg7[%c0_22, %c0_23] : memref<1x128xf32, #tpu.memory_space<vmem>>, vector<1x128xf32>
    %38 = vector.broadcast %37 : vector<1x128xf32> to vector<16x128xf32>
    %39 = arith.addf %36, %38 : vector<16x128xf32>
    %cst_24 = arith.constant 5.000000e-01 : f32
    %40 = vector.broadcast %cst_24 : f32 to vector<16x128xf32>
    %41 = arith.mulf %40, %39 : vector<16x128xf32>
    %cst_25 = arith.constant 0.707106769 : f32
    %42 = vector.broadcast %cst_25 : f32 to vector<16x128xf32>
    %43 = arith.mulf %39, %42 : vector<16x128xf32>
    %44 = math.erf %43 : vector<16x128xf32>
    %cst_26 = arith.constant 1.000000e+00 : f32
    %45 = vector.broadcast %cst_26 : f32 to vector<16x128xf32>
    %46 = arith.addf %45, %44 : vector<16x128xf32>
    %47 = arith.mulf %41, %46 : vector<16x128xf32>
    %48 = arith.truncf %47 : vector<16x128xf32> to vector<16x128xbf16>
    %c0_27 = arith.constant 0 : index
    %c0_28 = arith.constant 0 : index
    %49 = vector.load %arg8[%c0_27, %c0_28] : memref<128x256xbf16, #tpu.memory_space<vmem>>, vector<128x256xbf16>
    %cst_29 = arith.constant dense<0.000000e+00> : vector<16x256xf32>
    %50 = tpu.matmul %48, %49, %cst_29 {dimension_numbers = #tpu.dot_dimension_numbers<[1], [0], [0], [1], [0, 0, 1, 1], [], []>} : vector<16x128xbf16>, vector<128x256xbf16>, vector<16x256xf32> -> vector<16x256xf32>
    %c0_30 = arith.constant 0 : index
    %c0_31 = arith.constant 0 : index
    %51 = vector.load %arg9[%c0_30, %c0_31] : memref<1x256xf32, #tpu.memory_space<vmem>>, vector<1x256xf32>
    %52 = vector.broadcast %51 : vector<1x256xf32> to vector<16x256xf32>
    %53 = arith.addf %50, %52 : vector<16x256xf32>
    %54 = arith.truncf %53 : vector<16x256xf32> to vector<16x256xbf16>
    %c0_32 = arith.constant 0 : index
    %c0_33 = arith.constant 0 : index
    %55 = vector.load %arg11[%c0_32, %c0_33] : memref<256x256xbf16, #tpu.memory_space<vmem>>, vector<256x256xbf16>
    %cst_34 = arith.constant dense<0.000000e+00> : vector<16x256xf32>
    %56 = tpu.matmul %54, %55, %cst_34 {dimension_numbers = #tpu.dot_dimension_numbers<[1], [0], [0], [1], [0, 0, 1, 1], [], []>} : vector<16x256xbf16>, vector<256x256xbf16>, vector<16x256xf32> -> vector<16x256xf32>
    %57 = arith.addf %34, %56 : vector<16x256xf32>
    %c0_35 = arith.constant 0 : index
    %c0_36 = arith.constant 0 : index
    %58 = vector.load %arg12[%c0_35, %c0_36] : memref<1x256xf32, #tpu.memory_space<vmem>>, vector<1x256xf32>
    %59 = vector.broadcast %58 : vector<1x256xf32> to vector<16x256xf32>
    %60 = arith.addf %57, %59 : vector<16x256xf32>
    %cst_37 = arith.constant 5.000000e-01 : f32
    %61 = vector.broadcast %cst_37 : f32 to vector<16x256xf32>
    %62 = arith.mulf %61, %60 : vector<16x256xf32>
    %cst_38 = arith.constant 0.707106769 : f32
    %63 = vector.broadcast %cst_38 : f32 to vector<16x256xf32>
    %64 = arith.mulf %60, %63 : vector<16x256xf32>
    %65 = math.erf %64 : vector<16x256xf32>
    %cst_39 = arith.constant 1.000000e+00 : f32
    %66 = vector.broadcast %cst_39 : f32 to vector<16x256xf32>
    %67 = arith.addf %66, %65 : vector<16x256xf32>
    %68 = arith.mulf %62, %67 : vector<16x256xf32>
    %69 = arith.truncf %68 : vector<16x256xf32> to vector<16x256xbf16>
    %c0_40 = arith.constant 0 : index
    %c0_41 = arith.constant 0 : index
    %70 = vector.load %arg13[%c0_40, %c0_41] : memref<256x256xbf16, #tpu.memory_space<vmem>>, vector<256x256xbf16>
    %cst_42 = arith.constant dense<0.000000e+00> : vector<16x256xf32>
    %71 = tpu.matmul %69, %70, %cst_42 {dimension_numbers = #tpu.dot_dimension_numbers<[1], [0], [0], [1], [0, 0, 1, 1], [], []>} : vector<16x256xbf16>, vector<256x256xbf16>, vector<16x256xf32> -> vector<16x256xf32>
    %c0_43 = arith.constant 0 : index
    %c0_44 = arith.constant 0 : index
    %72 = vector.load %arg14[%c0_43, %c0_44] : memref<1x256xf32, #tpu.memory_space<vmem>>, vector<1x256xf32>
    %73 = vector.broadcast %72 : vector<1x256xf32> to vector<16x256xf32>
    %74 = arith.addf %71, %73 : vector<16x256xf32>
    %c0_45 = arith.constant 0 : index
    %c0_46 = arith.constant 0 : index
    %75 = vector.load %arg15[%c0_45, %c0_46] : memref<16x256xf32, #tpu.memory_space<vmem>>, vector<16x256xf32>
    tpu.vector_store %arg15[%c0_45, %c0_46], %74 {strides = array<i32>} : memref<16x256xf32, #tpu.memory_space<vmem>>, vector<16x256xf32>,
    return
  }
  func.func @transform_0(%arg0: i32) -> (i32, i32) {
    %c0_i32 = arith.constant 0 : i32
    %c0_i32_0 = arith.constant 0 : i32
    return %arg0, %c0_i32 : i32, i32
  }
  func.func @transform_1(%arg0: i32) -> (i32, i32) {
    %c0_i32 = arith.constant 0 : i32
    %c0_i32_0 = arith.constant 0 : i32
    %c0_i32_1 = arith.constant 0 : i32
    return %c0_i32, %c0_i32_0 : i32, i32
  }
  func.func @transform_2(%arg0: i32) -> (i32, i32) {
    %c0_i32 = arith.constant 0 : i32
    %c0_i32_0 = arith.constant 0 : i32
    %c0_i32_1 = arith.constant 0 : i32
    return %c0_i32, %c0_i32_0 : i32, i32
  }
  func.func @transform_3(%arg0: i32) -> (i32, i32) {
    %c0_i32 = arith.constant 0 : i32
    %c0_i32_0 = arith.constant 0 : i32
    %c0_i32_1 = arith.constant 0 : i32
    return %c0_i32, %c0_i32_0 : i32, i32
  }
  func.func @transform_4(%arg0: i32) -> (i32, i32) {
    %c0_i32 = arith.constant 0 : i32
    %c0_i32_0 = arith.constant 0 : i32
    %c0_i32_1 = arith.constant 0 : i32
    return %c0_i32, %c0_i32_0 : i32, i32
  }
  func.func @transform_5(%arg0: i32) -> (i32, i32) {
    %c0_i32 = arith.constant 0 : i32
    %c0_i32_0 = arith.constant 0 : i32
    %c0_i32_1 = arith.constant 0 : i32
    return %c0_i32, %c0_i32_0 : i32, i32
  }
  func.func @transform_6(%arg0: i32) -> (i32, i32) {
    %c0_i32 = arith.constant 0 : i32
    %c0_i32_0 = arith.constant 0 : i32
    %c0_i32_1 = arith.constant 0 : i32
    return %c0_i32, %c0_i32_0 : i32, i32
  }
  func.func @transform_7(%arg0: i32) -> (i32, i32) {
    %c0_i32 = arith.constant 0 : i32
    %c0_i32_0 = arith.constant 0 : i32
    %c0_i32_1 = arith.constant 0 : i32
    return %c0_i32, %c0_i32_0 : i32, i32
  }
  func.func @transform_8(%arg0: i32) -> (i32, i32) {
    %c0_i32 = arith.constant 0 : i32
    %c0_i32_0 = arith.constant 0 : i32
    %c0_i32_1 = arith.constant 0 : i32
    return %c0_i32, %c0_i32_0 : i32, i32
  }
  func.func @transform_9(%arg0: i32) -> (i32, i32) {
    %c0_i32 = arith.constant 0 : i32
    %c0_i32_0 = arith.constant 0 : i32
    %c0_i32_1 = arith.constant 0 : i32
    return %c0_i32, %c0_i32_0 : i32, i32
  }
  func.func @transform_10(%arg0: i32) -> (i32, i32) {
    %c0_i32 = arith.constant 0 : i32
    %c0_i32_0 = arith.constant 0 : i32
    %c0_i32_1 = arith.constant 0 : i32
    return %c0_i32, %c0_i32_0 : i32, i32
  }
  func.func @transform_11(%arg0: i32) -> (i32, i32) {
    %c0_i32 = arith.constant 0 : i32
    %c0_i32_0 = arith.constant 0 : i32
    %c0_i32_1 = arith.constant 0 : i32
    return %c0_i32, %c0_i32_0 : i32, i32
  }
  func.func @transform_12(%arg0: i32) -> (i32, i32) {
    %c0_i32 = arith.constant 0 : i32
    %c0_i32_0 = arith.constant 0 : i32
    %c0_i32_1 = arith.constant 0 : i32
    return %c0_i32, %c0_i32_0 : i32, i32
  }
  func.func @transform_13(%arg0: i32) -> (i32, i32) {
    %c0_i32 = arith.constant 0 : i32
    %c0_i32_0 = arith.constant 0 : i32
    %c0_i32_1 = arith.constant 0 : i32
    return %c0_i32, %c0_i32_0 : i32, i32
  }
  func.func @transform_14(%arg0: i32) -> (i32, i32) {
    %c0_i32 = arith.constant 0 : i32
    %c0_i32_0 = arith.constant 0 : i32
    return %arg0, %c0_i32 : i32, i32
  }
}

module attributes {stable_mosaic.version = 11 : i64} {
  func.func @_kernel_fused(%arg0: i32, %arg1: memref<16x256xf32, #tpu.memory_space<vmem>>, %arg2: memref<256x384xbf16, #tpu.memory_space<vmem>>, %arg3: memref<1x384xf32, #tpu.memory_space<vmem>>, %arg4: memref<256x256xbf16, #tpu.memory_space<vmem>>, %arg5: memref<1x256xf32, #tpu.memory_space<vmem>>, %arg6: memref<128x128xbf16, #tpu.memory_space<vmem>>, %arg7: memref<1x128xf32, #tpu.memory_space<vmem>>, %arg8: memref<128x256xbf16, #tpu.memory_space<vmem>>, %arg9: memref<1x256xf32, #tpu.memory_space<vmem>>, %arg10: memref<256x256xbf16, #tpu.memory_space<vmem>>, %arg11: memref<256x256xbf16, #tpu.memory_space<vmem>>, %arg12: memref<1x256xf32, #tpu.memory_space<vmem>>, %arg13: memref<256x256xbf16, #tpu.memory_space<vmem>>, %arg14: memref<1x256xf32, #tpu.memory_space<vmem>>, %arg15: memref<16x256xf32, #tpu.memory_space<vmem>>) attributes {dimension_semantics = [#tpu.dimension_semantics<parallel>], iteration_bounds = array<i64: 1>, scalar_prefetch = 0 : i64, scratch_operands = 0 : i64, tpu.core_type = #tpu.core_type<tc>, window_params = [{transform_indices = @transform_0, window_bounds = array<i64: 16, 256>}, {pipeline_mode = #tpu.pipeline_mode<synchronous>, transform_indices = @transform_1, window_bounds = array<i64: 256, 384>}, {pipeline_mode = #tpu.pipeline_mode<synchronous>, transform_indices = @transform_2, window_bounds = array<i64: 1, 384>}, {pipeline_mode = #tpu.pipeline_mode<synchronous>, transform_indices = @transform_3, window_bounds = array<i64: 256, 256>}, {pipeline_mode = #tpu.pipeline_mode<synchronous>, transform_indices = @transform_4, window_bounds = array<i64: 1, 256>}, {pipeline_mode = #tpu.pipeline_mode<synchronous>, transform_indices = @transform_5, window_bounds = array<i64: 128, 128>}, {pipeline_mode = #tpu.pipeline_mode<synchronous>, transform_indices = @transform_6, window_bounds = array<i64: 1, 128>}, {pipeline_mode = #tpu.pipeline_mode<synchronous>, transform_indices = @transform_7, window_bounds = array<i64: 128, 256>}, {pipeline_mode = #tpu.pipeline_mode<synchronous>, transform_indices = @transform_8, window_bounds = array<i64: 1, 256>}, {pipeline_mode = #tpu.pipeline_mode<synchronous>, transform_indices = @transform_9, window_bounds = array<i64: 256, 256>}, {pipeline_mode = #tpu.pipeline_mode<synchronous>, transform_indices = @transform_10, window_bounds = array<i64: 256, 256>}, {pipeline_mode = #tpu.pipeline_mode<synchronous>, transform_indices = @transform_11, window_bounds = array<i64: 1, 256>}, {pipeline_mode = #tpu.pipeline_mode<synchronous>, transform_indices = @transform_12, window_bounds = array<i64: 256, 256>}, {pipeline_mode = #tpu.pipeline_mode<synchronous>, transform_indices = @transform_13, window_bounds = array<i64: 1, 256>}, {transform_indices = @transform_14, window_bounds = array<i64: 16, 256>}]} {
    %c0 = arith.constant 0 : index
    %c0_0 = arith.constant 0 : index
    %0 = vector.load %arg1[%c0, %c0_0] : memref<16x256xf32, #tpu.memory_space<vmem>>, vector<16x256xf32>
    %1 = arith.truncf %0 : vector<16x256xf32> to vector<16x256xbf16>
    %c0_1 = arith.constant 0 : index
    %c0_2 = arith.constant 0 : index
    %2 = vector.load %arg2[%c0_1, %c0_2] : memref<256x384xbf16, #tpu.memory_space<vmem>>, vector<256x384xbf16>
    %cst = arith.constant dense<0.000000e+00> : vector<16x384xf32>
    %3 = tpu.matmul %1, %2, %cst {dimension_numbers = #tpu.dot_dimension_numbers<[1], [0], [0], [1], [0, 0, 1, 1], [], []>} : vector<16x256xbf16>, vector<256x384xbf16>, vector<16x384xf32> -> vector<16x384xf32>
    %c0_3 = arith.constant 0 : index
    %c0_4 = arith.constant 0 : index
    %4 = vector.load %arg3[%c0_3, %c0_4] : memref<1x384xf32, #tpu.memory_space<vmem>>, vector<1x384xf32>
    %5 = vector.broadcast %4 : vector<1x384xf32> to vector<16x384xf32>
    %6 = arith.addf %3, %5 : vector<16x384xf32>
    %7 = vector.extract_strided_slice %6 {offsets = [0, 0], sizes = [16, 256], strides = [1, 1]} : vector<16x384xf32> to vector<16x256xf32>
    %cst_5 = arith.constant 5.000000e-01 : f32
    %8 = vector.broadcast %cst_5 : f32 to vector<16x256xf32>
    %9 = arith.mulf %8, %7 : vector<16x256xf32>
    %cst_6 = arith.constant 0.707106769 : f32
    %10 = vector.broadcast %cst_6 : f32 to vector<16x256xf32>
    %11 = arith.mulf %7, %10 : vector<16x256xf32>
    %12 = math.erf %11 : vector<16x256xf32>
    %cst_7 = arith.constant 1.000000e+00 : f32
    %13 = vector.broadcast %cst_7 : f32 to vector<16x256xf32>
    %14 = arith.addf %13, %12 : vector<16x256xf32>
    %15 = arith.mulf %9, %14 : vector<16x256xf32>
    %16 = arith.truncf %15 : vector<16x256xf32> to vector<16x256xbf16>
    %17 = vector.extract_strided_slice %6 {offsets = [0, 256], sizes = [16, 128], strides = [1, 1]} : vector<16x384xf32> to vector<16x128xf32>
    %cst_8 = arith.constant 5.000000e-01 : f32
    %18 = vector.broadcast %cst_8 : f32 to vector<16x128xf32>
    %19 = arith.mulf %18, %17 : vector<16x128xf32>
    %cst_9 = arith.constant 0.707106769 : f32
    %20 = vector.broadcast %cst_9 : f32 to vector<16x128xf32>
    %21 = arith.mulf %17, %20 : vector<16x128xf32>
    %22 = math.erf %21 : vector<16x128xf32>
    %cst_10 = arith.constant 1.000000e+00 : f32
    %23 = vector.broadcast %cst_10 : f32 to vector<16x128xf32>
    %24 = arith.addf %23, %22 : vector<16x128xf32>
    %25 = arith.mulf %19, %24 : vector<16x128xf32>
    %26 = arith.truncf %25 : vector<16x128xf32> to vector<16x128xbf16>
    %c0_11 = arith.constant 0 : index
    %c0_12 = arith.constant 0 : index
    %27 = vector.load %arg4[%c0_11, %c0_12] : memref<256x256xbf16, #tpu.memory_space<vmem>>, vector<256x256xbf16>
    %cst_13 = arith.constant dense<0.000000e+00> : vector<16x256xf32>
    %28 = tpu.matmul %16, %27, %cst_13 {dimension_numbers = #tpu.dot_dimension_numbers<[1], [0], [0], [1], [0, 0, 1, 1], [], []>} : vector<16x256xbf16>, vector<256x256xbf16>, vector<16x256xf32> -> vector<16x256xf32>
    %c0_14 = arith.constant 0 : index
    %c0_15 = arith.constant 0 : index
    %29 = vector.load %arg5[%c0_14, %c0_15] : memref<1x256xf32, #tpu.memory_space<vmem>>, vector<1x256xf32>
    %30 = vector.broadcast %29 : vector<1x256xf32> to vector<16x256xf32>
    %31 = arith.addf %28, %30 : vector<16x256xf32>
    %32 = arith.truncf %31 : vector<16x256xf32> to vector<16x256xbf16>
    %c0_16 = arith.constant 0 : index
    %c0_17 = arith.constant 0 : index
    %33 = vector.load %arg10[%c0_16, %c0_17] : memref<256x256xbf16, #tpu.memory_space<vmem>>, vector<256x256xbf16>
    %cst_18 = arith.constant dense<0.000000e+00> : vector<16x256xf32>
    %34 = tpu.matmul %32, %33, %cst_18 {dimension_numbers = #tpu.dot_dimension_numbers<[1], [0], [0], [1], [0, 0, 1, 1], [], []>} : vector<16x256xbf16>, vector<256x256xbf16>, vector<16x256xf32> -> vector<16x256xf32>
    %c0_19 = arith.constant 0 : index
    %c0_20 = arith.constant 0 : index
    %35 = vector.load %arg6[%c0_19, %c0_20] : memref<128x128xbf16, #tpu.memory_space<vmem>>, vector<128x128xbf16>
    %cst_21 = arith.constant dense<0.000000e+00> : vector<16x128xf32>
    %36 = tpu.matmul %26, %35, %cst_21 {dimension_numbers = #tpu.dot_dimension_numbers<[1], [0], [0], [1], [0, 0, 1, 1], [], []>} : vector<16x128xbf16>, vector<128x128xbf16>, vector<16x128xf32> -> vector<16x128xf32>
    %c0_22 = arith.constant 0 : index
    %c0_23 = arith.constant 0 : index
    %37 = vector.load %arg7[%c0_22, %c0_23] : memref<1x128xf32, #tpu.memory_space<vmem>>, vector<1x128xf32>
    %38 = vector.broadcast %37 : vector<1x128xf32> to vector<16x128xf32>
    %39 = arith.addf %36, %38 : vector<16x128xf32>
    %cst_24 = arith.constant 5.000000e-01 : f32
    %40 = vector.broadcast %cst_24 : f32 to vector<16x128xf32>
    %41 = arith.mulf %40, %39 : vector<16x128xf32>
    %cst_25 = arith.constant 0.707106769 : f32
    %42 = vector.broadcast %cst_25 : f32 to vector<16x128xf32>
    %43 = arith.mulf %39, %42 : vector<16x128xf32>
    %44 = math.erf %43 : vector<16x128xf32>
    %cst_26 = arith.constant 1.000000e+00 : f32
    %45 = vector.broadcast %cst_26 : f32 to vector<16x128xf32>
    %46 = arith.addf %45, %44 : vector<16x128xf32>
    %47 = arith.mulf %41, %46 : vector<16x128xf32>
    %48 = arith.truncf %47 : vector<16x128xf32> to vector<16x128xbf16>
    %c0_27 = arith.constant 0 : index
    %c0_28 = arith.constant 0 : index
    %49 = vector.load %arg8[%c0_27, %c0_28] : memref<128x256xbf16, #tpu.memory_space<vmem>>, vector<128x256xbf16>
    %cst_29 = arith.constant dense<0.000000e+00> : vector<16x256xf32>
    %50 = tpu.matmul %48, %49, %cst_29 {dimension_numbers = #tpu.dot_dimension_numbers<[1], [0], [0], [1], [0, 0, 1, 1], [], []>} : vector<16x128xbf16>, vector<128x256xbf16>, vector<16x256xf32> -> vector<16x256xf32>
    %c0_30 = arith.constant 0 : index
    %c0_31 = arith.constant 0 : index
    %51 = vector.load %arg9[%c0_30, %c0_31] : memref<1x256xf32, #tpu.memory_space<vmem>>, vector<1x256xf32>
    %52 = vector.broadcast %51 : vector<1x256xf32> to vector<16x256xf32>
    %53 = arith.addf %50, %52 : vector<16x256xf32>
    %54 = arith.truncf %53 : vector<16x256xf32> to vector<16x256xbf16>
    %c0_32 = arith.constant 0 : index
    %c0_33 = arith.constant 0 : index
    %55 = vector.load %arg11[%c0_32, %c0_33] : memref<256x256xbf16, #tpu.memory_space<vmem>>, vector<256x256xbf16>
    %cst_34 = arith.constant dense<0.000000e+00> : vector<16x256xf32>
    %56 = tpu.matmul %54, %55, %cst_34 {dimension_numbers = #tpu.dot_dimension_numbers<[1], [0], [0], [1], [0, 0, 1, 1], [], []>} : vector<16x256xbf16>, vector<256x256xbf16>, vector<16x256xf32> -> vector<16x256xf32>
    %57 = arith.addf %34, %56 : vector<16x256xf32>
    %c0_35 = arith.constant 0 : index
    %c0_36 = arith.constant 0 : index
    %58 = vector.load %arg12[%c0_35, %c0_36] : memref<1x256xf32, #tpu.memory_space<vmem>>, vector<1x256xf32>
    %59 = vector.broadcast %58 : vector<1x256xf32> to vector<16x256xf32>
    %60 = arith.addf %57, %59 : vector<16x256xf32>
    %cst_37 = arith.constant 5.000000e-01 : f32
    %61 = vector.broadcast %cst_37 : f32 to vector<16x256xf32>
    %62 = arith.mulf %61, %60 : vector<16x256xf32>
    %cst_38 = arith.constant 0.707106769 : f32
    %63 = vector.broadcast %cst_38 : f32 to vector<16x256xf32>
    %64 = arith.mulf %60, %63 : vector<16x256xf32>
    %65 = math.erf %64 : vector<16x256xf32>
    %cst_39 = arith.constant 1.000000e+00 : f32
    %66 = vector.broadcast %cst_39 : f32 to vector<16x256xf32>
    %67 = arith.addf %66, %65 : vector<16x256xf32>
    %68 = arith.mulf %62, %67 : vector<16x256xf32>
    %69 = arith.truncf %68 : vector<16x256xf32> to vector<16x256xbf16>
    %c0_40 = arith.constant 0 : index
    %c0_41 = arith.constant 0 : index
    %70 = vector.load %arg13[%c0_40, %c0_41] : memref<256x256xbf16, #tpu.memory_space<vmem>>, vector<256x256xbf16>
    %cst_42 = arith.constant dense<0.000000e+00> : vector<16x256xf32>
    %71 = tpu.matmul %69, %70, %cst_42 {dimension_numbers = #tpu.dot_dimension_numbers<[1], [0], [0], [1], [0, 0, 1, 1], [], []>} : vector<16x256xbf16>, vector<256x256xbf16>, vector<16x256xf32> -> vector<16x256xf32>
    %c0_43 = arith.constant 0 : index
    %c0_44 = arith.constant 0 : index
    %72 = vector.load %arg14[%c0_43, %c0_44] : memref<1x256xf32, #tpu.memory_space<vmem>>, vector<1x256xf32>
    %73 = vector.broadcast %72 : vector<1x256xf32> to vector<16x256xf32>
    %74 = arith.addf %71, %73 : vector<16x256xf32>
    %c0_45 = arith.constant 0 : index
    %c0_46 = arith.constant 0 : index
    %75 = vector.load %arg15[%c0_45, %c0_46] : memref<16x256xf32, #tpu.memory_space<vmem>>, vector<16x256xf32>
    tpu.vector_store %arg15[%c0_45, %c0_46], %74 {strides = array<i32>} : memref<16x256xf32, #tpu.memory_space<vmem>>, vector<16x256xf32>,
    return
  }
  func.func @transform_0(%arg0: i32) -> (i32, i32) {
    %c0_i32 = arith.constant 0 : i32
    %c0_i32_0 = arith.constant 0 : i32
    return %arg0, %c0_i32 : i32, i32
  }
  func.func @transform_1(%arg0: i32) -> (i32, i32) {
    %c0_i32 = arith.constant 0 : i32
    %c0_i32_0 = arith.constant 0 : i32
    %c0_i32_1 = arith.constant 0 : i32
    return %c0_i32, %c0_i32_0 : i32, i32
  }
  func.func @transform_2(%arg0: i32) -> (i32, i32) {
    %c0_i32 = arith.constant 0 : i32
    %c0_i32_0 = arith.constant 0 : i32
    %c0_i32_1 = arith.constant 0 : i32
    return %c0_i32, %c0_i32_0 : i32, i32
  }
  func.func @transform_3(%arg0: i32) -> (i32, i32) {
    %c0_i32 = arith.constant 0 : i32
    %c0_i32_0 = arith.constant 0 : i32
    %c0_i32_1 = arith.constant 0 : i32
    return %c0_i32, %c0_i32_0 : i32, i32
  }
  func.func @transform_4(%arg0: i32) -> (i32, i32) {
    %c0_i32 = arith.constant 0 : i32
    %c0_i32_0 = arith.constant 0 : i32
    %c0_i32_1 = arith.constant 0 : i32
    return %c0_i32, %c0_i32_0 : i32, i32
  }
  func.func @transform_5(%arg0: i32) -> (i32, i32) {
    %c0_i32 = arith.constant 0 : i32
    %c0_i32_0 = arith.constant 0 : i32
    %c0_i32_1 = arith.constant 0 : i32
    return %c0_i32, %c0_i32_0 : i32, i32
  }
  func.func @transform_6(%arg0: i32) -> (i32, i32) {
    %c0_i32 = arith.constant 0 : i32
    %c0_i32_0 = arith.constant 0 : i32
    %c0_i32_1 = arith.constant 0 : i32
    return %c0_i32, %c0_i32_0 : i32, i32
  }
  func.func @transform_7(%arg0: i32) -> (i32, i32) {
    %c0_i32 = arith.constant 0 : i32
    %c0_i32_0 = arith.constant 0 : i32
    %c0_i32_1 = arith.constant 0 : i32
    return %c0_i32, %c0_i32_0 : i32, i32
  }
  func.func @transform_8(%arg0: i32) -> (i32, i32) {
    %c0_i32 = arith.constant 0 : i32
    %c0_i32_0 = arith.constant 0 : i32
    %c0_i32_1 = arith.constant 0 : i32
    return %c0_i32, %c0_i32_0 : i32, i32
  }
  func.func @transform_9(%arg0: i32) -> (i32, i32) {
    %c0_i32 = arith.constant 0 : i32
    %c0_i32_0 = arith.constant 0 : i32
    %c0_i32_1 = arith.constant 0 : i32
    return %c0_i32, %c0_i32_0 : i32, i32
  }
  func.func @transform_10(%arg0: i32) -> (i32, i32) {
    %c0_i32 = arith.constant 0 : i32
    %c0_i32_0 = arith.constant 0 : i32
    %c0_i32_1 = arith.constant 0 : i32
    return %c0_i32, %c0_i32_0 : i32, i32
  }
  func.func @transform_11(%arg0: i32) -> (i32, i32) {
    %c0_i32 = arith.constant 0 : i32
    %c0_i32_0 = arith.constant 0 : i32
    %c0_i32_1 = arith.constant 0 : i32
    return %c0_i32, %c0_i32_0 : i32, i32
  }
  func.func @transform_12(%arg0: i32) -> (i32, i32) {
    %c0_i32 = arith.constant 0 : i32
    %c0_i32_0 = arith.constant 0 : i32
    %c0_i32_1 = arith.constant 0 : i32
    return %c0_i32, %c0_i32_0 : i32, i32
  }
  func.func @transform_13(%arg0: i32) -> (i32, i32) {
    %c0_i32 = arith.constant 0 : i32
    %c0_i32_0 = arith.constant 0 : i32
    %c0_i32_1 = arith.constant 0 : i32
    return %c0_i32, %c0_i32_0 : i32, i32
  }
  func.func @transform_14(%arg0: i32) -> (i32, i32) {
    %c0_i32 = arith.constant 0 : i32
    %c0_i32_0 = arith.constant 0 : i32
    return %arg0, %c0_i32 : i32, i32
  }
}

</mosaic_0001>

<bundles_post_ra>
// kernel: enhanced_token_processor.1
= control target key start
LH: loop header
LB: loop body
LE: loop exit
PB: predicated region body
PF: predicated region fallthrough
CT: control target
= control target key end

     0   :  { %19 = vsyncpa [#allocation3], 0  ;;  %s3016_s0 = inlined_call_operand.hbm [shape: f32[16,256], index: 0, kind: input, shape index: {}]   ;;  %s3017_s1 = inlined_call_operand.hbm [shape: bf16[256,384], index: 1, kind: input, shape index: {}]   ;;  %s3018_s2 = inlined_call_operand.vmem [shape: f32[1,384], index: 2, kind: input, shape index: {}]   ;;  %s3019_s3 = inlined_call_operand.hbm [shape: bf16[256,256], index: 3, kind: input, shape index: {}]   ;;  %s3020_s4 = inlined_call_operand.vmem [shape: f32[1,256], index: 4, kind: input, shape index: {}]   ;;  %s3021_s5 = inlined_call_operand.hbm [shape: bf16[128,128], index: 5, kind: input, shape index: {}]   ;;  %s3022_s6 = inlined_call_operand.vmem [shape: f32[1,128], index: 6, kind: input, shape index: {}]   ;;  %s3023_s7 = inlined_call_operand.hbm [shape: bf16[128,256], index: 7, kind: input, shape index: {}]   ;;  %s3024_s8 = inlined_call_operand.vmem [shape: f32[1,256], index: 8, kind: input, shape index: {}]   ;;  %s3025_s9 = inlined_call_operand.hbm [shape: bf16[256,256], index: 9, kind: input, shape index: {}]   ;;  %s3026_s10 = inlined_call_operand.hbm [shape: bf16[256,256], index: 10, kind: input, shape index: {}]   ;;  %s3027_s11 = inlined_call_operand.vmem [shape: f32[1,256], index: 11, kind: input, shape index: {}]   ;;  %s3028_s12 = inlined_call_operand.hbm [shape: bf16[256,256], index: 12, kind: input, shape index: {}]   ;;  %s3029_s13 = inlined_call_operand.vmem [shape: f32[1,256], index: 13, kind: input, shape index: {}]   ;;  %s3030_s14 = inlined_call_operand.hbm [shape: f32[16,256], index: 14, kind: output, shape index: {}]  }
   0x1   :  { %20 = vsyncpa [#allocation6], 0 }
   0x2   :  { %21 = vsyncpa [#allocation9], 0 }
   0x3   :  { %22 = vsyncpa [#allocation12], 0 }
   0x4   :  { %23 = vsyncpa [#allocation15], 0 }
   0x5   :  { %24 = vsyncpa [#allocation4], 0  ;;  %s2721_s29 = smov [#allocation5]   ;;  %s2511_s17 = scalar_lea.hbm %s3017_s1, 6144 }
   0x6   :  { %s42_s30 = sshll.u32 %s2721_s29, 4  ;;  %p2512_p0 = scmp.ne.s32.totalorder %s3017_s1, %s2511_s17  ;;  %s43_s30 = int_to_ptr.vmem [resolvable:$true] %s42_s30 }
   0x7   :  { %p2515_p1 = scmp.lt.u32.totalorder %s2511_s17, %s3017_s1 }
   0x9   :  { %p2517_p2 = pnand %p2515_p1, %p2512_p0 }
   0xb   :  { %2520 = shalt.err (!%p2517_p2)
}
   0xc   :  { %s2521_s22 = scalar_lea.vmem %s43_s30, 6144  ;;  %p2526_p4 = scmp.lt.s32.totalorder %s43_s30, %s43_s30 }
   0xd   :  { %p2522_p3 = scmp.ne.s32.totalorder %s43_s30, %s2521_s22  ;;  %p2527_p5 = scmp.lt.s32.totalorder %s2521_s22, %s2521_s22 }
   0xf   :  { %p2528_p6 = por %p2527_p5, %p2526_p4 }
  0x11   :  { %p2529_p7 = pnand %p2528_p6, %p2522_p3 }
  0x13   :  { %2532 = shalt.err (!%p2529_p7)
}
  0x14   :  { %s2722_s23 = smov 192   ;;  %s2723_s24 = smov 12  }
  0x15   :  { %48 = dma.hbm_to_vmem [thread:$0]  %s3017_s1, 6144, %s43_s30, [#allocation6], %s2722_s23, %s2722_s23, %s2723_s24  }
  0x16   :  { %s2724_s27 = smov [#allocation8]   ;;  %s2533_s16 = scalar_lea.hbm %s3021_s5, 1024 }
  0x17   :  { %s70_s28 = sshll.u32 %s2724_s27, 4  ;;  %p2534_p8 = scmp.ne.s32.totalorder %s3021_s5, %s2533_s16  ;;  %s71_s28 = int_to_ptr.vmem [resolvable:$true] %s70_s28 }
  0x18   :  { %p2537_p9 = scmp.lt.u32.totalorder %s2533_s16, %s3021_s5 }
  0x1a   :  { %p2539_p10 = pnand %p2537_p9, %p2534_p8 }
  0x1c   :  { %2542 = shalt.err (!%p2539_p10)
}
  0x1d   :  { %s2543_s21 = scalar_lea.vmem %s71_s28, 1024  ;;  %p2548_p12 = scmp.lt.s32.totalorder %s71_s28, %s71_s28 }
  0x1e   :  { %p2544_p11 = scmp.ne.s32.totalorder %s71_s28, %s2543_s21  ;;  %p2549_p13 = scmp.lt.s32.totalorder %s2543_s21, %s2543_s21 }
  0x20   :  { %p2550_p0 = por %p2549_p13, %p2548_p12 }
  0x22   :  { %p2551_p1 = pnand %p2550_p0, %p2544_p11 }
  0x24   :  { %2554 = shalt.err (!%p2551_p1)
}
  0x25   :  { %s2725_s1 = smov 64   ;;  %s2726_s30 = smov 4  }
  0x26   :  { %76 = dma.hbm_to_vmem [thread:$0]  %s3021_s5, 1024, %s71_s28, [#allocation9], %s2725_s1, %s2725_s1, %s2726_s30  }
  0x27   :  { %s2727_s24 = smov [#allocation11]   ;;  %s2728_s26 = smov [#allocation2]  }
  0x28   :  { %s98_s25 = sshll.u32 %s2727_s24, 4  ;;  %s30_s27 = sshll.u32 %s2728_s26, 4  ;;  %s99_s25 = int_to_ptr.vmem [resolvable:$true] %s98_s25  ;;  %s2840_s27 = int_to_ptr.vmem [resolvable:$true] %s30_s27 }
  0x29   :  { %s2555_s16 = scalar_lea.hbm %s3025_s9, 4096 }
  0x2a   :  { %p2556_p2 = scmp.ne.s32.totalorder %s3025_s9, %s2555_s16  ;;  %p2559_p3 = scmp.lt.u32.totalorder %s2555_s16, %s3025_s9 }
  0x2c   :  { %p2561_p4 = pnand %p2559_p3, %p2556_p2 }
  0x2e   :  { %2564 = shalt.err (!%p2561_p4)
}
  0x2f   :  { %s2565_s5 = scalar_lea.vmem %s99_s25, 4096  ;;  %p2570_p6 = scmp.lt.s32.totalorder %s99_s25, %s99_s25 }
  0x30   :  { %p2566_p5 = scmp.ne.s32.totalorder %s99_s25, %s2565_s5  ;;  %p2571_p7 = scmp.lt.s32.totalorder %s2565_s5, %s2565_s5 }
  0x32   :  { %p2572_p8 = por %p2571_p7, %p2570_p6 }
  0x34   :  { %p2573_p9 = pnand %p2572_p8, %p2566_p5 }
  0x36   :  { %2576 = shalt.err (!%p2573_p9)
}
  0x37   :  { %s2729_s28 = smov 128   ;;  %s2730_s21 = smov 8  }
  0x38   :  { %104 = dma.hbm_to_vmem [thread:$0]  %s3025_s9, 4096, %s99_s25, [#allocation12], %s2729_s28, %s2729_s28, %s2730_s21  }
  0x39   :  { %s2577_s24 = scalar_lea.hbm %s3016_s0, 512 }
  0x3a   :  { %p2578_p10 = scmp.ne.s32.totalorder %s3016_s0, %s2577_s24  ;;  %p2581_p11 = scmp.lt.u32.totalorder %s2577_s24, %s3016_s0 }
  0x3c   :  { %p2583_p12 = pnand %p2581_p11, %p2578_p10 }
  0x3e   :  { %2586 = shalt.err (!%p2583_p12)
}
  0x3f   :  { %s2587_s17 = scalar_lea.vmem %s2840_s27, 512  ;;  %p2592_p0 = scmp.lt.s32.totalorder %s2840_s27, %s2840_s27 }
  0x40   :  { %p2588_p13 = scmp.ne.s32.totalorder %s2840_s27, %s2587_s17  ;;  %p2593_p1 = scmp.lt.s32.totalorder %s2587_s17, %s2587_s17 }
  0x42   :  { %p2594_p2 = por %p2593_p1, %p2592_p0 }
  0x44   :  { %p2595_p3 = pnand %p2594_p2, %p2588_p13 }
  0x46   :  { %2598 = shalt.err (!%p2595_p3)
}
  0x47   :  { %s2731_s9 = smov 256   ;;  %s2732_s25 = smov 16  }
  0x48   :  { %36 = dma.hbm_to_vmem [thread:$0]  %s3016_s0, 512, %s2840_s27, [#allocation3], %s2731_s9, %s2731_s9, %s2732_s25  }
  0x49   :  { %s2733_s20 = smov [#allocation7]   ;;  %s2734_s1 = smov [#allocation10]  }
  0x4a   :  { %s56_s5 = sshll.u32 %s2733_s20, 4  ;;  %s84_s30 = sshll.u32 %s2734_s1, 4  ;;  %s57_s5 = int_to_ptr.vmem [resolvable:$true] %s56_s5  ;;  %s2877_s30 = int_to_ptr.vmem [resolvable:$true] %s84_s30 }
  0x4b   :  { %s2599_s24 = scalar_lea.hbm %s3019_s3, 4096 }
  0x4c   :  { %p2600_p4 = scmp.ne.s32.totalorder %s3019_s3, %s2599_s24  ;;  %p2603_p5 = scmp.lt.u32.totalorder %s2599_s24, %s3019_s3 }
  0x4e   :  { %p2605_p6 = pnand %p2603_p5, %p2600_p4 }
  0x50   :  { %2608 = shalt.err (!%p2605_p6)
}
  0x51   :  { %s2609_s0 = scalar_lea.vmem %s57_s5, 4096  ;;  %p2614_p8 = scmp.lt.s32.totalorder %s57_s5, %s57_s5 }
  0x52   :  { %p2610_p7 = scmp.ne.s32.totalorder %s57_s5, %s2609_s0  ;;  %p2615_p9 = scmp.lt.s32.totalorder %s2609_s0, %s2609_s0 }
  0x54   :  { %p2616_p10 = por %p2615_p9, %p2614_p8 }
  0x56   :  { %p2617_p11 = pnand %p2616_p10, %p2610_p7 }
  0x58   :  { %2620 = shalt.err (!%p2617_p11)
}
  0x59   :  { %62 = dma.hbm_to_vmem [thread:$0]  %s3019_s3, 4096, %s57_s5, [#allocation6], %s2729_s28, %s2729_s28, %s2730_s21  }
  0x5a   :  { %s2621_s20 = scalar_lea.hbm %s3023_s7, 2048 }
  0x5b   :  { %p2622_p12 = scmp.ne.s32.totalorder %s3023_s7, %s2621_s20  ;;  %p2625_p13 = scmp.lt.u32.totalorder %s2621_s20, %s3023_s7 }
  0x5d   :  { %p2627_p0 = pnand %p2625_p13, %p2622_p12 }
  0x5f   :  { %2630 = shalt.err (!%p2627_p0)
}
  0x60   :  { %s2631_s26 = scalar_lea.vmem %s2877_s30, 2048  ;;  %p2636_p2 = scmp.lt.s32.totalorder %s2877_s30, %s2877_s30 }
  0x61   :  { %p2632_p1 = scmp.ne.s32.totalorder %s2877_s30, %s2631_s26  ;;  %p2637_p3 = scmp.lt.s32.totalorder %s2631_s26, %s2631_s26 }
  0x63   :  { %p2638_p4 = por %p2637_p3, %p2636_p2 }
  0x65   :  { %p2639_p5 = pnand %p2638_p4, %p2632_p1 }
  0x67   :  { %2642 = shalt.err (!%p2639_p5)
}
  0x68   :  { %90 = dma.hbm_to_vmem [thread:$0]  %s3023_s7, 2048, %s2877_s30, [#allocation9], %s2729_s28, %s2729_s28, %s2730_s21  }
  0x69   :  { %s2735_s29 = smov [#allocation13]   ;;  %s2736_s16 = smov [#allocation14]  }
  0x6a   :  { %s110_s15 = sshll.u32 %s2735_s29, 4  ;;  %s124_s0 = sshll.u32 %s2736_s16, 4  ;;  %s111_s15 = int_to_ptr.vmem [resolvable:$true] %s110_s15  ;;  %s2914_s0 = int_to_ptr.vmem [resolvable:$true] %s124_s0 }
  0x6b   :  { %s2643_s18 = scalar_lea.hbm %s3026_s10, 4096 }
  0x6c   :  { %p2644_p6 = scmp.ne.s32.totalorder %s3026_s10, %s2643_s18  ;;  %p2647_p7 = scmp.lt.u32.totalorder %s2643_s18, %s3026_s10 }
  0x6e   :  { %p2649_p8 = pnand %p2647_p7, %p2644_p6 }
  0x70   :  { %2652 = shalt.err (!%p2649_p8)
}
  0x71   :  { %s2653_s7 = scalar_lea.vmem %s111_s15, 4096  ;;  %p2658_p10 = scmp.lt.s32.totalorder %s111_s15, %s111_s15 }
  0x72   :  { %p2654_p9 = scmp.ne.s32.totalorder %s111_s15, %s2653_s7  ;;  %p2659_p11 = scmp.lt.s32.totalorder %s2653_s7, %s2653_s7 }
  0x74   :  { %p2660_p12 = por %p2659_p11, %p2658_p10 }
  0x76   :  { %p2661_p13 = pnand %p2660_p12, %p2654_p9 }
  0x78   :  { %2664 = shalt.err (!%p2661_p13)
}
  0x79   :  { %116 = dma.hbm_to_vmem [thread:$0]  %s3026_s10, 4096, %s111_s15, [#allocation12], %s2729_s28, %s2729_s28, %s2730_s21  }
  0x7a   :  { %s2665_s3 = scalar_lea.hbm %s3028_s12, 4096 }
  0x7b   :  { %p2666_p0 = scmp.ne.s32.totalorder %s3028_s12, %s2665_s3  ;;  %p2669_p1 = scmp.lt.u32.totalorder %s2665_s3, %s3028_s12 }
  0x7d   :  { %p2671_p2 = pnand %p2669_p1, %p2666_p0 }
  0x7f   :  { %2674 = shalt.err (!%p2671_p2)
}
  0x80   :  { %s2675_s17 = scalar_lea.vmem %s2914_s0, 4096  ;;  %p2680_p4 = scmp.lt.s32.totalorder %s2914_s0, %s2914_s0 }
  0x81   :  { %p2676_p3 = scmp.ne.s32.totalorder %s2914_s0, %s2675_s17  ;;  %p2681_p5 = scmp.lt.s32.totalorder %s2675_s17, %s2675_s17 }
  0x83   :  { %p2682_p6 = por %p2681_p5, %p2680_p4 }
  0x85   :  { %p2683_p7 = pnand %p2682_p6, %p2676_p3 }
  0x87   :  { %2686 = shalt.err (!%p2683_p7)
}
  0x88   :  { %130 = dma.hbm_to_vmem [thread:$0]  %s3028_s12, 4096, %s2914_s0, [#allocation15], %s2729_s28, %s2729_s28, %s2730_s21  }
  0x89   :  { %2709 = dma.done.wait [#allocation3], 512  }
  0x8a   :  { %2710 = vsyncadd [#allocation3], 4294966784 }
  0x8b   :  { %2711 = dma.done.wait [#allocation6], 10240  }
  0x8c   :  { %2712 = vsyncadd [#allocation6], 4294957056 }
  0x8d   :  { %2713 = dma.done.wait [#allocation9], 3072  }
  0x8e   :  { %2714 = vsyncadd [#allocation9], 4294964224 }
  0x8f   :  { %2715 = dma.done.wait [#allocation12], 8192  }
  0x90   :  { %2716 = vsyncadd [#allocation12], 4294959104 }
  0x91   :  { %2717 = dma.done.wait [#allocation15], 4096  }
  0x92   :  { %2718 = vsyncadd [#allocation15], 4294963200  ;;  %v2199_v0 = vld [vmem:[#allocation5 + $0xc8] ss:$12 sps:$4 sm:$0xff]   ;;  %v2201_v2 = vld [vmem:[#allocation5 + $0xe0] ss:$12 sps:$4 sm:$0xff]  }
  0x93   :  { %v2200_v1 = vld [vmem:[#allocation5 + $0x8] ss:$12 sps:$4 sm:$0xff]   ;;  %2124 = vmatprep.subr.bf16.mxu1 %v2199_v0  ;;  %v2202_v3 = vld [vmem:[#allocation5 + $0x20] ss:$12 sps:$4 sm:$0xff]   ;;  %v2203_v4 = vld [vmem:[#allocation5 + $0xf8] ss:$12 sps:$4 sm:$0xff]  }
  0x94   :  { %2125 = vmatpush3.bf16.msra.mxu1 %v2200_v1  ;;  %v2204_v5 = vld [vmem:[#allocation5 + $0x38] ss:$12 sps:$4 sm:$0xff]   ;;  %v2205_v6 = vld [vmem:[#allocation5 + $0x110] ss:$12 sps:$4 sm:$0xff]   ;;  %v2207_v8 = vld [vmem:[#allocation5 + $0x128] ss:$12 sps:$4 sm:$0xff]  }
  0x95   :  { %2126 = vmatprep.subr.bf16.mxu1 %v2201_v2  ;;  %v2206_v7 = vld [vmem:[#allocation5 + $0x50] ss:$12 sps:$4 sm:$0xff]   ;;  %v2208_v9 = vld [vmem:[#allocation5 + $0x68] ss:$12 sps:$4 sm:$0xff]   ;;  %v2209_v10 = vld [vmem:[#allocation5 + $0x140] ss:$12 sps:$4 sm:$0xff]  }
  0x96   :  { %v159_v11 = vld [vmem:[#allocation2 + $0x8] sm:$0xff]  ;;  %v161_v12 = vld [vmem:[#allocation2 + $0x18] sm:$0xff]  ;;  %v2215_v14 = vld [vmem:[#allocation5 + $0x4] ss:$12 sps:$4 sm:$0xff]   ;;  %v2737_v55 = vmov 0.0   ;;  %vm2738_vm0 = vmmov 0  }
  0x97   :  { %v163_v13 = vpack.c.bf16 %v161_v12, %v159_v11  ;;  %v2217_v15 = vld [vmem:[#allocation5] ss:$12 sps:$4 sm:$0xff]   ;;  %v2218_v17 = vld [vmem:[#allocation5 + $0x1c] ss:$12 sps:$4 sm:$0xff]   ;;  %v2211_v18 = vld [vmem:[#allocation5 + $0x158] ss:$12 sps:$4 sm:$0xff]   ;;  %501 = vmatprep.subr.bf16.mxu0 %v2215_v14 }
  0x98   :  { %2127 = vmatpush3.bf16.msra.mxu1 %v2202_v3  ;;  %v2210_v16 = vld [vmem:[#allocation5 + $0x80] ss:$12 sps:$4 sm:$0xff]   ;;  %502 = vmatpush1.bf16.msra.mxu0 %v2217_v15  ;;  %v2220_v19 = vld [vmem:[#allocation5 + $0x18] ss:$12 sps:$4 sm:$0xff]   ;;  %v2213_v22 = vld [vmem:[#allocation5 + $0x170] ss:$12 sps:$4 sm:$0xff]  }
  0x99   :  { %2128 = vmatprep.subr.bf16.mxu1 %v2203_v4  ;;  %576 = vmatprep.mubr.bf16.mxu1 %v163_v13  ;;  %v2221_v20 = vld [vmem:[#allocation5 + $0x34] ss:$12 sps:$4 sm:$0xff]   ;;  %v2212_v21 = vld [vmem:[#allocation5 + $0x98] ss:$12 sps:$4 sm:$0xff]   ;;  %v2223_v23 = vld [vmem:[#allocation5 + $0x30] ss:$12 sps:$4 sm:$0xff]  }
  0x9a   :  { %533 = vmatprep.mubr.bf16.mxu0 %v163_v13  ;;  %503 = vmatprep.subr.bf16.mxu0 %v2218_v17  ;;  %v2214_v24 = vld [vmem:[#allocation5 + $0xb0] ss:$12 sps:$4 sm:$0xff]   ;;  %v2224_v25 = vld [vmem:[#allocation5 + $0x4c] ss:$12 sps:$4 sm:$0xff]   ;;  %v158_v26 = vld [vmem:[#allocation2] sm:$0xff]  ;;  %s2740_s1 = smov [#allocation16]  }
  0x9b   :  { %v160_v27 = vld [vmem:[#allocation2 + $0x10] sm:$0xff]  ;;  %v2229_v31 = vld [vmem:[#allocation5 + $0x60] ss:$12 sps:$4 sm:$0xff]   ;;  %v2230_v32 = vld [vmem:[#allocation5 + $0x7c] ss:$12 sps:$4 sm:$0xff]   ;;  %s1907_s22 = sshll.u32 %s2740_s1, 4  ;;  %s1908_s22 = int_to_ptr.vmem [resolvable:$true] %s1907_s22 }
  0x9c   :  { %2129 = vmatpush3.bf16.msra.mxu1 %v2204_v5  ;;  %504 = vmatpush1.bf16.msra.mxu0 %v2220_v19  ;;  %v2226_v28 = vld [vmem:[#allocation5 + $0x48] ss:$12 sps:$4 sm:$0xff]   ;;  %v162_v29 = vpack.c.bf16 %v160_v27, %v158_v26  ;;  %v2227_v30 = vld [vmem:[#allocation5 + $0x64] ss:$12 sps:$4 sm:$0xff]   ;;  %v2236_v36 = vld [vmem:[#allocation5 + $0xac] ss:$12 sps:$4 sm:$0xff]   ;;  %p2692_p9 = scmp.lt.s32.totalorder %s1908_s22, %s1908_s22 }
  0x9d   :  { %2130 = vmatprep.subr.bf16.mxu1 %v2205_v6  ;;  %505 = vmatprep.subr.bf16.mxu0 %v2221_v20  ;;  %v2232_v33 = vld [vmem:[#allocation5 + $0x78] ss:$12 sps:$4 sm:$0xff]   ;;  %v2233_v34 = vld [vmem:[#allocation5 + $0x94] ss:$12 sps:$4 sm:$0xff]   ;;  %v2235_v35 = vld [vmem:[#allocation5 + $0x90] ss:$12 sps:$4 sm:$0xff]  }
  0x9e   :  { %v2238_v37 = vld [vmem:[#allocation5 + $0xa8] ss:$12 sps:$4 sm:$0xff]   ;;  %v2239_v38 = vld [vmem:[#allocation5 + $0xc4] ss:$12 sps:$4 sm:$0xff]   ;;  %v2241_v39 = vld [vmem:[#allocation5 + $0xc0] ss:$12 sps:$4 sm:$0xff]  }
  0x9f   :  { %v2242_v40 = vld [vmem:[#allocation5 + $0xdc] ss:$12 sps:$4 sm:$0xff]   ;;  %v2244_v41 = vld [vmem:[#allocation5 + $0xd8] ss:$12 sps:$4 sm:$0xff]   ;;  %v2245_v42 = vld [vmem:[#allocation5 + $0xf4] ss:$12 sps:$4 sm:$0xff]  }
  0xa0   :  { %2131 = vmatpush3.bf16.msra.mxu1 %v2206_v7  ;;  %506 = vmatpush1.bf16.msra.mxu0 %v2223_v23  ;;  %v2247_v43 = vld [vmem:[#allocation5 + $0xf0] ss:$12 sps:$4 sm:$0xff]   ;;  %v2248_v44 = vld [vmem:[#allocation5 + $0x10c] ss:$12 sps:$4 sm:$0xff]   ;;  %v2250_v45 = vld [vmem:[#allocation5 + $0x108] ss:$12 sps:$4 sm:$0xff]  }
  0xa1   :  { %2132 = vmatprep.subr.bf16.mxu1 %v2207_v8  ;;  %507 = vmatprep.subr.bf16.mxu0 %v2224_v25  ;;  %v2251_v46 = vld [vmem:[#allocation5 + $0x124] ss:$12 sps:$4 sm:$0xff]   ;;  %v2253_v47 = vld [vmem:[#allocation5 + $0x120] ss:$12 sps:$4 sm:$0xff]   ;;  %v2254_v48 = vld [vmem:[#allocation5 + $0x13c] ss:$12 sps:$4 sm:$0xff]  }
  0xa2   :  { %v2256_v49 = vld [vmem:[#allocation5 + $0x138] ss:$12 sps:$4 sm:$0xff]   ;;  %v2257_v50 = vld [vmem:[#allocation5 + $0x154] ss:$12 sps:$4 sm:$0xff]   ;;  %v2259_v51 = vld [vmem:[#allocation5 + $0x150] ss:$12 sps:$4 sm:$0xff]  }
  0xa3   :  { %v2260_v52 = vld [vmem:[#allocation5 + $0x16c] ss:$12 sps:$4 sm:$0xff]   ;;  %v2262_v53 = vld [vmem:[#allocation5 + $0x168] ss:$12 sps:$4 sm:$0xff]   ;;  %v2263_v54 = vld [vmem:[#allocation8] sm:$0xff]  }
  0xa4   :  { %2133 = vmatpush3.bf16.msra.mxu1 %v2208_v9  ;;  %508 = vmatpush1.bf16.msra.mxu0 %v2226_v28  ;;  %v2264_v56 = vld [vmem:[#allocation8 + $0x8] sm:$0xff]   ;;  %v2265_v57 = vld [vmem:[#allocation8 + $0x10] sm:$0xff]   ;;  %v2266_v58 = vld [vmem:[#allocation8 + $0x18] sm:$0xff]  }
  0xa5   :  { %2134 = vmatprep.subr.bf16.mxu1 %v2209_v10  ;;  %509 = vmatprep.subr.bf16.mxu0 %v2227_v30  ;;  %v2267_v59 = vld [vmem:[#allocation8 + $0x20] sm:$0xff]   ;;  %v2268_v60 = vld [vmem:[#allocation8 + $0x28] sm:$0xff]   ;;  %v2269_v61 = vld [vmem:[#allocation8 + $0x30] sm:$0xff]  }
  0xa6   :  { %v2270_v62 = vld [vmem:[#allocation8 + $0x38] sm:$0xff]   ;;  %v2271_v63 = vld [vmem:[#allocation7] ss:$8 sps:$4 sm:$0xff]   ;;  %v2273_v0 = vld [vmem:[#allocation7 + $0x4] ss:$8 sps:$4 sm:$0xff]  }
  0xa7   :  { %v2276_v1 = vld [vmem:[#allocation7 + $0x14] ss:$8 sps:$4 sm:$0xff]   ;;  %v2274_v2 = vld [vmem:[#allocation7 + $0x10] ss:$8 sps:$4 sm:$0xff]   ;;  %v2279_v3 = vld [vmem:[#allocation7 + $0x24] ss:$8 sps:$4 sm:$0xff]  }
  0xa8   :  { %2135 = vmatpush3.bf16.msra.mxu1 %v2210_v16  ;;  %510 = vmatpush1.bf16.msra.mxu0 %v2229_v31  ;;  %v2277_v4 = vld [vmem:[#allocation7 + $0x20] ss:$8 sps:$4 sm:$0xff]   ;;  %v2282_v5 = vld [vmem:[#allocation7 + $0x34] ss:$8 sps:$4 sm:$0xff]   ;;  %v2280_v6 = vld [vmem:[#allocation7 + $0x30] ss:$8 sps:$4 sm:$0xff]  }
  0xa9   :  { %2136 = vmatprep.subr.bf16.mxu1 %v2211_v18  ;;  %511 = vmatprep.subr.bf16.mxu0 %v2230_v32  ;;  %v2285_v7 = vld [vmem:[#allocation7 + $0x44] ss:$8 sps:$4 sm:$0xff]   ;;  %v2283_v8 = vld [vmem:[#allocation7 + $0x40] ss:$8 sps:$4 sm:$0xff]   ;;  %v2288_v9 = vld [vmem:[#allocation7 + $0x54] ss:$8 sps:$4 sm:$0xff]   ;;  %v230_v32 = vlaneseq }
  0xaa   :  { %v2286_v10 = vld [vmem:[#allocation7 + $0x50] ss:$8 sps:$4 sm:$0xff]   ;;  %v2291_v11 = vld [vmem:[#allocation7 + $0x64] ss:$8 sps:$4 sm:$0xff]   ;;  %v2289_v12 = vld [vmem:[#allocation7 + $0x60] ss:$8 sps:$4 sm:$0xff]  }
  0xab   :  { %v2294_v13 = vld [vmem:[#allocation7 + $0x74] ss:$8 sps:$4 sm:$0xff]   ;;  %v2292_v14 = vld [vmem:[#allocation7 + $0x70] ss:$8 sps:$4 sm:$0xff]   ;;  %v2297_v15 = vld [vmem:[#allocation7 + $0x84] ss:$8 sps:$4 sm:$0xff]  }
  0xac   :  { %2137 = vmatpush3.bf16.msra.mxu1 %v2212_v21  ;;  %512 = vmatpush1.bf16.msra.mxu0 %v2232_v33  ;;  %v2295_v16 = vld [vmem:[#allocation7 + $0x80] ss:$8 sps:$4 sm:$0xff]   ;;  %v2300_v17 = vld [vmem:[#allocation7 + $0x94] ss:$8 sps:$4 sm:$0xff]   ;;  %v2298_v18 = vld [vmem:[#allocation7 + $0x90] ss:$8 sps:$4 sm:$0xff]  }
  0xad   :  { %2138 = vmatprep.subr.bf16.mxu1 %v2213_v22  ;;  %513 = vmatprep.subr.bf16.mxu0 %v2233_v34  ;;  %v2301_v19 = vld [vmem:[#allocation7 + $0xa0] ss:$8 sps:$4 sm:$0xff]   ;;  %v2303_v20 = vld [vmem:[#allocation7 + $0xa4] ss:$8 sps:$4 sm:$0xff]   ;;  %v2306_v21 = vld [vmem:[#allocation7 + $0xb4] ss:$8 sps:$4 sm:$0xff]  }
  0xae   :  { %v2304_v22 = vld [vmem:[#allocation7 + $0xb0] ss:$8 sps:$4 sm:$0xff]   ;;  %v2309_v23 = vld [vmem:[#allocation7 + $0xc4] ss:$8 sps:$4 sm:$0xff]   ;;  %v2307_v25 = vld [vmem:[#allocation7 + $0xc0] ss:$8 sps:$4 sm:$0xff]  }
  0xaf   :  { %v2312_v26 = vld [vmem:[#allocation7 + $0xd4] ss:$8 sps:$4 sm:$0xff]   ;;  %v2310_v27 = vld [vmem:[#allocation7 + $0xd0] ss:$8 sps:$4 sm:$0xff]   ;;  %v2315_v28 = vld [vmem:[#allocation7 + $0xe4] ss:$8 sps:$4 sm:$0xff]  }
  0xb0   :  { %2139 = vmatpush3.bf16.msra.mxu1 %v2214_v24  ;;  %514 = vmatpush1.bf16.msra.mxu0 %v2235_v35  ;;  %v2321_v24 = vld [vmem:[#allocation10 + $0x4] ss:$8 sps:$4 sm:$0xff]   ;;  %v2318_v30 = vld [vmem:[#allocation7 + $0xf4] ss:$8 sps:$4 sm:$0xff]   ;;  %v2316_v31 = vld [vmem:[#allocation7 + $0xf0] ss:$8 sps:$4 sm:$0xff]  }
  0xb1   :  { %515 = vmatprep.subr.bf16.mxu0 %v2236_v36  ;;  %822 = vmatprep.subr.bf16.mxu1 %v2273_v0  ;;  %v231_v33 = vshrl.u32 %v230_v32, 7  ;;  %v228_v35 = vld [vmem:[%s3018_s2] sm:$0x7]  ;;  %v2328_v32 = vld [vmem:[#allocation10 + $0x30] ss:$8 sps:$4 sm:$0xff]  }
  0xb3   :  { %577 = vmatmul.mubr.bf16.vlgmr.msra.gmra.mrb[0].mxu1 %v162_v29  ;;  %v240_v34 = vsub.s32 2, %v231_v33 }
  0xb4   :  { %516 = vmatpush1.bf16.msra.mxu0 %v2238_v37  ;;  %823 = vmatpush1.bf16.msra.mxu1 %v2271_v63 }
  0xb5   :  { %517 = vmatprep.subr.bf16.mxu0 %v2239_v38  ;;  %824 = vmatprep.subr.bf16.mxu1 %v2276_v1  ;;  %v241_v37 = vrot.slane %v228_v35, %v240_v34  ;;  %v2331_v34 = vld [vmem:[#allocation10 + $0x40] ss:$8 sps:$4 sm:$0xff]  }
  0xb8   :  { %518 = vmatpush1.bf16.msra.mxu0 %v2241_v39  ;;  %825 = vmatpush1.bf16.msra.mxu1 %v2274_v2 }
  0xb9   :  { %519 = vmatprep.subr.bf16.mxu0 %v2242_v40  ;;  %826 = vmatprep.subr.bf16.mxu1 %v2279_v3 }
  0xbc   :  { %520 = vmatpush1.bf16.msra.mxu0 %v2244_v41  ;;  %827 = vmatpush1.bf16.msra.mxu1 %v2277_v4 }
  0xbd   :  { %521 = vmatprep.subr.bf16.mxu0 %v2245_v42  ;;  %828 = vmatprep.subr.bf16.mxu1 %v2282_v5 }
  0xc0   :  { %522 = vmatpush1.bf16.msra.mxu0 %v2247_v43  ;;  %829 = vmatpush1.bf16.msra.mxu1 %v2280_v6 }
  0xc1   :  { %523 = vmatprep.subr.bf16.mxu0 %v2248_v44  ;;  %830 = vmatprep.subr.bf16.mxu1 %v2285_v7 }
  0xc4   :  { %524 = vmatpush1.bf16.msra.mxu0 %v2250_v45  ;;  %831 = vmatpush1.bf16.msra.mxu1 %v2283_v8 }
  0xc5   :  { %525 = vmatprep.subr.bf16.mxu0 %v2251_v46  ;;  %832 = vmatprep.subr.bf16.mxu1 %v2288_v9 }
  0xc8   :  { %526 = vmatpush1.bf16.msra.mxu0 %v2253_v47  ;;  %833 = vmatpush1.bf16.msra.mxu1 %v2286_v10 }
  0xc9   :  { %527 = vmatprep.subr.bf16.mxu0 %v2254_v48  ;;  %834 = vmatprep.subr.bf16.mxu1 %v2291_v11 }
  0xcc   :  { %528 = vmatpush1.bf16.msra.mxu0 %v2256_v49  ;;  %835 = vmatpush1.bf16.msra.mxu1 %v2289_v12 }
  0xcd   :  { %529 = vmatprep.subr.bf16.mxu0 %v2257_v50  ;;  %836 = vmatprep.subr.bf16.mxu1 %v2294_v13 }
  0xd0   :  { %530 = vmatpush1.bf16.msra.mxu0 %v2259_v51  ;;  %837 = vmatpush1.bf16.msra.mxu1 %v2292_v14 }
  0xd1   :  { %531 = vmatprep.subr.bf16.mxu0 %v2260_v52  ;;  %838 = vmatprep.subr.bf16.mxu1 %v2297_v15 }
  0xd4   :  { %532 = vmatpush1.bf16.msra.mxu0 %v2262_v53  ;;  %839 = vmatpush1.bf16.msra.mxu1 %v2295_v16 }
  0xd5   :  { %2155 = vmatprep.subr.bf16.mxu0 %v2737_v55  ;;  %840 = vmatprep.subr.bf16.mxu1 %v2300_v17 }
  0xd7   :  { %534 = vmatmul.mubr.bf16.vlgmr.msra.gmra.mrb[0].mxu0 %v162_v29  ;;  %v2313_v29 = vld [vmem:[#allocation7 + $0xe0] ss:$8 sps:$4 sm:$0xff]  }
  0xd8   :  { %2156 = vmatpush3.bf16.msra.mxu0 %v2263_v54  ;;  %2171 = vmatprep.mubr.msk.bf16.mxu0 %vm2738_vm0, %v2737_v55 }
  0xd9   :  { %2157 = vmatprep.subr.bf16.mxu0 %v2737_v55  ;;  %841 = vmatpush1.bf16.msra.mxu1 %v2298_v18 }
  0xda   :  { %842 = vmatprep.subr.bf16.mxu1 %v2303_v20 }
  0xdc   :  { %2158 = vmatpush3.bf16.msra.mxu0 %v2264_v56 }
  0xdd   :  { %2159 = vmatprep.subr.bf16.mxu0 %v2737_v55  ;;  %843 = vmatpush1.bf16.msra.mxu1 %v2301_v19 }
  0xde   :  { %844 = vmatprep.subr.bf16.mxu1 %v2306_v21 }
  0xe0   :  { %2160 = vmatpush3.bf16.msra.mxu0 %v2265_v57  ;;  %v2324_v57 = vld [vmem:[#allocation10 + $0x14] ss:$8 sps:$4 sm:$0xff]  }
  0xe1   :  { %2161 = vmatprep.subr.bf16.mxu0 %v2737_v55  ;;  %845 = vmatpush1.bf16.msra.mxu1 %v2304_v22 }
  0xe2   :  { %846 = vmatprep.subr.bf16.mxu1 %v2309_v23 }
  0xe4   :  { %2162 = vmatpush3.bf16.msra.mxu0 %v2266_v58  ;;  %v2322_v58 = vld [vmem:[#allocation10 + $0x10] ss:$8 sps:$4 sm:$0xff]  }
  0xe5   :  { %2163 = vmatprep.subr.bf16.mxu0 %v2737_v55  ;;  %847 = vmatpush1.bf16.msra.mxu1 %v2307_v25 }
  0xe6   :  { %848 = vmatprep.subr.bf16.mxu1 %v2312_v26 }
  0xe8   :  { %2164 = vmatpush3.bf16.msra.mxu0 %v2267_v59  ;;  %v2954_v59 = vsub.s32 0, %v231_v33 }
  0xe9   :  { %2165 = vmatprep.subr.bf16.mxu0 %v2737_v55  ;;  %849 = vmatpush1.bf16.msra.mxu1 %v2310_v27 }
  0xea   :  { %850 = vmatprep.subr.bf16.mxu1 %v2315_v28 }
  0xec   :  { %2166 = vmatpush3.bf16.msra.mxu0 %v2268_v60  ;;  %v2956_v60 = vsub.s32 1, %v231_v33  ;;  %v2333_v33 = vld [vmem:[#allocation10 + $0x44] ss:$8 sps:$4 sm:$0xff]  }
  0xed   :  { %2167 = vmatprep.subr.bf16.mxu0 %v2737_v55  ;;  %851 = vmatpush1.bf16.msra.mxu1 %v2313_v29  ;;  %v2327_v29 = vld [vmem:[#allocation10 + $0x24] ss:$8 sps:$4 sm:$0xff]  }
  0xee   :  { %852 = vmatprep.subr.bf16.mxu1 %v2318_v30  ;;  %v2325_v30 = vld [vmem:[#allocation10 + $0x20] ss:$8 sps:$4 sm:$0xff]  }
  0xf0   :  { %2168 = vmatpush3.bf16.msra.mxu0 %v2269_v61  ;;  %v233_v61 = vrot.slane %v228_v35, %v2954_v59 }
  0xf1   :  { %2169 = vmatprep.subr.bf16.mxu0 %v2737_v55  ;;  %853 = vmatpush1.bf16.msra.mxu1 %v2316_v31  ;;  %v2319_v55 = vld [vmem:[#allocation10] ss:$8 sps:$4 sm:$0xff]   ;;  %v2330_v31 = vld [vmem:[#allocation10 + $0x34] ss:$8 sps:$4 sm:$0xff]  }
  0xf4   :  { %2170 = vmatpush3.bf16.msra.mxu0 %v2270_v62  ;;  %v237_v62 = vrot.slane %v228_v35, %v2956_v60  ;;  %v2336_v35 = vld [vmem:[#allocation10 + $0x54] ss:$8 sps:$4 sm:$0xff]  }
  0xf5   :  { %1130 = vmatprep.subr.bf16.mxu0 %v2321_v24 }
 0x186   :  { %v2140_v36 = vpop.f32.mrb[0].mxu1 }
 0x187   :  { %v2141_v38 = vpop.f32.mrb[1].mxu1 }
 0x188   :  { %v2142_v39 = vadd.f32 %v2141_v38, %v2140_v36  ;;  %v2143_v40 = vpop.f32.mrb[2].mxu1  ;;  %v2334_v36 = vld [vmem:[#allocation10 + $0x50] ss:$8 sps:$4 sm:$0xff]   ;;  %v2337_v38 = vld [vmem:[#allocation10 + $0x60] ss:$8 sps:$4 sm:$0xff]  }
 0x189   :  { %v2144_v41 = vpop.f32.mrb[3].mxu1 }
 0x18a   :  { %v579_v42 = vadd.f32 %v2142_v39, %v241_v37  ;;  %v2145_v43 = vadd.f32 %v2144_v41, %v2143_v40  ;;  %v2342_v39 = vld [vmem:[#allocation10 + $0x74] ss:$8 sps:$4 sm:$0xff]   ;;  %v2340_v40 = vld [vmem:[#allocation10 + $0x70] ss:$8 sps:$4 sm:$0xff]   ;;  %v2739_v41 = vmov 0  }
 0x18c   :  { %v609_v44 = vmul.f32 0.70710677, %v579_v42  ;;  %v582_v45 = vadd.f32 %v2145_v43, %v241_v37  ;;  %v607_v50 = vmul.f32 0.5, %v579_v42  ;;  %v2339_v37 = vld [vmem:[#allocation10 + $0x64] ss:$8 sps:$4 sm:$0xff]  }
 0x18d   :  { %v2343_v42 = vld [vmem:[#allocation13] ss:$8 sps:$4 sm:$0xff]   ;;  %v2345_v43 = vld [vmem:[#allocation13 + $0x4] ss:$8 sps:$4 sm:$0xff]  }
 0x18e   :  { %2487 = verf.f32 %v609_v44  ;;  %v610_v46 = vmul.f32 0.70710677, %v582_v45  ;;  %v608_v51 = vmul.f32 0.5, %v582_v45  ;;  %v2348_v44 = vld [vmem:[#allocation13 + $0x14] ss:$8 sps:$4 sm:$0xff]   ;;  %1367 = vmatprep.subr.bf16.mxu1 %v2345_v43 }
 0x18f   :  { %v2346_v45 = vld [vmem:[#allocation13 + $0x10] ss:$8 sps:$4 sm:$0xff]   ;;  %v2393_v43 = vld [vmem:[#allocation11 + $0x4] ss:$8 sps:$4 sm:$0xff]  }
 0x190   :  { %2489 = verf.f32 %v610_v46  ;;  %v2349_v46 = vld [vmem:[#allocation13 + $0x20] ss:$8 sps:$4 sm:$0xff]  }
 0x198   :  { %v2488_v47 = vpop.eup %2487 }
 0x199   :  { %v613_v48 = vadd.f32 1.0, %v2488_v47  ;;  %v2351_v47 = vld [vmem:[#allocation13 + $0x24] ss:$8 sps:$4 sm:$0xff]  }
 0x19a   :  { %v2490_v49 = vpop.eup %2489 }
 0x19b   :  { %v614_v52 = vadd.f32 1.0, %v2490_v49  ;;  %v615_v53 = vmul.f32 %v613_v48, %v607_v50  ;;  %v2352_v48 = vld [vmem:[#allocation13 + $0x30] ss:$8 sps:$4 sm:$0xff]   ;;  %v2354_v49 = vld [vmem:[#allocation13 + $0x34] ss:$8 sps:$4 sm:$0xff]  }
 0x19c   :  { %v2357_v50 = vld [vmem:[#allocation13 + $0x44] ss:$8 sps:$4 sm:$0xff]  }
 0x19d   :  { %v616_v54 = vmul.f32 %v614_v52, %v608_v51  ;;  %v2355_v51 = vld [vmem:[#allocation13 + $0x40] ss:$8 sps:$4 sm:$0xff]   ;;  %v2360_v52 = vld [vmem:[#allocation13 + $0x54] ss:$8 sps:$4 sm:$0xff]  }
 0x19f   :  { %v617_v56 = vpack.c.bf16 %v616_v54, %v615_v53  ;;  %v2358_v53 = vld [vmem:[#allocation13 + $0x50] ss:$8 sps:$4 sm:$0xff]   ;;  %v2363_v54 = vld [vmem:[#allocation13 + $0x64] ss:$8 sps:$4 sm:$0xff]  }
 0x1a1   :  { %2172 = vmatmul.mubr.bf16.vlgmr.msra.gmra.mrb[4].mxu0 %v617_v56  ;;  %v2366_v56 = vld [vmem:[#allocation13 + $0x74] ss:$8 sps:$4 sm:$0xff]  }
 0x1a2   :  { %1131 = vmatpush1.bf16.msra.mxu0 %v2319_v55  ;;  %1162 = vmatprep.mubr.bf16.mxu0 %v2739_v41  ;;  %v2361_v55 = vld [vmem:[#allocation13 + $0x60] ss:$8 sps:$4 sm:$0xff]   ;;  %v2390_v41 = vld [vmem:[#allocation13 + $0xf4] ss:$8 sps:$4 sm:$0xff]  }
 0x1a3   :  { %1132 = vmatprep.subr.bf16.mxu0 %v2324_v57  ;;  %v2364_v57 = vld [vmem:[#allocation13 + $0x70] ss:$8 sps:$4 sm:$0xff]  }
 0x1a6   :  { %1133 = vmatpush1.bf16.msra.mxu0 %v2322_v58  ;;  %v2369_v58 = vld [vmem:[#allocation13 + $0x84] ss:$8 sps:$4 sm:$0xff]  }
 0x1a7   :  { %1134 = vmatprep.subr.bf16.mxu0 %v2327_v29 }
 0x1aa   :  { %v535_v63 = vpop.f32.mrb[0].mxu0  ;;  %1135 = vmatpush1.bf16.msra.mxu0 %v2325_v30 }
 0x1ab   :  { %v536_v0 = vadd.f32 %v535_v63, %v233_v61  ;;  %v537_v1 = vpop.f32.mrb[1].mxu0  ;;  %1136 = vmatprep.subr.bf16.mxu0 %v2330_v31  ;;  %v2370_v63 = vld [vmem:[#allocation13 + $0x90] ss:$8 sps:$4 sm:$0xff]  }
 0x1ac   :  { %v538_v2 = vadd.f32 %v537_v1, %v237_v62  ;;  %v539_v3 = vpop.f32.mrb[2].mxu0  ;;  %v2373_v1 = vld [vmem:[#allocation13 + $0xa0] ss:$8 sps:$4 sm:$0xff]  }
 0x1ad   :  { %v589_v4 = vmul.f32 0.70710677, %v536_v0  ;;  %v540_v5 = vadd.f32 %v539_v3, %v233_v61  ;;  %v541_v6 = vpop.f32.mrb[3].mxu0  ;;  %v585_v11 = vmul.f32 0.5, %v536_v0  ;;  %v2367_v61 = vld [vmem:[#allocation13 + $0x80] ss:$8 sps:$4 sm:$0xff]  }
 0x1ae   :  { %v590_v7 = vmul.f32 0.70710677, %v538_v2  ;;  %v542_v8 = vadd.f32 %v541_v6, %v237_v62  ;;  %v586_v13 = vmul.f32 0.5, %v538_v2  ;;  %1137 = vmatpush1.bf16.msra.mxu0 %v2328_v32  ;;  %v2372_v62 = vld [vmem:[#allocation13 + $0x94] ss:$8 sps:$4 sm:$0xff]  }
 0x1af   :  { %2491 = verf.f32 %v589_v4  ;;  %v591_v9 = vmul.f32 0.70710677, %v540_v5  ;;  %v587_v16 = vmul.f32 0.5, %v540_v5  ;;  %1138 = vmatprep.subr.bf16.mxu0 %v2333_v33  ;;  %v2375_v0 = vld [vmem:[#allocation13 + $0xa4] ss:$8 sps:$4 sm:$0xff]  }
 0x1b0   :  { %2493 = verf.f32 %v590_v7  ;;  %v592_v10 = vmul.f32 0.70710677, %v542_v8  ;;  %v588_v19 = vmul.f32 0.5, %v542_v8  ;;  %v2378_v2 = vld [vmem:[#allocation13 + $0xb4] ss:$8 sps:$4 sm:$0xff]  }
 0x1b1   :  { %2495 = verf.f32 %v591_v9  ;;  %v2376_v3 = vld [vmem:[#allocation13 + $0xb0] ss:$8 sps:$4 sm:$0xff]   ;;  %v2381_v4 = vld [vmem:[#allocation13 + $0xc4] ss:$8 sps:$4 sm:$0xff]   ;;  %v2379_v5 = vld [vmem:[#allocation13 + $0xc0] ss:$8 sps:$4 sm:$0xff]  }
 0x1b2   :  { %2497 = verf.f32 %v592_v10  ;;  %1139 = vmatpush1.bf16.msra.mxu0 %v2331_v34  ;;  %v2384_v6 = vld [vmem:[#allocation13 + $0xd4] ss:$8 sps:$4 sm:$0xff]   ;;  %v2382_v7 = vld [vmem:[#allocation13 + $0xd0] ss:$8 sps:$4 sm:$0xff]   ;;  %v2003_v8 = vld [vmem:[%s3022_s6] ss:$0 sm:$0xff] }
 0x1b3   :  { %1140 = vmatprep.subr.bf16.mxu0 %v2336_v35 }
 0x1b6   :  { %1141 = vmatpush1.bf16.msra.mxu0 %v2334_v36 }
 0x1b7   :  { %1142 = vmatprep.subr.bf16.mxu0 %v2339_v37 }
 0x1b9   :  { %v2492_v12 = vpop.eup %2491 }
 0x1ba   :  { %v2494_v14 = vpop.eup %2493  ;;  %v597_v15 = vadd.f32 1.0, %v2492_v12  ;;  %1143 = vmatpush1.bf16.msra.mxu0 %v2337_v38 }
 0x1bb   :  { %v2496_v17 = vpop.eup %2495  ;;  %v598_v18 = vadd.f32 1.0, %v2494_v14  ;;  %1144 = vmatprep.subr.bf16.mxu0 %v2342_v39  ;;  %v2387_v39 = vld [vmem:[#allocation13 + $0xe4] ss:$8 sps:$4 sm:$0xff]  }
 0x1bc   :  { %v2498_v20 = vpop.eup %2497  ;;  %v601_v21 = vmul.f32 %v597_v15, %v585_v11  ;;  %v599_v22 = vadd.f32 1.0, %v2496_v17 }
 0x1bd   :  { %v602_v23 = vmul.f32 %v598_v18, %v586_v13  ;;  %v600_v24 = vadd.f32 1.0, %v2498_v20 }
 0x1be   :  { %v603_v25 = vmul.f32 %v599_v22, %v587_v16  ;;  %1145 = vmatpush1.bf16.msra.mxu0 %v2340_v40  ;;  %v2385_v40 = vld [vmem:[#allocation13 + $0xe0] ss:$8 sps:$4 sm:$0xff]  }
 0x1bf   :  { %v604_v26 = vmul.f32 %v600_v24, %v588_v19 }
 0x1c0   :  { %v605_v27 = vpack.c.bf16 %v603_v25, %v601_v21 }
 0x1c1   :  { %v606_v28 = vpack.c.bf16 %v604_v26, %v602_v23  ;;  %v650_v26 = vld [vmem:[%s3020_s4] sm:$0x3] }
 0x1c3   :  { %854 = vmatprep.mubr.bf16.mxu1 %v606_v28  ;;  %v659_v28 = vrot.slane %v650_v26, %v2956_v60 }
 0x1c4   :  { %855 = vmatmul.mubr.bf16.vlgmr.msra.gmra.mrb[4].mxu1 %v605_v27  ;;  %v655_v27 = vrot.slane %v650_v26, %v2954_v59  ;;  %v2411_v26 = vld [vmem:[#allocation11 + $0x64] ss:$8 sps:$4 sm:$0xff]  }
 0x1c5   :  { %1368 = vmatpush1.bf16.msra.mxu1 %v2343_v42  ;;  %v2388_v42 = vld [vmem:[#allocation13 + $0xf0] ss:$8 sps:$4 sm:$0xff]  }
 0x1c6   :  { %1369 = vmatprep.subr.bf16.mxu1 %v2348_v44  ;;  %v2439_v44 = vld [vmem:[#allocation14] ss:$8 sps:$4 sm:$0xff]  }
 0x1c9   :  { %1370 = vmatpush1.bf16.msra.mxu1 %v2346_v45  ;;  %v2441_v45 = vld [vmem:[#allocation14 + $0x4] ss:$8 sps:$4 sm:$0xff]  }
 0x1ca   :  { %1371 = vmatprep.subr.bf16.mxu1 %v2351_v47  ;;  %1855 = vmatprep.subr.bf16.mxu0 %v2441_v45  ;;  %v2442_v47 = vld [vmem:[#allocation14 + $0x10] ss:$8 sps:$4 sm:$0xff]   ;;  %v2435_v45 = vld [vmem:[#allocation11 + $0xe4] ss:$8 sps:$4 sm:$0xff]  }
 0x1cd   :  { %1372 = vmatpush1.bf16.msra.mxu1 %v2349_v46  ;;  %v2444_v46 = vld [vmem:[#allocation14 + $0x14] ss:$8 sps:$4 sm:$0xff]  }
 0x1ce   :  { %1373 = vmatprep.subr.bf16.mxu1 %v2354_v49  ;;  %v2445_v49 = vld [vmem:[#allocation14 + $0x20] ss:$8 sps:$4 sm:$0xff]  }
 0x1d1   :  { %1374 = vmatpush1.bf16.msra.mxu1 %v2352_v48  ;;  %v2447_v48 = vld [vmem:[#allocation14 + $0x24] ss:$8 sps:$4 sm:$0xff]  }
 0x1d2   :  { %1375 = vmatprep.subr.bf16.mxu1 %v2357_v50  ;;  %v2450_v50 = vld [vmem:[#allocation14 + $0x34] ss:$8 sps:$4 sm:$0xff]  }
 0x1d5   :  { %1376 = vmatpush1.bf16.msra.mxu1 %v2355_v51  ;;  %v2448_v51 = vld [vmem:[#allocation14 + $0x30] ss:$8 sps:$4 sm:$0xff]  }
 0x1d6   :  { %1377 = vmatprep.subr.bf16.mxu1 %v2360_v52  ;;  %v2453_v52 = vld [vmem:[#allocation14 + $0x44] ss:$8 sps:$4 sm:$0xff]  }
 0x1d9   :  { %1378 = vmatpush1.bf16.msra.mxu1 %v2358_v53  ;;  %v2451_v53 = vld [vmem:[#allocation14 + $0x40] ss:$8 sps:$4 sm:$0xff]  }
 0x1da   :  { %1379 = vmatprep.subr.bf16.mxu1 %v2363_v54  ;;  %v2456_v54 = vld [vmem:[#allocation14 + $0x54] ss:$8 sps:$4 sm:$0xff]  }
 0x1dd   :  { %1380 = vmatpush1.bf16.msra.mxu1 %v2361_v55  ;;  %v2454_v55 = vld [vmem:[#allocation14 + $0x50] ss:$8 sps:$4 sm:$0xff]  }
 0x1de   :  { %1381 = vmatprep.subr.bf16.mxu1 %v2366_v56  ;;  %v2459_v56 = vld [vmem:[#allocation14 + $0x64] ss:$8 sps:$4 sm:$0xff]  }
 0x1e1   :  { %1382 = vmatpush1.bf16.msra.mxu1 %v2364_v57  ;;  %v2457_v57 = vld [vmem:[#allocation14 + $0x60] ss:$8 sps:$4 sm:$0xff]  }
 0x1e2   :  { %1383 = vmatprep.subr.bf16.mxu1 %v2369_v58  ;;  %v2462_v58 = vld [vmem:[#allocation14 + $0x74] ss:$8 sps:$4 sm:$0xff]  }
 0x1e5   :  { %1384 = vmatpush1.bf16.msra.mxu1 %v2367_v61  ;;  %v2460_v61 = vld [vmem:[#allocation14 + $0x70] ss:$8 sps:$4 sm:$0xff]  }
 0x1e6   :  { %1385 = vmatprep.subr.bf16.mxu1 %v2372_v62  ;;  %v2465_v62 = vld [vmem:[#allocation14 + $0x84] ss:$8 sps:$4 sm:$0xff]  }
 0x1e9   :  { %1386 = vmatpush1.bf16.msra.mxu1 %v2370_v63  ;;  %v2463_v63 = vld [vmem:[#allocation14 + $0x80] ss:$8 sps:$4 sm:$0xff]  }
 0x1ea   :  { %1387 = vmatprep.subr.bf16.mxu1 %v2375_v0  ;;  %v2468_v0 = vld [vmem:[#allocation14 + $0x94] ss:$8 sps:$4 sm:$0xff]  }
 0x1ed   :  { %1388 = vmatpush1.bf16.msra.mxu1 %v2373_v1  ;;  %v2466_v1 = vld [vmem:[#allocation14 + $0x90] ss:$8 sps:$4 sm:$0xff]  }
 0x1ee   :  { %1389 = vmatprep.subr.bf16.mxu1 %v2378_v2  ;;  %v1038_v2 = vld [vmem:[%s3024_s8] sm:$0x3] }
 0x1f1   :  { %1390 = vmatpush1.bf16.msra.mxu1 %v2376_v3  ;;  %v1043_v3 = vrot.slane %v1038_v2, %v2954_v59 }
 0x1f2   :  { %1391 = vmatprep.subr.bf16.mxu1 %v2381_v4 }
 0x1f5   :  { %1392 = vmatpush1.bf16.msra.mxu1 %v2379_v5  ;;  %v1047_v5 = vrot.slane %v1038_v2, %v2956_v60 }
 0x1f6   :  { %1393 = vmatprep.subr.bf16.mxu1 %v2384_v6 }
 0x1f9   :  { %1394 = vmatpush1.bf16.msra.mxu1 %v2382_v7 }
 0x1fa   :  { %1395 = vmatprep.subr.bf16.mxu1 %v2387_v39  ;;  %v2426_v39 = vld [vmem:[#allocation11 + $0xb4] ss:$8 sps:$4 sm:$0xff]  }
 0x1fd   :  { %1396 = vmatpush1.bf16.msra.mxu1 %v2385_v40  ;;  %v2424_v40 = vld [vmem:[#allocation11 + $0xb0] ss:$8 sps:$4 sm:$0xff]  }
 0x1fe   :  { %1397 = vmatprep.subr.bf16.mxu1 %v2390_v41  ;;  %v2429_v41 = vld [vmem:[#allocation11 + $0xc4] ss:$8 sps:$4 sm:$0xff]  }
 0x201   :  { %1398 = vmatpush1.bf16.msra.mxu1 %v2388_v42  ;;  %v2427_v42 = vld [vmem:[#allocation11 + $0xc0] ss:$8 sps:$4 sm:$0xff]  }
 0x202   :  { %1570 = vmatprep.subr.bf16.mxu1 %v2393_v43  ;;  %v2432_v43 = vld [vmem:[#allocation11 + $0xd4] ss:$8 sps:$4 sm:$0xff]  }
 0x274   :  { %v1004_v9 = vpop.f32.mrb[4].mxu0 }
 0x275   :  { %v1005_v10 = vadd.f32 %v2003_v8, %v1004_v9  ;;  %v2173_v11 = vpop.f32.mrb[5].mxu0 }
 0x276   :  { %v1007_v12 = vpop.f32.mrb[6].mxu0 }
 0x277   :  { %v1013_v13 = vmul.f32 0.70710677, %v1005_v10  ;;  %v1008_v14 = vadd.f32 %v2003_v8, %v1007_v12  ;;  %v2174_v15 = vpop.f32.mrb[7].mxu0  ;;  %v1011_v20 = vmul.f32 0.5, %v1005_v10 }
 0x278   :  { %v2391_v15 = vld [vmem:[#allocation11] ss:$8 sps:$4 sm:$0xff]  }
 0x279   :  { %2499 = verf.f32 %v1013_v13  ;;  %v1014_v16 = vmul.f32 0.70710677, %v1008_v14  ;;  %v1012_v21 = vmul.f32 0.5, %v1008_v14 }
 0x27b   :  { %2501 = verf.f32 %v1014_v16  ;;  %v2396_v16 = vld [vmem:[#allocation11 + $0x14] ss:$8 sps:$4 sm:$0xff]  }
 0x283   :  { %v2500_v17 = vpop.eup %2499 }
 0x284   :  { %v1017_v18 = vadd.f32 1.0, %v2500_v17  ;;  %v2394_v17 = vld [vmem:[#allocation11 + $0x10] ss:$8 sps:$4 sm:$0xff]  }
 0x285   :  { %v2502_v19 = vpop.eup %2501 }
 0x286   :  { %v1018_v22 = vadd.f32 1.0, %v2502_v19  ;;  %v1019_v23 = vmul.f32 %v1017_v18, %v1011_v20  ;;  %v2399_v18 = vld [vmem:[#allocation11 + $0x24] ss:$8 sps:$4 sm:$0xff]   ;;  %v2397_v19 = vld [vmem:[#allocation11 + $0x20] ss:$8 sps:$4 sm:$0xff]  }
 0x287   :  { %v2402_v20 = vld [vmem:[#allocation11 + $0x34] ss:$8 sps:$4 sm:$0xff]  }
 0x288   :  { %v1020_v24 = vmul.f32 %v1018_v22, %v1012_v21  ;;  %v2400_v21 = vld [vmem:[#allocation11 + $0x30] ss:$8 sps:$4 sm:$0xff]   ;;  %v2405_v22 = vld [vmem:[#allocation11 + $0x44] ss:$8 sps:$4 sm:$0xff]  }
 0x28a   :  { %v1021_v25 = vpack.c.bf16 %v1020_v24, %v1019_v23  ;;  %v2403_v23 = vld [vmem:[#allocation11 + $0x40] ss:$8 sps:$4 sm:$0xff]   ;;  %v2408_v24 = vld [vmem:[#allocation11 + $0x54] ss:$8 sps:$4 sm:$0xff]  }
 0x28c   :  { %1163 = vmatmul.mubr.bf16.vlgmr.msra.gmra.mrb[8].mxu0 %v1021_v25  ;;  %v2406_v25 = vld [vmem:[#allocation11 + $0x50] ss:$8 sps:$4 sm:$0xff]  }
 0x28d   :  { %1856 = vmatpush1.bf16.msra.mxu0 %v2439_v44  ;;  %v2430_v44 = vld [vmem:[#allocation11 + $0xd0] ss:$8 sps:$4 sm:$0xff]  }
 0x28e   :  { %1857 = vmatprep.subr.bf16.mxu0 %v2444_v46  ;;  %v2433_v46 = vld [vmem:[#allocation11 + $0xe0] ss:$8 sps:$4 sm:$0xff]  }
 0x291   :  { %1858 = vmatpush1.bf16.msra.mxu0 %v2442_v47  ;;  %v2438_v47 = vld [vmem:[#allocation11 + $0xf4] ss:$8 sps:$4 sm:$0xff]  }
 0x292   :  { %1859 = vmatprep.subr.bf16.mxu0 %v2447_v48  ;;  %v2436_v48 = vld [vmem:[#allocation11 + $0xf0] ss:$8 sps:$4 sm:$0xff]  }
 0x295   :  { %1860 = vmatpush1.bf16.msra.mxu0 %v2445_v49  ;;  %v2471_v49 = vld [vmem:[#allocation14 + $0xa4] ss:$8 sps:$4 sm:$0xff]  }
 0x296   :  { %1861 = vmatprep.subr.bf16.mxu0 %v2450_v50  ;;  %v2469_v50 = vld [vmem:[#allocation14 + $0xa0] ss:$8 sps:$4 sm:$0xff]  }
 0x297   :  { %v856_v29 = vpop.f32.mrb[4].mxu1 }
 0x298   :  { %v2968_v30 = vadd.f32 %v856_v29, %v655_v27  ;;  %v858_v31 = vpop.f32.mrb[5].mxu1  ;;  %v2412_v29 = vld [vmem:[#allocation11 + $0x70] ss:$8 sps:$4 sm:$0xff]  }
 0x299   :  { %v2970_v32 = vadd.f32 %v858_v31, %v659_v28  ;;  %v860_v33 = vpop.f32.mrb[6].mxu1  ;;  %1862 = vmatpush1.bf16.msra.mxu0 %v2448_v51  ;;  %v2417_v31 = vld [vmem:[#allocation11 + $0x84] ss:$8 sps:$4 sm:$0xff]   ;;  %v2474_v51 = vld [vmem:[#allocation14 + $0xb4] ss:$8 sps:$4 sm:$0xff]  }
 0x29a   :  { %v2972_v34 = vadd.f32 %v860_v33, %v655_v27  ;;  %v862_v35 = vpop.f32.mrb[7].mxu1  ;;  %1863 = vmatprep.subr.bf16.mxu0 %v2453_v52  ;;  %v2409_v27 = vld [vmem:[#allocation11 + $0x60] ss:$8 sps:$4 sm:$0xff]   ;;  %v2420_v33 = vld [vmem:[#allocation11 + $0x94] ss:$8 sps:$4 sm:$0xff]  }
 0x29b   :  { %v2974_v36 = vadd.f32 %v862_v35, %v659_v28  ;;  %v2414_v28 = vld [vmem:[#allocation11 + $0x74] ss:$8 sps:$4 sm:$0xff]   ;;  %v2418_v35 = vld [vmem:[#allocation11 + $0x90] ss:$8 sps:$4 sm:$0xff]  }
 0x29c   :  { %v865_v37 = vpack.c.bf16 %v2972_v34, %v2968_v30  ;;  %v2472_v52 = vld [vmem:[#allocation14 + $0xb0] ss:$8 sps:$4 sm:$0xff]   ;;  %v2486_v30 = vld [vmem:[#allocation14 + $0xf4] ss:$8 sps:$4 sm:$0xff]  }
 0x29d   :  { %v866_v38 = vpack.c.bf16 %v2974_v36, %v2970_v32  ;;  %1864 = vmatpush1.bf16.msra.mxu0 %v2451_v53  ;;  %v2415_v32 = vld [vmem:[#allocation11 + $0x80] ss:$8 sps:$4 sm:$0xff]   ;;  %v2423_v36 = vld [vmem:[#allocation11 + $0xa4] ss:$8 sps:$4 sm:$0xff]   ;;  %v2484_v34 = vld [vmem:[#allocation14 + $0xf0] ss:$8 sps:$4 sm:$0xff]  }
 0x29e   :  { %1865 = vmatprep.subr.bf16.mxu0 %v2456_v54  ;;  %v2477_v53 = vld [vmem:[#allocation14 + $0xc4] ss:$8 sps:$4 sm:$0xff]   ;;  %v2475_v54 = vld [vmem:[#allocation14 + $0xc0] ss:$8 sps:$4 sm:$0xff]  }
 0x2a1   :  { %1866 = vmatpush1.bf16.msra.mxu0 %v2454_v55  ;;  %v2480_v55 = vld [vmem:[#allocation14 + $0xd4] ss:$8 sps:$4 sm:$0xff]  }
 0x2a2   :  { %1867 = vmatprep.subr.bf16.mxu0 %v2459_v56  ;;  %v2478_v56 = vld [vmem:[#allocation14 + $0xd0] ss:$8 sps:$4 sm:$0xff]  }
 0x2a5   :  { %1868 = vmatpush1.bf16.msra.mxu0 %v2457_v57  ;;  %v2483_v57 = vld [vmem:[#allocation14 + $0xe4] ss:$8 sps:$4 sm:$0xff]  }
 0x2a6   :  { %1869 = vmatprep.subr.bf16.mxu0 %v2462_v58  ;;  %v2481_v58 = vld [vmem:[#allocation14 + $0xe0] ss:$8 sps:$4 sm:$0xff]  }
 0x2a9   :  { %1870 = vmatpush1.bf16.msra.mxu0 %v2460_v61 }
 0x2aa   :  { %1871 = vmatprep.subr.bf16.mxu0 %v2465_v62 }
 0x2ad   :  { %1872 = vmatpush1.bf16.msra.mxu0 %v2463_v63 }
 0x2ae   :  { %1873 = vmatprep.subr.bf16.mxu0 %v2468_v0 }
 0x2b1   :  { %1874 = vmatpush1.bf16.msra.mxu0 %v2466_v1 }
 0x2b2   :  { %1875 = vmatprep.subr.bf16.mxu0 %v2471_v49 }
 0x2b5   :  { %1876 = vmatpush1.bf16.msra.mxu0 %v2469_v50 }
 0x2b6   :  { %1877 = vmatprep.subr.bf16.mxu0 %v2474_v51 }
 0x2b9   :  { %1878 = vmatpush1.bf16.msra.mxu0 %v2472_v52 }
 0x2ba   :  { %1879 = vmatprep.subr.bf16.mxu0 %v2477_v53 }
 0x2bd   :  { %1880 = vmatpush1.bf16.msra.mxu0 %v2475_v54 }
 0x2be   :  { %1881 = vmatprep.subr.bf16.mxu0 %v2480_v55 }
 0x2c1   :  { %1882 = vmatpush1.bf16.msra.mxu0 %v2478_v56 }
 0x2c2   :  { %1883 = vmatprep.subr.bf16.mxu0 %v2483_v57 }
 0x2c5   :  { %1884 = vmatpush1.bf16.msra.mxu0 %v2481_v58 }
 0x2c6   :  { %1885 = vmatprep.subr.bf16.mxu0 %v2486_v30 }
 0x2c9   :  { %1886 = vmatpush1.bf16.msra.mxu0 %v2484_v34 }
 0x35f   :  { %v1164_v4 = vpop.f32.mrb[8].mxu0 }
 0x360   :  { %v1166_v6 = vpop.f32.mrb[9].mxu0  ;;  %v1165_v8 = vadd.f32 %v1164_v4, %v1043_v3 }
 0x361   :  { %v1168_v7 = vpop.f32.mrb[10].mxu0  ;;  %v1167_v11 = vadd.f32 %v1166_v6, %v1047_v5 }
 0x362   :  { %v1169_v9 = vadd.f32 %v1168_v7, %v1043_v3  ;;  %v1170_v10 = vpop.f32.mrb[11].mxu0 }
 0x363   :  { %v1171_v12 = vadd.f32 %v1170_v10, %v1047_v5 }
 0x364   :  { %v1173_v13 = vpack.c.bf16 %v1169_v9, %v1165_v8 }
 0x365   :  { %v1174_v14 = vpack.c.bf16 %v1171_v12, %v1167_v11 }
 0x367   :  { %1399 = vmatprep.mubr.bf16.mxu1 %v1174_v14 }
 0x368   :  { %1400 = vmatmul.mubr.bf16.vlgmr.msra.gmra.mrb[8].mxu1 %v1173_v13 }
 0x369   :  { %1571 = vmatpush1.bf16.msra.mxu1 %v2391_v15  ;;  %1602 = vmatprep.mubr.bf16.mxu1 %v866_v38  ;;  %v2421_v38 = vld [vmem:[#allocation11 + $0xa0] ss:$8 sps:$4 sm:$0xff]  }
 0x36a   :  { %1572 = vmatprep.subr.bf16.mxu1 %v2396_v16 }
 0x36d   :  { %1573 = vmatpush1.bf16.msra.mxu1 %v2394_v17 }
 0x36e   :  { %1574 = vmatprep.subr.bf16.mxu1 %v2399_v18 }
 0x371   :  { %1575 = vmatpush1.bf16.msra.mxu1 %v2397_v19 }
 0x372   :  { %1576 = vmatprep.subr.bf16.mxu1 %v2402_v20 }
 0x375   :  { %1577 = vmatpush1.bf16.msra.mxu1 %v2400_v21 }
 0x376   :  { %1578 = vmatprep.subr.bf16.mxu1 %v2405_v22 }
 0x379   :  { %1579 = vmatpush1.bf16.msra.mxu1 %v2403_v23 }
 0x37a   :  { %1580 = vmatprep.subr.bf16.mxu1 %v2408_v24 }
 0x37d   :  { %1581 = vmatpush1.bf16.msra.mxu1 %v2406_v25 }
 0x37e   :  { %1582 = vmatprep.subr.bf16.mxu1 %v2411_v26 }
 0x381   :  { %1583 = vmatpush1.bf16.msra.mxu1 %v2409_v27 }
 0x382   :  { %1584 = vmatprep.subr.bf16.mxu1 %v2414_v28 }
 0x385   :  { %1585 = vmatpush1.bf16.msra.mxu1 %v2412_v29  ;;  %v1683_v29 = vld [vmem:[%s3029_s13] sm:$0x3]  ;;  %s2687_s13 = scalar_lea.vmem %s1908_s22, 512 }
 0x386   :  { %1586 = vmatprep.subr.bf16.mxu1 %v2417_v31  ;;  %v1688_v31 = vrot.slane %v1683_v29, %v2954_v59  ;;  %p2688_p8 = scmp.ne.s32.totalorder %s1908_s22, %s2687_s13  ;;  %p2693_p10 = scmp.lt.s32.totalorder %s2687_s13, %s2687_s13 }
 0x388   :  { %p2694_p11 = por %p2693_p10, %p2692_p9 }
 0x389   :  { %1587 = vmatpush1.bf16.msra.mxu1 %v2415_v32  ;;  %v1692_v32 = vrot.slane %v1683_v29, %v2956_v60 }
 0x38a   :  { %1588 = vmatprep.subr.bf16.mxu1 %v2420_v33  ;;  %p2695_p12 = pnand %p2694_p11, %p2688_p8 }
 0x38d   :  { %1589 = vmatpush1.bf16.msra.mxu1 %v2418_v35 }
 0x38e   :  { %1590 = vmatprep.subr.bf16.mxu1 %v2423_v36 }
 0x391   :  { %1591 = vmatpush1.bf16.msra.mxu1 %v2421_v38 }
 0x392   :  { %1592 = vmatprep.subr.bf16.mxu1 %v2426_v39 }
 0x395   :  { %1593 = vmatpush1.bf16.msra.mxu1 %v2424_v40 }
 0x396   :  { %1594 = vmatprep.subr.bf16.mxu1 %v2429_v41 }
 0x399   :  { %1595 = vmatpush1.bf16.msra.mxu1 %v2427_v42 }
 0x39a   :  { %1596 = vmatprep.subr.bf16.mxu1 %v2432_v43 }
 0x39d   :  { %1597 = vmatpush1.bf16.msra.mxu1 %v2430_v44 }
 0x39e   :  { %1598 = vmatprep.subr.bf16.mxu1 %v2435_v45 }
 0x3a1   :  { %1599 = vmatpush1.bf16.msra.mxu1 %v2433_v46 }
 0x3a2   :  { %1600 = vmatprep.subr.bf16.mxu1 %v2438_v47 }
 0x3a5   :  { %1601 = vmatpush1.bf16.msra.mxu1 %v2436_v48 }
 0x3a8   :  { %1603 = vmatmul.mubr.bf16.vlgmr.msra.gmra.mrb[8].mxu1 %v865_v37  ;;  %v1613_v37 = vld [vmem:[%s3027_s11] sm:$0x3] }
 0x3a9   :  { %v1618_v61 = vrot.slane %v1613_v37, %v2954_v59  ;;  %v1622_v62 = vrot.slane %v1613_v37, %v2956_v60 }
 0x47b   :  { %v1604_v63 = vpop.f32.mrb[8].mxu1 }
 0x47c   :  { %v1625_v0 = vadd.f32 %v1618_v61, %v1604_v63  ;;  %v1606_v1 = vpop.f32.mrb[9].mxu1 }
 0x47d   :  { %v1626_v2 = vadd.f32 %v1622_v62, %v1606_v1  ;;  %v1608_v3 = vpop.f32.mrb[10].mxu1 }
 0x47e   :  { %v1633_v4 = vmul.f32 0.70710677, %v1625_v0  ;;  %v1627_v5 = vadd.f32 %v1618_v61, %v1608_v3  ;;  %v1610_v6 = vpop.f32.mrb[11].mxu1  ;;  %v1629_v17 = vmul.f32 0.5, %v1625_v0 }
 0x47f   :  { %v1634_v7 = vmul.f32 0.70710677, %v1626_v2  ;;  %v1628_v8 = vadd.f32 %v1622_v62, %v1610_v6  ;;  %v1630_v20 = vmul.f32 0.5, %v1626_v2 }
 0x480   :  { %2503 = verf.f32 %v1633_v4  ;;  %v1635_v9 = vmul.f32 0.70710677, %v1627_v5  ;;  %v1631_v18 = vmul.f32 0.5, %v1627_v5 }
 0x481   :  { %2505 = verf.f32 %v1634_v7  ;;  %v1636_v10 = vmul.f32 0.70710677, %v1628_v8  ;;  %v1632_v21 = vmul.f32 0.5, %v1628_v8 }
 0x482   :  { %2507 = verf.f32 %v1635_v9 }
 0x483   :  { %2509 = verf.f32 %v1636_v10 }
 0x48a   :  { %v2504_v11 = vpop.eup %2503 }
 0x48b   :  { %v2506_v12 = vpop.eup %2505  ;;  %v1641_v13 = vadd.f32 1.0, %v2504_v11 }
 0x48c   :  { %v2508_v14 = vpop.eup %2507  ;;  %v1642_v15 = vadd.f32 1.0, %v2506_v12 }
 0x48d   :  { %v2510_v16 = vpop.eup %2509  ;;  %v1643_v19 = vadd.f32 1.0, %v2508_v14  ;;  %v1645_v23 = vmul.f32 %v1641_v13, %v1629_v17 }
 0x48e   :  { %v1644_v22 = vadd.f32 1.0, %v2510_v16  ;;  %v1646_v25 = vmul.f32 %v1642_v15, %v1630_v20 }
 0x48f   :  { %v1647_v24 = vmul.f32 %v1643_v19, %v1631_v18 }
 0x490   :  { %v1648_v26 = vmul.f32 %v1644_v22, %v1632_v21 }
 0x491   :  { %v1649_v27 = vpack.c.bf16 %v1647_v24, %v1645_v23 }
 0x492   :  { %v1650_v28 = vpack.c.bf16 %v1648_v26, %v1646_v25 }
 0x494   :  { %1887 = vmatprep.mubr.bf16.mxu0 %v1650_v28 }
 0x495   :  { %1888 = vmatmul.mubr.bf16.vlgmr.msra.gmra.mrb[12].mxu0 %v1649_v27 }
 0x568   :  { %v1889_v33 = vpop.f32.mrb[12].mxu0 }
 0x569   :  { %v1890_v35 = vadd.f32 %v1889_v33, %v1688_v31  ;;  %v1891_v36 = vpop.f32.mrb[13].mxu0 }
 0x56a   :  { %v1892_v38 = vadd.f32 %v1891_v36, %v1692_v32  ;;  %v1893_v39 = vpop.f32.mrb[14].mxu0 }
 0x56b   :  { %1898 = vst [vmem:[#allocation16] sm:$0xff] %v1890_v35  ;;  %v1894_v40 = vadd.f32 %v1893_v39, %v1688_v31  ;;  %v1895_v41 = vpop.f32.mrb[15].mxu0 }
 0x56c   :  { %1899 = vst [vmem:[#allocation16 + $0x8] sm:$0xff] %v1892_v38  ;;  %v1896_v42 = vadd.f32 %v1895_v41, %v1692_v32 }
 0x56d   :  { %1900 = vst [vmem:[#allocation16 + $0x10] sm:$0xff] %v1894_v40 }
 0x56e   :  { %1901 = vst [vmem:[#allocation16 + $0x18] sm:$0xff] %v1896_v42 }
 0x56f   :  { %2698 = shalt.err (!%p2695_p12)
}
 0x570   :  { %s2699_s23 = scalar_lea.hbm %s3030_s14, 512 }
 0x571   :  { %p2700_p13 = scmp.ne.s32.totalorder %s3030_s14, %s2699_s23  ;;  %p2703_p0 = scmp.lt.u32.totalorder %s2699_s23, %s3030_s14 }
 0x573   :  { %p2705_p1 = pnand %p2703_p0, %p2700_p13 }
 0x575   :  { %2708 = shalt.err (!%p2705_p1)
}
 0x576   :  { %1913 = dma.vmem_to_hbm [thread:$0]  %s1908_s22, 512, %s3030_s14, [#allocation4], %s2731_s9, %s2731_s9, %s2732_s25  }
 0x577   :  { %2719 = dma.done.wait [#allocation4], 512  }
 0x578   :  { %2720 = vsyncadd [#allocation4], 4294966784 }
 0x579   :  { %1917 = vsyncpa [#allocation3], 1 }
 0x57a   :  { %1918 = vsyncpa [#allocation6], 1 }
 0x57b   :  { %1919 = vsyncpa [#allocation9], 1 }
 0x57c   :  { %1920 = vsyncpa [#allocation12], 1 }
 0x57d   :  { %1921 = vsyncpa [#allocation15], 1 }
 0x57e   :  { %1922 = vsyncpa [#allocation4], 1 }

// kernel: enhanced_token_processor.1
= control target key start
LH: loop header
LB: loop body
LE: loop exit
PB: predicated region body
PF: predicated region fallthrough
CT: control target
= control target key end

     0   :  { %19 = vsyncpa [#allocation3], 0  ;;  %s3016_s0 = inlined_call_operand.hbm [shape: f32[16,256], index: 0, kind: input, shape index: {}]   ;;  %s3017_s1 = inlined_call_operand.hbm [shape: bf16[256,384], index: 1, kind: input, shape index: {}]   ;;  %s3018_s2 = inlined_call_operand.vmem [shape: f32[1,384], index: 2, kind: input, shape index: {}]   ;;  %s3019_s3 = inlined_call_operand.hbm [shape: bf16[256,256], index: 3, kind: input, shape index: {}]   ;;  %s3020_s4 = inlined_call_operand.vmem [shape: f32[1,256], index: 4, kind: input, shape index: {}]   ;;  %s3021_s5 = inlined_call_operand.hbm [shape: bf16[128,128], index: 5, kind: input, shape index: {}]   ;;  %s3022_s6 = inlined_call_operand.vmem [shape: f32[1,128], index: 6, kind: input, shape index: {}]   ;;  %s3023_s7 = inlined_call_operand.hbm [shape: bf16[128,256], index: 7, kind: input, shape index: {}]   ;;  %s3024_s8 = inlined_call_operand.vmem [shape: f32[1,256], index: 8, kind: input, shape index: {}]   ;;  %s3025_s9 = inlined_call_operand.hbm [shape: bf16[256,256], index: 9, kind: input, shape index: {}]   ;;  %s3026_s10 = inlined_call_operand.hbm [shape: bf16[256,256], index: 10, kind: input, shape index: {}]   ;;  %s3027_s11 = inlined_call_operand.vmem [shape: f32[1,256], index: 11, kind: input, shape index: {}]   ;;  %s3028_s12 = inlined_call_operand.hbm [shape: bf16[256,256], index: 12, kind: input, shape index: {}]   ;;  %s3029_s13 = inlined_call_operand.vmem [shape: f32[1,256], index: 13, kind: input, shape index: {}]   ;;  %s3030_s14 = inlined_call_operand.hbm [shape: f32[16,256], index: 14, kind: output, shape index: {}]  }
   0x1   :  { %20 = vsyncpa [#allocation6], 0 }
   0x2   :  { %21 = vsyncpa [#allocation9], 0 }
   0x3   :  { %22 = vsyncpa [#allocation12], 0 }
   0x4   :  { %23 = vsyncpa [#allocation15], 0 }
   0x5   :  { %24 = vsyncpa [#allocation4], 0  ;;  %s2721_s29 = smov [#allocation5]   ;;  %s2511_s17 = scalar_lea.hbm %s3017_s1, 6144 }
   0x6   :  { %s42_s30 = sshll.u32 %s2721_s29, 4  ;;  %p2512_p0 = scmp.ne.s32.totalorder %s3017_s1, %s2511_s17  ;;  %s43_s30 = int_to_ptr.vmem [resolvable:$true] %s42_s30 }
   0x7   :  { %p2515_p1 = scmp.lt.u32.totalorder %s2511_s17, %s3017_s1 }
   0x9   :  { %p2517_p2 = pnand %p2515_p1, %p2512_p0 }
   0xb   :  { %2520 = shalt.err (!%p2517_p2)
}
   0xc   :  { %s2521_s22 = scalar_lea.vmem %s43_s30, 6144  ;;  %p2526_p4 = scmp.lt.s32.totalorder %s43_s30, %s43_s30 }
   0xd   :  { %p2522_p3 = scmp.ne.s32.totalorder %s43_s30, %s2521_s22  ;;  %p2527_p5 = scmp.lt.s32.totalorder %s2521_s22, %s2521_s22 }
   0xf   :  { %p2528_p6 = por %p2527_p5, %p2526_p4 }
  0x11   :  { %p2529_p7 = pnand %p2528_p6, %p2522_p3 }
  0x13   :  { %2532 = shalt.err (!%p2529_p7)
}
  0x14   :  { %s2722_s23 = smov 192   ;;  %s2723_s24 = smov 12  }
  0x15   :  { %48 = dma.hbm_to_vmem [thread:$0]  %s3017_s1, 6144, %s43_s30, [#allocation6], %s2722_s23, %s2722_s23, %s2723_s24  }
  0x16   :  { %s2724_s27 = smov [#allocation8]   ;;  %s2533_s16 = scalar_lea.hbm %s3021_s5, 1024 }
  0x17   :  { %s70_s28 = sshll.u32 %s2724_s27, 4  ;;  %p2534_p8 = scmp.ne.s32.totalorder %s3021_s5, %s2533_s16  ;;  %s71_s28 = int_to_ptr.vmem [resolvable:$true] %s70_s28 }
  0x18   :  { %p2537_p9 = scmp.lt.u32.totalorder %s2533_s16, %s3021_s5 }
  0x1a   :  { %p2539_p10 = pnand %p2537_p9, %p2534_p8 }
  0x1c   :  { %2542 = shalt.err (!%p2539_p10)
}
  0x1d   :  { %s2543_s21 = scalar_lea.vmem %s71_s28, 1024  ;;  %p2548_p12 = scmp.lt.s32.totalorder %s71_s28, %s71_s28 }
  0x1e   :  { %p2544_p11 = scmp.ne.s32.totalorder %s71_s28, %s2543_s21  ;;  %p2549_p13 = scmp.lt.s32.totalorder %s2543_s21, %s2543_s21 }
  0x20   :  { %p2550_p0 = por %p2549_p13, %p2548_p12 }
  0x22   :  { %p2551_p1 = pnand %p2550_p0, %p2544_p11 }
  0x24   :  { %2554 = shalt.err (!%p2551_p1)
}
  0x25   :  { %s2725_s1 = smov 64   ;;  %s2726_s30 = smov 4  }
  0x26   :  { %76 = dma.hbm_to_vmem [thread:$0]  %s3021_s5, 1024, %s71_s28, [#allocation9], %s2725_s1, %s2725_s1, %s2726_s30  }
  0x27   :  { %s2727_s24 = smov [#allocation11]   ;;  %s2728_s26 = smov [#allocation2]  }
  0x28   :  { %s98_s25 = sshll.u32 %s2727_s24, 4  ;;  %s30_s27 = sshll.u32 %s2728_s26, 4  ;;  %s99_s25 = int_to_ptr.vmem [resolvable:$true] %s98_s25  ;;  %s2840_s27 = int_to_ptr.vmem [resolvable:$true] %s30_s27 }
  0x29   :  { %s2555_s16 = scalar_lea.hbm %s3025_s9, 4096 }
  0x2a   :  { %p2556_p2 = scmp.ne.s32.totalorder %s3025_s9, %s2555_s16  ;;  %p2559_p3 = scmp.lt.u32.totalorder %s2555_s16, %s3025_s9 }
  0x2c   :  { %p2561_p4 = pnand %p2559_p3, %p2556_p2 }
  0x2e   :  { %2564 = shalt.err (!%p2561_p4)
}
  0x2f   :  { %s2565_s5 = scalar_lea.vmem %s99_s25, 4096  ;;  %p2570_p6 = scmp.lt.s32.totalorder %s99_s25, %s99_s25 }
  0x30   :  { %p2566_p5 = scmp.ne.s32.totalorder %s99_s25, %s2565_s5  ;;  %p2571_p7 = scmp.lt.s32.totalorder %s2565_s5, %s2565_s5 }
  0x32   :  { %p2572_p8 = por %p2571_p7, %p2570_p6 }
  0x34   :  { %p2573_p9 = pnand %p2572_p8, %p2566_p5 }
  0x36   :  { %2576 = shalt.err (!%p2573_p9)
}
  0x37   :  { %s2729_s28 = smov 128   ;;  %s2730_s21 = smov 8  }
  0x38   :  { %104 = dma.hbm_to_vmem [thread:$0]  %s3025_s9, 4096, %s99_s25, [#allocation12], %s2729_s28, %s2729_s28, %s2730_s21  }
  0x39   :  { %s2577_s24 = scalar_lea.hbm %s3016_s0, 512 }
  0x3a   :  { %p2578_p10 = scmp.ne.s32.totalorder %s3016_s0, %s2577_s24  ;;  %p2581_p11 = scmp.lt.u32.totalorder %s2577_s24, %s3016_s0 }
  0x3c   :  { %p2583_p12 = pnand %p2581_p11, %p2578_p10 }
  0x3e   :  { %2586 = shalt.err (!%p2583_p12)
}
  0x3f   :  { %s2587_s17 = scalar_lea.vmem %s2840_s27, 512  ;;  %p2592_p0 = scmp.lt.s32.totalorder %s2840_s27, %s2840_s27 }
  0x40   :  { %p2588_p13 = scmp.ne.s32.totalorder %s2840_s27, %s2587_s17  ;;  %p2593_p1 = scmp.lt.s32.totalorder %s2587_s17, %s2587_s17 }
  0x42   :  { %p2594_p2 = por %p2593_p1, %p2592_p0 }
  0x44   :  { %p2595_p3 = pnand %p2594_p2, %p2588_p13 }
  0x46   :  { %2598 = shalt.err (!%p2595_p3)
}
  0x47   :  { %s2731_s9 = smov 256   ;;  %s2732_s25 = smov 16  }
  0x48   :  { %36 = dma.hbm_to_vmem [thread:$0]  %s3016_s0, 512, %s2840_s27, [#allocation3], %s2731_s9, %s2731_s9, %s2732_s25  }
  0x49   :  { %s2733_s20 = smov [#allocation7]   ;;  %s2734_s1 = smov [#allocation10]  }
  0x4a   :  { %s56_s5 = sshll.u32 %s2733_s20, 4  ;;  %s84_s30 = sshll.u32 %s2734_s1, 4  ;;  %s57_s5 = int_to_ptr.vmem [resolvable:$true] %s56_s5  ;;  %s2877_s30 = int_to_ptr.vmem [resolvable:$true] %s84_s30 }
  0x4b   :  { %s2599_s24 = scalar_lea.hbm %s3019_s3, 4096 }
  0x4c   :  { %p2600_p4 = scmp.ne.s32.totalorder %s3019_s3, %s2599_s24  ;;  %p2603_p5 = scmp.lt.u32.totalorder %s2599_s24, %s3019_s3 }
  0x4e   :  { %p2605_p6 = pnand %p2603_p5, %p2600_p4 }
  0x50   :  { %2608 = shalt.err (!%p2605_p6)
}
  0x51   :  { %s2609_s0 = scalar_lea.vmem %s57_s5, 4096  ;;  %p2614_p8 = scmp.lt.s32.totalorder %s57_s5, %s57_s5 }
  0x52   :  { %p2610_p7 = scmp.ne.s32.totalorder %s57_s5, %s2609_s0  ;;  %p2615_p9 = scmp.lt.s32.totalorder %s2609_s0, %s2609_s0 }
  0x54   :  { %p2616_p10 = por %p2615_p9, %p2614_p8 }
  0x56   :  { %p2617_p11 = pnand %p2616_p10, %p2610_p7 }
  0x58   :  { %2620 = shalt.err (!%p2617_p11)
}
  0x59   :  { %62 = dma.hbm_to_vmem [thread:$0]  %s3019_s3, 4096, %s57_s5, [#allocation6], %s2729_s28, %s2729_s28, %s2730_s21  }
  0x5a   :  { %s2621_s20 = scalar_lea.hbm %s3023_s7, 2048 }
  0x5b   :  { %p2622_p12 = scmp.ne.s32.totalorder %s3023_s7, %s2621_s20  ;;  %p2625_p13 = scmp.lt.u32.totalorder %s2621_s20, %s3023_s7 }
  0x5d   :  { %p2627_p0 = pnand %p2625_p13, %p2622_p12 }
  0x5f   :  { %2630 = shalt.err (!%p2627_p0)
}
  0x60   :  { %s2631_s26 = scalar_lea.vmem %s2877_s30, 2048  ;;  %p2636_p2 = scmp.lt.s32.totalorder %s2877_s30, %s2877_s30 }
  0x61   :  { %p2632_p1 = scmp.ne.s32.totalorder %s2877_s30, %s2631_s26  ;;  %p2637_p3 = scmp.lt.s32.totalorder %s2631_s26, %s2631_s26 }
  0x63   :  { %p2638_p4 = por %p2637_p3, %p2636_p2 }
  0x65   :  { %p2639_p5 = pnand %p2638_p4, %p2632_p1 }
  0x67   :  { %2642 = shalt.err (!%p2639_p5)
}
  0x68   :  { %90 = dma.hbm_to_vmem [thread:$0]  %s3023_s7, 2048, %s2877_s30, [#allocation9], %s2729_s28, %s2729_s28, %s2730_s21  }
  0x69   :  { %s2735_s29 = smov [#allocation13]   ;;  %s2736_s16 = smov [#allocation14]  }
  0x6a   :  { %s110_s15 = sshll.u32 %s2735_s29, 4  ;;  %s124_s0 = sshll.u32 %s2736_s16, 4  ;;  %s111_s15 = int_to_ptr.vmem [resolvable:$true] %s110_s15  ;;  %s2914_s0 = int_to_ptr.vmem [resolvable:$true] %s124_s0 }
  0x6b   :  { %s2643_s18 = scalar_lea.hbm %s3026_s10, 4096 }
  0x6c   :  { %p2644_p6 = scmp.ne.s32.totalorder %s3026_s10, %s2643_s18  ;;  %p2647_p7 = scmp.lt.u32.totalorder %s2643_s18, %s3026_s10 }
  0x6e   :  { %p2649_p8 = pnand %p2647_p7, %p2644_p6 }
  0x70   :  { %2652 = shalt.err (!%p2649_p8)
}
  0x71   :  { %s2653_s7 = scalar_lea.vmem %s111_s15, 4096  ;;  %p2658_p10 = scmp.lt.s32.totalorder %s111_s15, %s111_s15 }
  0x72   :  { %p2654_p9 = scmp.ne.s32.totalorder %s111_s15, %s2653_s7  ;;  %p2659_p11 = scmp.lt.s32.totalorder %s2653_s7, %s2653_s7 }
  0x74   :  { %p2660_p12 = por %p2659_p11, %p2658_p10 }
  0x76   :  { %p2661_p13 = pnand %p2660_p12, %p2654_p9 }
  0x78   :  { %2664 = shalt.err (!%p2661_p13)
}
  0x79   :  { %116 = dma.hbm_to_vmem [thread:$0]  %s3026_s10, 4096, %s111_s15, [#allocation12], %s2729_s28, %s2729_s28, %s2730_s21  }
  0x7a   :  { %s2665_s3 = scalar_lea.hbm %s3028_s12, 4096 }
  0x7b   :  { %p2666_p0 = scmp.ne.s32.totalorder %s3028_s12, %s2665_s3  ;;  %p2669_p1 = scmp.lt.u32.totalorder %s2665_s3, %s3028_s12 }
  0x7d   :  { %p2671_p2 = pnand %p2669_p1, %p2666_p0 }
  0x7f   :  { %2674 = shalt.err (!%p2671_p2)
}
  0x80   :  { %s2675_s17 = scalar_lea.vmem %s2914_s0, 4096  ;;  %p2680_p4 = scmp.lt.s32.totalorder %s2914_s0, %s2914_s0 }
  0x81   :  { %p2676_p3 = scmp.ne.s32.totalorder %s2914_s0, %s2675_s17  ;;  %p2681_p5 = scmp.lt.s32.totalorder %s2675_s17, %s2675_s17 }
  0x83   :  { %p2682_p6 = por %p2681_p5, %p2680_p4 }
  0x85   :  { %p2683_p7 = pnand %p2682_p6, %p2676_p3 }
  0x87   :  { %2686 = shalt.err (!%p2683_p7)
}
  0x88   :  { %130 = dma.hbm_to_vmem [thread:$0]  %s3028_s12, 4096, %s2914_s0, [#allocation15], %s2729_s28, %s2729_s28, %s2730_s21  }
  0x89   :  { %2709 = dma.done.wait [#allocation3], 512  }
  0x8a   :  { %2710 = vsyncadd [#allocation3], 4294966784 }
  0x8b   :  { %2711 = dma.done.wait [#allocation6], 10240  }
  0x8c   :  { %2712 = vsyncadd [#allocation6], 4294957056 }
  0x8d   :  { %2713 = dma.done.wait [#allocation9], 3072  }
  0x8e   :  { %2714 = vsyncadd [#allocation9], 4294964224 }
  0x8f   :  { %2715 = dma.done.wait [#allocation12], 8192  }
  0x90   :  { %2716 = vsyncadd [#allocation12], 4294959104 }
  0x91   :  { %2717 = dma.done.wait [#allocation15], 4096  }
  0x92   :  { %2718 = vsyncadd [#allocation15], 4294963200  ;;  %v2199_v0 = vld [vmem:[#allocation5 + $0xc8] ss:$12 sps:$4 sm:$0xff]   ;;  %v2201_v2 = vld [vmem:[#allocation5 + $0xe0] ss:$12 sps:$4 sm:$0xff]  }
  0x93   :  { %v2200_v1 = vld [vmem:[#allocation5 + $0x8] ss:$12 sps:$4 sm:$0xff]   ;;  %2124 = vmatprep.subr.bf16.mxu1 %v2199_v0  ;;  %v2202_v3 = vld [vmem:[#allocation5 + $0x20] ss:$12 sps:$4 sm:$0xff]   ;;  %v2203_v4 = vld [vmem:[#allocation5 + $0xf8] ss:$12 sps:$4 sm:$0xff]  }
  0x94   :  { %2125 = vmatpush3.bf16.msra.mxu1 %v2200_v1  ;;  %v2204_v5 = vld [vmem:[#allocation5 + $0x38] ss:$12 sps:$4 sm:$0xff]   ;;  %v2205_v6 = vld [vmem:[#allocation5 + $0x110] ss:$12 sps:$4 sm:$0xff]   ;;  %v2207_v8 = vld [vmem:[#allocation5 + $0x128] ss:$12 sps:$4 sm:$0xff]  }
  0x95   :  { %2126 = vmatprep.subr.bf16.mxu1 %v2201_v2  ;;  %v2206_v7 = vld [vmem:[#allocation5 + $0x50] ss:$12 sps:$4 sm:$0xff]   ;;  %v2208_v9 = vld [vmem:[#allocation5 + $0x68] ss:$12 sps:$4 sm:$0xff]   ;;  %v2209_v10 = vld [vmem:[#allocation5 + $0x140] ss:$12 sps:$4 sm:$0xff]  }
  0x96   :  { %v159_v11 = vld [vmem:[#allocation2 + $0x8] sm:$0xff]  ;;  %v161_v12 = vld [vmem:[#allocation2 + $0x18] sm:$0xff]  ;;  %v2215_v14 = vld [vmem:[#allocation5 + $0x4] ss:$12 sps:$4 sm:$0xff]   ;;  %v2737_v55 = vmov 0.0   ;;  %vm2738_vm0 = vmmov 0  }
  0x97   :  { %v163_v13 = vpack.c.bf16 %v161_v12, %v159_v11  ;;  %v2217_v15 = vld [vmem:[#allocation5] ss:$12 sps:$4 sm:$0xff]   ;;  %v2218_v17 = vld [vmem:[#allocation5 + $0x1c] ss:$12 sps:$4 sm:$0xff]   ;;  %v2211_v18 = vld [vmem:[#allocation5 + $0x158] ss:$12 sps:$4 sm:$0xff]   ;;  %501 = vmatprep.subr.bf16.mxu0 %v2215_v14 }
  0x98   :  { %2127 = vmatpush3.bf16.msra.mxu1 %v2202_v3  ;;  %v2210_v16 = vld [vmem:[#allocation5 + $0x80] ss:$12 sps:$4 sm:$0xff]   ;;  %502 = vmatpush1.bf16.msra.mxu0 %v2217_v15  ;;  %v2220_v19 = vld [vmem:[#allocation5 + $0x18] ss:$12 sps:$4 sm:$0xff]   ;;  %v2213_v22 = vld [vmem:[#allocation5 + $0x170] ss:$12 sps:$4 sm:$0xff]  }
  0x99   :  { %2128 = vmatprep.subr.bf16.mxu1 %v2203_v4  ;;  %576 = vmatprep.mubr.bf16.mxu1 %v163_v13  ;;  %v2221_v20 = vld [vmem:[#allocation5 + $0x34] ss:$12 sps:$4 sm:$0xff]   ;;  %v2212_v21 = vld [vmem:[#allocation5 + $0x98] ss:$12 sps:$4 sm:$0xff]   ;;  %v2223_v23 = vld [vmem:[#allocation5 + $0x30] ss:$12 sps:$4 sm:$0xff]  }
  0x9a   :  { %533 = vmatprep.mubr.bf16.mxu0 %v163_v13  ;;  %503 = vmatprep.subr.bf16.mxu0 %v2218_v17  ;;  %v2214_v24 = vld [vmem:[#allocation5 + $0xb0] ss:$12 sps:$4 sm:$0xff]   ;;  %v2224_v25 = vld [vmem:[#allocation5 + $0x4c] ss:$12 sps:$4 sm:$0xff]   ;;  %v158_v26 = vld [vmem:[#allocation2] sm:$0xff]  ;;  %s2740_s1 = smov [#allocation16]  }
  0x9b   :  { %v160_v27 = vld [vmem:[#allocation2 + $0x10] sm:$0xff]  ;;  %v2229_v31 = vld [vmem:[#allocation5 + $0x60] ss:$12 sps:$4 sm:$0xff]   ;;  %v2230_v32 = vld [vmem:[#allocation5 + $0x7c] ss:$12 sps:$4 sm:$0xff]   ;;  %s1907_s22 = sshll.u32 %s2740_s1, 4  ;;  %s1908_s22 = int_to_ptr.vmem [resolvable:$true] %s1907_s22 }
  0x9c   :  { %2129 = vmatpush3.bf16.msra.mxu1 %v2204_v5  ;;  %504 = vmatpush1.bf16.msra.mxu0 %v2220_v19  ;;  %v2226_v28 = vld [vmem:[#allocation5 + $0x48] ss:$12 sps:$4 sm:$0xff]   ;;  %v162_v29 = vpack.c.bf16 %v160_v27, %v158_v26  ;;  %v2227_v30 = vld [vmem:[#allocation5 + $0x64] ss:$12 sps:$4 sm:$0xff]   ;;  %v2236_v36 = vld [vmem:[#allocation5 + $0xac] ss:$12 sps:$4 sm:$0xff]   ;;  %p2692_p9 = scmp.lt.s32.totalorder %s1908_s22, %s1908_s22 }
  0x9d   :  { %2130 = vmatprep.subr.bf16.mxu1 %v2205_v6  ;;  %505 = vmatprep.subr.bf16.mxu0 %v2221_v20  ;;  %v2232_v33 = vld [vmem:[#allocation5 + $0x78] ss:$12 sps:$4 sm:$0xff]   ;;  %v2233_v34 = vld [vmem:[#allocation5 + $0x94] ss:$12 sps:$4 sm:$0xff]   ;;  %v2235_v35 = vld [vmem:[#allocation5 + $0x90] ss:$12 sps:$4 sm:$0xff]  }
  0x9e   :  { %v2238_v37 = vld [vmem:[#allocation5 + $0xa8] ss:$12 sps:$4 sm:$0xff]   ;;  %v2239_v38 = vld [vmem:[#allocation5 + $0xc4] ss:$12 sps:$4 sm:$0xff]   ;;  %v2241_v39 = vld [vmem:[#allocation5 + $0xc0] ss:$12 sps:$4 sm:$0xff]  }
  0x9f   :  { %v2242_v40 = vld [vmem:[#allocation5 + $0xdc] ss:$12 sps:$4 sm:$0xff]   ;;  %v2244_v41 = vld [vmem:[#allocation5 + $0xd8] ss:$12 sps:$4 sm:$0xff]   ;;  %v2245_v42 = vld [vmem:[#allocation5 + $0xf4] ss:$12 sps:$4 sm:$0xff]  }
  0xa0   :  { %2131 = vmatpush3.bf16.msra.mxu1 %v2206_v7  ;;  %506 = vmatpush1.bf16.msra.mxu0 %v2223_v23  ;;  %v2247_v43 = vld [vmem:[#allocation5 + $0xf0] ss:$12 sps:$4 sm:$0xff]   ;;  %v2248_v44 = vld [vmem:[#allocation5 + $0x10c] ss:$12 sps:$4 sm:$0xff]   ;;  %v2250_v45 = vld [vmem:[#allocation5 + $0x108] ss:$12 sps:$4 sm:$0xff]  }
  0xa1   :  { %2132 = vmatprep.subr.bf16.mxu1 %v2207_v8  ;;  %507 = vmatprep.subr.bf16.mxu0 %v2224_v25  ;;  %v2251_v46 = vld [vmem:[#allocation5 + $0x124] ss:$12 sps:$4 sm:$0xff]   ;;  %v2253_v47 = vld [vmem:[#allocation5 + $0x120] ss:$12 sps:$4 sm:$0xff]   ;;  %v2254_v48 = vld [vmem:[#allocation5 + $0x13c] ss:$12 sps:$4 sm:$0xff]  }
  0xa2   :  { %v2256_v49 = vld [vmem:[#allocation5 + $0x138] ss:$12 sps:$4 sm:$0xff]   ;;  %v2257_v50 = vld [vmem:[#allocation5 + $0x154] ss:$12 sps:$4 sm:$0xff]   ;;  %v2259_v51 = vld [vmem:[#allocation5 + $0x150] ss:$12 sps:$4 sm:$0xff]  }
  0xa3   :  { %v2260_v52 = vld [vmem:[#allocation5 + $0x16c] ss:$12 sps:$4 sm:$0xff]   ;;  %v2262_v53 = vld [vmem:[#allocation5 + $0x168] ss:$12 sps:$4 sm:$0xff]   ;;  %v2263_v54 = vld [vmem:[#allocation8] sm:$0xff]  }
  0xa4   :  { %2133 = vmatpush3.bf16.msra.mxu1 %v2208_v9  ;;  %508 = vmatpush1.bf16.msra.mxu0 %v2226_v28  ;;  %v2264_v56 = vld [vmem:[#allocation8 + $0x8] sm:$0xff]   ;;  %v2265_v57 = vld [vmem:[#allocation8 + $0x10] sm:$0xff]   ;;  %v2266_v58 = vld [vmem:[#allocation8 + $0x18] sm:$0xff]  }
  0xa5   :  { %2134 = vmatprep.subr.bf16.mxu1 %v2209_v10  ;;  %509 = vmatprep.subr.bf16.mxu0 %v2227_v30  ;;  %v2267_v59 = vld [vmem:[#allocation8 + $0x20] sm:$0xff]   ;;  %v2268_v60 = vld [vmem:[#allocation8 + $0x28] sm:$0xff]   ;;  %v2269_v61 = vld [vmem:[#allocation8 + $0x30] sm:$0xff]  }
  0xa6   :  { %v2270_v62 = vld [vmem:[#allocation8 + $0x38] sm:$0xff]   ;;  %v2271_v63 = vld [vmem:[#allocation7] ss:$8 sps:$4 sm:$0xff]   ;;  %v2273_v0 = vld [vmem:[#allocation7 + $0x4] ss:$8 sps:$4 sm:$0xff]  }
  0xa7   :  { %v2276_v1 = vld [vmem:[#allocation7 + $0x14] ss:$8 sps:$4 sm:$0xff]   ;;  %v2274_v2 = vld [vmem:[#allocation7 + $0x10] ss:$8 sps:$4 sm:$0xff]   ;;  %v2279_v3 = vld [vmem:[#allocation7 + $0x24] ss:$8 sps:$4 sm:$0xff]  }
  0xa8   :  { %2135 = vmatpush3.bf16.msra.mxu1 %v2210_v16  ;;  %510 = vmatpush1.bf16.msra.mxu0 %v2229_v31  ;;  %v2277_v4 = vld [vmem:[#allocation7 + $0x20] ss:$8 sps:$4 sm:$0xff]   ;;  %v2282_v5 = vld [vmem:[#allocation7 + $0x34] ss:$8 sps:$4 sm:$0xff]   ;;  %v2280_v6 = vld [vmem:[#allocation7 + $0x30] ss:$8 sps:$4 sm:$0xff]  }
  0xa9   :  { %2136 = vmatprep.subr.bf16.mxu1 %v2211_v18  ;;  %511 = vmatprep.subr.bf16.mxu0 %v2230_v32  ;;  %v2285_v7 = vld [vmem:[#allocation7 + $0x44] ss:$8 sps:$4 sm:$0xff]   ;;  %v2283_v8 = vld [vmem:[#allocation7 + $0x40] ss:$8 sps:$4 sm:$0xff]   ;;  %v2288_v9 = vld [vmem:[#allocation7 + $0x54] ss:$8 sps:$4 sm:$0xff]   ;;  %v230_v32 = vlaneseq }
  0xaa   :  { %v2286_v10 = vld [vmem:[#allocation7 + $0x50] ss:$8 sps:$4 sm:$0xff]   ;;  %v2291_v11 = vld [vmem:[#allocation7 + $0x64] ss:$8 sps:$4 sm:$0xff]   ;;  %v2289_v12 = vld [vmem:[#allocation7 + $0x60] ss:$8 sps:$4 sm:$0xff]  }
  0xab   :  { %v2294_v13 = vld [vmem:[#allocation7 + $0x74] ss:$8 sps:$4 sm:$0xff]   ;;  %v2292_v14 = vld [vmem:[#allocation7 + $0x70] ss:$8 sps:$4 sm:$0xff]   ;;  %v2297_v15 = vld [vmem:[#allocation7 + $0x84] ss:$8 sps:$4 sm:$0xff]  }
  0xac   :  { %2137 = vmatpush3.bf16.msra.mxu1 %v2212_v21  ;;  %512 = vmatpush1.bf16.msra.mxu0 %v2232_v33  ;;  %v2295_v16 = vld [vmem:[#allocation7 + $0x80] ss:$8 sps:$4 sm:$0xff]   ;;  %v2300_v17 = vld [vmem:[#allocation7 + $0x94] ss:$8 sps:$4 sm:$0xff]   ;;  %v2298_v18 = vld [vmem:[#allocation7 + $0x90] ss:$8 sps:$4 sm:$0xff]  }
  0xad   :  { %2138 = vmatprep.subr.bf16.mxu1 %v2213_v22  ;;  %513 = vmatprep.subr.bf16.mxu0 %v2233_v34  ;;  %v2301_v19 = vld [vmem:[#allocation7 + $0xa0] ss:$8 sps:$4 sm:$0xff]   ;;  %v2303_v20 = vld [vmem:[#allocation7 + $0xa4] ss:$8 sps:$4 sm:$0xff]   ;;  %v2306_v21 = vld [vmem:[#allocation7 + $0xb4] ss:$8 sps:$4 sm:$0xff]  }
  0xae   :  { %v2304_v22 = vld [vmem:[#allocation7 + $0xb0] ss:$8 sps:$4 sm:$0xff]   ;;  %v2309_v23 = vld [vmem:[#allocation7 + $0xc4] ss:$8 sps:$4 sm:$0xff]   ;;  %v2307_v25 = vld [vmem:[#allocation7 + $0xc0] ss:$8 sps:$4 sm:$0xff]  }
  0xaf   :  { %v2312_v26 = vld [vmem:[#allocation7 + $0xd4] ss:$8 sps:$4 sm:$0xff]   ;;  %v2310_v27 = vld [vmem:[#allocation7 + $0xd0] ss:$8 sps:$4 sm:$0xff]   ;;  %v2315_v28 = vld [vmem:[#allocation7 + $0xe4] ss:$8 sps:$4 sm:$0xff]  }
  0xb0   :  { %2139 = vmatpush3.bf16.msra.mxu1 %v2214_v24  ;;  %514 = vmatpush1.bf16.msra.mxu0 %v2235_v35  ;;  %v2321_v24 = vld [vmem:[#allocation10 + $0x4] ss:$8 sps:$4 sm:$0xff]   ;;  %v2318_v30 = vld [vmem:[#allocation7 + $0xf4] ss:$8 sps:$4 sm:$0xff]   ;;  %v2316_v31 = vld [vmem:[#allocation7 + $0xf0] ss:$8 sps:$4 sm:$0xff]  }
  0xb1   :  { %515 = vmatprep.subr.bf16.mxu0 %v2236_v36  ;;  %822 = vmatprep.subr.bf16.mxu1 %v2273_v0  ;;  %v231_v33 = vshrl.u32 %v230_v32, 7  ;;  %v228_v35 = vld [vmem:[%s3018_s2] sm:$0x7]  ;;  %v2328_v32 = vld [vmem:[#allocation10 + $0x30] ss:$8 sps:$4 sm:$0xff]  }
  0xb3   :  { %577 = vmatmul.mubr.bf16.vlgmr.msra.gmra.mrb[0].mxu1 %v162_v29  ;;  %v240_v34 = vsub.s32 2, %v231_v33 }
  0xb4   :  { %516 = vmatpush1.bf16.msra.mxu0 %v2238_v37  ;;  %823 = vmatpush1.bf16.msra.mxu1 %v2271_v63 }
  0xb5   :  { %517 = vmatprep.subr.bf16.mxu0 %v2239_v38  ;;  %824 = vmatprep.subr.bf16.mxu1 %v2276_v1  ;;  %v241_v37 = vrot.slane %v228_v35, %v240_v34  ;;  %v2331_v34 = vld [vmem:[#allocation10 + $0x40] ss:$8 sps:$4 sm:$0xff]  }
  0xb8   :  { %518 = vmatpush1.bf16.msra.mxu0 %v2241_v39  ;;  %825 = vmatpush1.bf16.msra.mxu1 %v2274_v2 }
  0xb9   :  { %519 = vmatprep.subr.bf16.mxu0 %v2242_v40  ;;  %826 = vmatprep.subr.bf16.mxu1 %v2279_v3 }
  0xbc   :  { %520 = vmatpush1.bf16.msra.mxu0 %v2244_v41  ;;  %827 = vmatpush1.bf16.msra.mxu1 %v2277_v4 }
  0xbd   :  { %521 = vmatprep.subr.bf16.mxu0 %v2245_v42  ;;  %828 = vmatprep.subr.bf16.mxu1 %v2282_v5 }
  0xc0   :  { %522 = vmatpush1.bf16.msra.mxu0 %v2247_v43  ;;  %829 = vmatpush1.bf16.msra.mxu1 %v2280_v6 }
  0xc1   :  { %523 = vmatprep.subr.bf16.mxu0 %v2248_v44  ;;  %830 = vmatprep.subr.bf16.mxu1 %v2285_v7 }
  0xc4   :  { %524 = vmatpush1.bf16.msra.mxu0 %v2250_v45  ;;  %831 = vmatpush1.bf16.msra.mxu1 %v2283_v8 }
  0xc5   :  { %525 = vmatprep.subr.bf16.mxu0 %v2251_v46  ;;  %832 = vmatprep.subr.bf16.mxu1 %v2288_v9 }
  0xc8   :  { %526 = vmatpush1.bf16.msra.mxu0 %v2253_v47  ;;  %833 = vmatpush1.bf16.msra.mxu1 %v2286_v10 }
  0xc9   :  { %527 = vmatprep.subr.bf16.mxu0 %v2254_v48  ;;  %834 = vmatprep.subr.bf16.mxu1 %v2291_v11 }
  0xcc   :  { %528 = vmatpush1.bf16.msra.mxu0 %v2256_v49  ;;  %835 = vmatpush1.bf16.msra.mxu1 %v2289_v12 }
  0xcd   :  { %529 = vmatprep.subr.bf16.mxu0 %v2257_v50  ;;  %836 = vmatprep.subr.bf16.mxu1 %v2294_v13 }
  0xd0   :  { %530 = vmatpush1.bf16.msra.mxu0 %v2259_v51  ;;  %837 = vmatpush1.bf16.msra.mxu1 %v2292_v14 }
  0xd1   :  { %531 = vmatprep.subr.bf16.mxu0 %v2260_v52  ;;  %838 = vmatprep.subr.bf16.mxu1 %v2297_v15 }
  0xd4   :  { %532 = vmatpush1.bf16.msra.mxu0 %v2262_v53  ;;  %839 = vmatpush1.bf16.msra.mxu1 %v2295_v16 }
  0xd5   :  { %2155 = vmatprep.subr.bf16.mxu0 %v2737_v55  ;;  %840 = vmatprep.subr.bf16.mxu1 %v2300_v17 }
  0xd7   :  { %534 = vmatmul.mubr.bf16.vlgmr.msra.gmra.mrb[0].mxu0 %v162_v29  ;;  %v2313_v29 = vld [vmem:[#allocation7 + $0xe0] ss:$8 sps:$4 sm:$0xff]  }
  0xd8   :  { %2156 = vmatpush3.bf16.msra.mxu0 %v2263_v54  ;;  %2171 = vmatprep.mubr.msk.bf16.mxu0 %vm2738_vm0, %v2737_v55 }
  0xd9   :  { %2157 = vmatprep.subr.bf16.mxu0 %v2737_v55  ;;  %841 = vmatpush1.bf16.msra.mxu1 %v2298_v18 }
  0xda   :  { %842 = vmatprep.subr.bf16.mxu1 %v2303_v20 }
  0xdc   :  { %2158 = vmatpush3.bf16.msra.mxu0 %v2264_v56 }
  0xdd   :  { %2159 = vmatprep.subr.bf16.mxu0 %v2737_v55  ;;  %843 = vmatpush1.bf16.msra.mxu1 %v2301_v19 }
  0xde   :  { %844 = vmatprep.subr.bf16.mxu1 %v2306_v21 }
  0xe0   :  { %2160 = vmatpush3.bf16.msra.mxu0 %v2265_v57  ;;  %v2324_v57 = vld [vmem:[#allocation10 + $0x14] ss:$8 sps:$4 sm:$0xff]  }
  0xe1   :  { %2161 = vmatprep.subr.bf16.mxu0 %v2737_v55  ;;  %845 = vmatpush1.bf16.msra.mxu1 %v2304_v22 }
  0xe2   :  { %846 = vmatprep.subr.bf16.mxu1 %v2309_v23 }
  0xe4   :  { %2162 = vmatpush3.bf16.msra.mxu0 %v2266_v58  ;;  %v2322_v58 = vld [vmem:[#allocation10 + $0x10] ss:$8 sps:$4 sm:$0xff]  }
  0xe5   :  { %2163 = vmatprep.subr.bf16.mxu0 %v2737_v55  ;;  %847 = vmatpush1.bf16.msra.mxu1 %v2307_v25 }
  0xe6   :  { %848 = vmatprep.subr.bf16.mxu1 %v2312_v26 }
  0xe8   :  { %2164 = vmatpush3.bf16.msra.mxu0 %v2267_v59  ;;  %v2954_v59 = vsub.s32 0, %v231_v33 }
  0xe9   :  { %2165 = vmatprep.subr.bf16.mxu0 %v2737_v55  ;;  %849 = vmatpush1.bf16.msra.mxu1 %v2310_v27 }
  0xea   :  { %850 = vmatprep.subr.bf16.mxu1 %v2315_v28 }
  0xec   :  { %2166 = vmatpush3.bf16.msra.mxu0 %v2268_v60  ;;  %v2956_v60 = vsub.s32 1, %v231_v33  ;;  %v2333_v33 = vld [vmem:[#allocation10 + $0x44] ss:$8 sps:$4 sm:$0xff]  }
  0xed   :  { %2167 = vmatprep.subr.bf16.mxu0 %v2737_v55  ;;  %851 = vmatpush1.bf16.msra.mxu1 %v2313_v29  ;;  %v2327_v29 = vld [vmem:[#allocation10 + $0x24] ss:$8 sps:$4 sm:$0xff]  }
  0xee   :  { %852 = vmatprep.subr.bf16.mxu1 %v2318_v30  ;;  %v2325_v30 = vld [vmem:[#allocation10 + $0x20] ss:$8 sps:$4 sm:$0xff]  }
  0xf0   :  { %2168 = vmatpush3.bf16.msra.mxu0 %v2269_v61  ;;  %v233_v61 = vrot.slane %v228_v35, %v2954_v59 }
  0xf1   :  { %2169 = vmatprep.subr.bf16.mxu0 %v2737_v55  ;;  %853 = vmatpush1.bf16.msra.mxu1 %v2316_v31  ;;  %v2319_v55 = vld [vmem:[#allocation10] ss:$8 sps:$4 sm:$0xff]   ;;  %v2330_v31 = vld [vmem:[#allocation10 + $0x34] ss:$8 sps:$4 sm:$0xff]  }
  0xf4   :  { %2170 = vmatpush3.bf16.msra.mxu0 %v2270_v62  ;;  %v237_v62 = vrot.slane %v228_v35, %v2956_v60  ;;  %v2336_v35 = vld [vmem:[#allocation10 + $0x54] ss:$8 sps:$4 sm:$0xff]  }
  0xf5   :  { %1130 = vmatprep.subr.bf16.mxu0 %v2321_v24 }
 0x186   :  { %v2140_v36 = vpop.f32.mrb[0].mxu1 }
 0x187   :  { %v2141_v38 = vpop.f32.mrb[1].mxu1 }
 0x188   :  { %v2142_v39 = vadd.f32 %v2141_v38, %v2140_v36  ;;  %v2143_v40 = vpop.f32.mrb[2].mxu1  ;;  %v2334_v36 = vld [vmem:[#allocation10 + $0x50] ss:$8 sps:$4 sm:$0xff]   ;;  %v2337_v38 = vld [vmem:[#allocation10 + $0x60] ss:$8 sps:$4 sm:$0xff]  }
 0x189   :  { %v2144_v41 = vpop.f32.mrb[3].mxu1 }
 0x18a   :  { %v579_v42 = vadd.f32 %v2142_v39, %v241_v37  ;;  %v2145_v43 = vadd.f32 %v2144_v41, %v2143_v40  ;;  %v2342_v39 = vld [vmem:[#allocation10 + $0x74] ss:$8 sps:$4 sm:$0xff]   ;;  %v2340_v40 = vld [vmem:[#allocation10 + $0x70] ss:$8 sps:$4 sm:$0xff]   ;;  %v2739_v41 = vmov 0  }
 0x18c   :  { %v609_v44 = vmul.f32 0.70710677, %v579_v42  ;;  %v582_v45 = vadd.f32 %v2145_v43, %v241_v37  ;;  %v607_v50 = vmul.f32 0.5, %v579_v42  ;;  %v2339_v37 = vld [vmem:[#allocation10 + $0x64] ss:$8 sps:$4 sm:$0xff]  }
 0x18d   :  { %v2343_v42 = vld [vmem:[#allocation13] ss:$8 sps:$4 sm:$0xff]   ;;  %v2345_v43 = vld [vmem:[#allocation13 + $0x4] ss:$8 sps:$4 sm:$0xff]  }
 0x18e   :  { %2487 = verf.f32 %v609_v44  ;;  %v610_v46 = vmul.f32 0.70710677, %v582_v45  ;;  %v608_v51 = vmul.f32 0.5, %v582_v45  ;;  %v2348_v44 = vld [vmem:[#allocation13 + $0x14] ss:$8 sps:$4 sm:$0xff]   ;;  %1367 = vmatprep.subr.bf16.mxu1 %v2345_v43 }
 0x18f   :  { %v2346_v45 = vld [vmem:[#allocation13 + $0x10] ss:$8 sps:$4 sm:$0xff]   ;;  %v2393_v43 = vld [vmem:[#allocation11 + $0x4] ss:$8 sps:$4 sm:$0xff]  }
 0x190   :  { %2489 = verf.f32 %v610_v46  ;;  %v2349_v46 = vld [vmem:[#allocation13 + $0x20] ss:$8 sps:$4 sm:$0xff]  }
 0x198   :  { %v2488_v47 = vpop.eup %2487 }
 0x199   :  { %v613_v48 = vadd.f32 1.0, %v2488_v47  ;;  %v2351_v47 = vld [vmem:[#allocation13 + $0x24] ss:$8 sps:$4 sm:$0xff]  }
 0x19a   :  { %v2490_v49 = vpop.eup %2489 }
 0x19b   :  { %v614_v52 = vadd.f32 1.0, %v2490_v49  ;;  %v615_v53 = vmul.f32 %v613_v48, %v607_v50  ;;  %v2352_v48 = vld [vmem:[#allocation13 + $0x30] ss:$8 sps:$4 sm:$0xff]   ;;  %v2354_v49 = vld [vmem:[#allocation13 + $0x34] ss:$8 sps:$4 sm:$0xff]  }
 0x19c   :  { %v2357_v50 = vld [vmem:[#allocation13 + $0x44] ss:$8 sps:$4 sm:$0xff]  }
 0x19d   :  { %v616_v54 = vmul.f32 %v614_v52, %v608_v51  ;;  %v2355_v51 = vld [vmem:[#allocation13 + $0x40] ss:$8 sps:$4 sm:$0xff]   ;;  %v2360_v52 = vld [vmem:[#allocation13 + $0x54] ss:$8 sps:$4 sm:$0xff]  }
 0x19f   :  { %v617_v56 = vpack.c.bf16 %v616_v54, %v615_v53  ;;  %v2358_v53 = vld [vmem:[#allocation13 + $0x50] ss:$8 sps:$4 sm:$0xff]   ;;  %v2363_v54 = vld [vmem:[#allocation13 + $0x64] ss:$8 sps:$4 sm:$0xff]  }
 0x1a1   :  { %2172 = vmatmul.mubr.bf16.vlgmr.msra.gmra.mrb[4].mxu0 %v617_v56  ;;  %v2366_v56 = vld [vmem:[#allocation13 + $0x74] ss:$8 sps:$4 sm:$0xff]  }
 0x1a2   :  { %1131 = vmatpush1.bf16.msra.mxu0 %v2319_v55  ;;  %1162 = vmatprep.mubr.bf16.mxu0 %v2739_v41  ;;  %v2361_v55 = vld [vmem:[#allocation13 + $0x60] ss:$8 sps:$4 sm:$0xff]   ;;  %v2390_v41 = vld [vmem:[#allocation13 + $0xf4] ss:$8 sps:$4 sm:$0xff]  }
 0x1a3   :  { %1132 = vmatprep.subr.bf16.mxu0 %v2324_v57  ;;  %v2364_v57 = vld [vmem:[#allocation13 + $0x70] ss:$8 sps:$4 sm:$0xff]  }
 0x1a6   :  { %1133 = vmatpush1.bf16.msra.mxu0 %v2322_v58  ;;  %v2369_v58 = vld [vmem:[#allocation13 + $0x84] ss:$8 sps:$4 sm:$0xff]  }
 0x1a7   :  { %1134 = vmatprep.subr.bf16.mxu0 %v2327_v29 }
 0x1aa   :  { %v535_v63 = vpop.f32.mrb[0].mxu0  ;;  %1135 = vmatpush1.bf16.msra.mxu0 %v2325_v30 }
 0x1ab   :  { %v536_v0 = vadd.f32 %v535_v63, %v233_v61  ;;  %v537_v1 = vpop.f32.mrb[1].mxu0  ;;  %1136 = vmatprep.subr.bf16.mxu0 %v2330_v31  ;;  %v2370_v63 = vld [vmem:[#allocation13 + $0x90] ss:$8 sps:$4 sm:$0xff]  }
 0x1ac   :  { %v538_v2 = vadd.f32 %v537_v1, %v237_v62  ;;  %v539_v3 = vpop.f32.mrb[2].mxu0  ;;  %v2373_v1 = vld [vmem:[#allocation13 + $0xa0] ss:$8 sps:$4 sm:$0xff]  }
 0x1ad   :  { %v589_v4 = vmul.f32 0.70710677, %v536_v0  ;;  %v540_v5 = vadd.f32 %v539_v3, %v233_v61  ;;  %v541_v6 = vpop.f32.mrb[3].mxu0  ;;  %v585_v11 = vmul.f32 0.5, %v536_v0  ;;  %v2367_v61 = vld [vmem:[#allocation13 + $0x80] ss:$8 sps:$4 sm:$0xff]  }
 0x1ae   :  { %v590_v7 = vmul.f32 0.70710677, %v538_v2  ;;  %v542_v8 = vadd.f32 %v541_v6, %v237_v62  ;;  %v586_v13 = vmul.f32 0.5, %v538_v2  ;;  %1137 = vmatpush1.bf16.msra.mxu0 %v2328_v32  ;;  %v2372_v62 = vld [vmem:[#allocation13 + $0x94] ss:$8 sps:$4 sm:$0xff]  }
 0x1af   :  { %2491 = verf.f32 %v589_v4  ;;  %v591_v9 = vmul.f32 0.70710677, %v540_v5  ;;  %v587_v16 = vmul.f32 0.5, %v540_v5  ;;  %1138 = vmatprep.subr.bf16.mxu0 %v2333_v33  ;;  %v2375_v0 = vld [vmem:[#allocation13 + $0xa4] ss:$8 sps:$4 sm:$0xff]  }
 0x1b0   :  { %2493 = verf.f32 %v590_v7  ;;  %v592_v10 = vmul.f32 0.70710677, %v542_v8  ;;  %v588_v19 = vmul.f32 0.5, %v542_v8  ;;  %v2378_v2 = vld [vmem:[#allocation13 + $0xb4] ss:$8 sps:$4 sm:$0xff]  }
 0x1b1   :  { %2495 = verf.f32 %v591_v9  ;;  %v2376_v3 = vld [vmem:[#allocation13 + $0xb0] ss:$8 sps:$4 sm:$0xff]   ;;  %v2381_v4 = vld [vmem:[#allocation13 + $0xc4] ss:$8 sps:$4 sm:$0xff]   ;;  %v2379_v5 = vld [vmem:[#allocation13 + $0xc0] ss:$8 sps:$4 sm:$0xff]  }
 0x1b2   :  { %2497 = verf.f32 %v592_v10  ;;  %1139 = vmatpush1.bf16.msra.mxu0 %v2331_v34  ;;  %v2384_v6 = vld [vmem:[#allocation13 + $0xd4] ss:$8 sps:$4 sm:$0xff]   ;;  %v2382_v7 = vld [vmem:[#allocation13 + $0xd0] ss:$8 sps:$4 sm:$0xff]   ;;  %v2003_v8 = vld [vmem:[%s3022_s6] ss:$0 sm:$0xff] }
 0x1b3   :  { %1140 = vmatprep.subr.bf16.mxu0 %v2336_v35 }
 0x1b6   :  { %1141 = vmatpush1.bf16.msra.mxu0 %v2334_v36 }
 0x1b7   :  { %1142 = vmatprep.subr.bf16.mxu0 %v2339_v37 }
 0x1b9   :  { %v2492_v12 = vpop.eup %2491 }
 0x1ba   :  { %v2494_v14 = vpop.eup %2493  ;;  %v597_v15 = vadd.f32 1.0, %v2492_v12  ;;  %1143 = vmatpush1.bf16.msra.mxu0 %v2337_v38 }
 0x1bb   :  { %v2496_v17 = vpop.eup %2495  ;;  %v598_v18 = vadd.f32 1.0, %v2494_v14  ;;  %1144 = vmatprep.subr.bf16.mxu0 %v2342_v39  ;;  %v2387_v39 = vld [vmem:[#allocation13 + $0xe4] ss:$8 sps:$4 sm:$0xff]  }
 0x1bc   :  { %v2498_v20 = vpop.eup %2497  ;;  %v601_v21 = vmul.f32 %v597_v15, %v585_v11  ;;  %v599_v22 = vadd.f32 1.0, %v2496_v17 }
 0x1bd   :  { %v602_v23 = vmul.f32 %v598_v18, %v586_v13  ;;  %v600_v24 = vadd.f32 1.0, %v2498_v20 }
 0x1be   :  { %v603_v25 = vmul.f32 %v599_v22, %v587_v16  ;;  %1145 = vmatpush1.bf16.msra.mxu0 %v2340_v40  ;;  %v2385_v40 = vld [vmem:[#allocation13 + $0xe0] ss:$8 sps:$4 sm:$0xff]  }
 0x1bf   :  { %v604_v26 = vmul.f32 %v600_v24, %v588_v19 }
 0x1c0   :  { %v605_v27 = vpack.c.bf16 %v603_v25, %v601_v21 }
 0x1c1   :  { %v606_v28 = vpack.c.bf16 %v604_v26, %v602_v23  ;;  %v650_v26 = vld [vmem:[%s3020_s4] sm:$0x3] }
 0x1c3   :  { %854 = vmatprep.mubr.bf16.mxu1 %v606_v28  ;;  %v659_v28 = vrot.slane %v650_v26, %v2956_v60 }
 0x1c4   :  { %855 = vmatmul.mubr.bf16.vlgmr.msra.gmra.mrb[4].mxu1 %v605_v27  ;;  %v655_v27 = vrot.slane %v650_v26, %v2954_v59  ;;  %v2411_v26 = vld [vmem:[#allocation11 + $0x64] ss:$8 sps:$4 sm:$0xff]  }
 0x1c5   :  { %1368 = vmatpush1.bf16.msra.mxu1 %v2343_v42  ;;  %v2388_v42 = vld [vmem:[#allocation13 + $0xf0] ss:$8 sps:$4 sm:$0xff]  }
 0x1c6   :  { %1369 = vmatprep.subr.bf16.mxu1 %v2348_v44  ;;  %v2439_v44 = vld [vmem:[#allocation14] ss:$8 sps:$4 sm:$0xff]  }
 0x1c9   :  { %1370 = vmatpush1.bf16.msra.mxu1 %v2346_v45  ;;  %v2441_v45 = vld [vmem:[#allocation14 + $0x4] ss:$8 sps:$4 sm:$0xff]  }
 0x1ca   :  { %1371 = vmatprep.subr.bf16.mxu1 %v2351_v47  ;;  %1855 = vmatprep.subr.bf16.mxu0 %v2441_v45  ;;  %v2442_v47 = vld [vmem:[#allocation14 + $0x10] ss:$8 sps:$4 sm:$0xff]   ;;  %v2435_v45 = vld [vmem:[#allocation11 + $0xe4] ss:$8 sps:$4 sm:$0xff]  }
 0x1cd   :  { %1372 = vmatpush1.bf16.msra.mxu1 %v2349_v46  ;;  %v2444_v46 = vld [vmem:[#allocation14 + $0x14] ss:$8 sps:$4 sm:$0xff]  }
 0x1ce   :  { %1373 = vmatprep.subr.bf16.mxu1 %v2354_v49  ;;  %v2445_v49 = vld [vmem:[#allocation14 + $0x20] ss:$8 sps:$4 sm:$0xff]  }
 0x1d1   :  { %1374 = vmatpush1.bf16.msra.mxu1 %v2352_v48  ;;  %v2447_v48 = vld [vmem:[#allocation14 + $0x24] ss:$8 sps:$4 sm:$0xff]  }
 0x1d2   :  { %1375 = vmatprep.subr.bf16.mxu1 %v2357_v50  ;;  %v2450_v50 = vld [vmem:[#allocation14 + $0x34] ss:$8 sps:$4 sm:$0xff]  }
 0x1d5   :  { %1376 = vmatpush1.bf16.msra.mxu1 %v2355_v51  ;;  %v2448_v51 = vld [vmem:[#allocation14 + $0x30] ss:$8 sps:$4 sm:$0xff]  }
 0x1d6   :  { %1377 = vmatprep.subr.bf16.mxu1 %v2360_v52  ;;  %v2453_v52 = vld [vmem:[#allocation14 + $0x44] ss:$8 sps:$4 sm:$0xff]  }
 0x1d9   :  { %1378 = vmatpush1.bf16.msra.mxu1 %v2358_v53  ;;  %v2451_v53 = vld [vmem:[#allocation14 + $0x40] ss:$8 sps:$4 sm:$0xff]  }
 0x1da   :  { %1379 = vmatprep.subr.bf16.mxu1 %v2363_v54  ;;  %v2456_v54 = vld [vmem:[#allocation14 + $0x54] ss:$8 sps:$4 sm:$0xff]  }
 0x1dd   :  { %1380 = vmatpush1.bf16.msra.mxu1 %v2361_v55  ;;  %v2454_v55 = vld [vmem:[#allocation14 + $0x50] ss:$8 sps:$4 sm:$0xff]  }
 0x1de   :  { %1381 = vmatprep.subr.bf16.mxu1 %v2366_v56  ;;  %v2459_v56 = vld [vmem:[#allocation14 + $0x64] ss:$8 sps:$4 sm:$0xff]  }
 0x1e1   :  { %1382 = vmatpush1.bf16.msra.mxu1 %v2364_v57  ;;  %v2457_v57 = vld [vmem:[#allocation14 + $0x60] ss:$8 sps:$4 sm:$0xff]  }
 0x1e2   :  { %1383 = vmatprep.subr.bf16.mxu1 %v2369_v58  ;;  %v2462_v58 = vld [vmem:[#allocation14 + $0x74] ss:$8 sps:$4 sm:$0xff]  }
 0x1e5   :  { %1384 = vmatpush1.bf16.msra.mxu1 %v2367_v61  ;;  %v2460_v61 = vld [vmem:[#allocation14 + $0x70] ss:$8 sps:$4 sm:$0xff]  }
 0x1e6   :  { %1385 = vmatprep.subr.bf16.mxu1 %v2372_v62  ;;  %v2465_v62 = vld [vmem:[#allocation14 + $0x84] ss:$8 sps:$4 sm:$0xff]  }
 0x1e9   :  { %1386 = vmatpush1.bf16.msra.mxu1 %v2370_v63  ;;  %v2463_v63 = vld [vmem:[#allocation14 + $0x80] ss:$8 sps:$4 sm:$0xff]  }
 0x1ea   :  { %1387 = vmatprep.subr.bf16.mxu1 %v2375_v0  ;;  %v2468_v0 = vld [vmem:[#allocation14 + $0x94] ss:$8 sps:$4 sm:$0xff]  }
 0x1ed   :  { %1388 = vmatpush1.bf16.msra.mxu1 %v2373_v1  ;;  %v2466_v1 = vld [vmem:[#allocation14 + $0x90] ss:$8 sps:$4 sm:$0xff]  }
 0x1ee   :  { %1389 = vmatprep.subr.bf16.mxu1 %v2378_v2  ;;  %v1038_v2 = vld [vmem:[%s3024_s8] sm:$0x3] }
 0x1f1   :  { %1390 = vmatpush1.bf16.msra.mxu1 %v2376_v3  ;;  %v1043_v3 = vrot.slane %v1038_v2, %v2954_v59 }
 0x1f2   :  { %1391 = vmatprep.subr.bf16.mxu1 %v2381_v4 }
 0x1f5   :  { %1392 = vmatpush1.bf16.msra.mxu1 %v2379_v5  ;;  %v1047_v5 = vrot.slane %v1038_v2, %v2956_v60 }
 0x1f6   :  { %1393 = vmatprep.subr.bf16.mxu1 %v2384_v6 }
 0x1f9   :  { %1394 = vmatpush1.bf16.msra.mxu1 %v2382_v7 }
 0x1fa   :  { %1395 = vmatprep.subr.bf16.mxu1 %v2387_v39  ;;  %v2426_v39 = vld [vmem:[#allocation11 + $0xb4] ss:$8 sps:$4 sm:$0xff]  }
 0x1fd   :  { %1396 = vmatpush1.bf16.msra.mxu1 %v2385_v40  ;;  %v2424_v40 = vld [vmem:[#allocation11 + $0xb0] ss:$8 sps:$4 sm:$0xff]  }
 0x1fe   :  { %1397 = vmatprep.subr.bf16.mxu1 %v2390_v41  ;;  %v2429_v41 = vld [vmem:[#allocation11 + $0xc4] ss:$8 sps:$4 sm:$0xff]  }
 0x201   :  { %1398 = vmatpush1.bf16.msra.mxu1 %v2388_v42  ;;  %v2427_v42 = vld [vmem:[#allocation11 + $0xc0] ss:$8 sps:$4 sm:$0xff]  }
 0x202   :  { %1570 = vmatprep.subr.bf16.mxu1 %v2393_v43  ;;  %v2432_v43 = vld [vmem:[#allocation11 + $0xd4] ss:$8 sps:$4 sm:$0xff]  }
 0x274   :  { %v1004_v9 = vpop.f32.mrb[4].mxu0 }
 0x275   :  { %v1005_v10 = vadd.f32 %v2003_v8, %v1004_v9  ;;  %v2173_v11 = vpop.f32.mrb[5].mxu0 }
 0x276   :  { %v1007_v12 = vpop.f32.mrb[6].mxu0 }
 0x277   :  { %v1013_v13 = vmul.f32 0.70710677, %v1005_v10  ;;  %v1008_v14 = vadd.f32 %v2003_v8, %v1007_v12  ;;  %v2174_v15 = vpop.f32.mrb[7].mxu0  ;;  %v1011_v20 = vmul.f32 0.5, %v1005_v10 }
 0x278   :  { %v2391_v15 = vld [vmem:[#allocation11] ss:$8 sps:$4 sm:$0xff]  }
 0x279   :  { %2499 = verf.f32 %v1013_v13  ;;  %v1014_v16 = vmul.f32 0.70710677, %v1008_v14  ;;  %v1012_v21 = vmul.f32 0.5, %v1008_v14 }
 0x27b   :  { %2501 = verf.f32 %v1014_v16  ;;  %v2396_v16 = vld [vmem:[#allocation11 + $0x14] ss:$8 sps:$4 sm:$0xff]  }
 0x283   :  { %v2500_v17 = vpop.eup %2499 }
 0x284   :  { %v1017_v18 = vadd.f32 1.0, %v2500_v17  ;;  %v2394_v17 = vld [vmem:[#allocation11 + $0x10] ss:$8 sps:$4 sm:$0xff]  }
 0x285   :  { %v2502_v19 = vpop.eup %2501 }
 0x286   :  { %v1018_v22 = vadd.f32 1.0, %v2502_v19  ;;  %v1019_v23 = vmul.f32 %v1017_v18, %v1011_v20  ;;  %v2399_v18 = vld [vmem:[#allocation11 + $0x24] ss:$8 sps:$4 sm:$0xff]   ;;  %v2397_v19 = vld [vmem:[#allocation11 + $0x20] ss:$8 sps:$4 sm:$0xff]  }
 0x287   :  { %v2402_v20 = vld [vmem:[#allocation11 + $0x34] ss:$8 sps:$4 sm:$0xff]  }
 0x288   :  { %v1020_v24 = vmul.f32 %v1018_v22, %v1012_v21  ;;  %v2400_v21 = vld [vmem:[#allocation11 + $0x30] ss:$8 sps:$4 sm:$0xff]   ;;  %v2405_v22 = vld [vmem:[#allocation11 + $0x44] ss:$8 sps:$4 sm:$0xff]  }
 0x28a   :  { %v1021_v25 = vpack.c.bf16 %v1020_v24, %v1019_v23  ;;  %v2403_v23 = vld [vmem:[#allocation11 + $0x40] ss:$8 sps:$4 sm:$0xff]   ;;  %v2408_v24 = vld [vmem:[#allocation11 + $0x54] ss:$8 sps:$4 sm:$0xff]  }
 0x28c   :  { %1163 = vmatmul.mubr.bf16.vlgmr.msra.gmra.mrb[8].mxu0 %v1021_v25  ;;  %v2406_v25 = vld [vmem:[#allocation11 + $0x50] ss:$8 sps:$4 sm:$0xff]  }
 0x28d   :  { %1856 = vmatpush1.bf16.msra.mxu0 %v2439_v44  ;;  %v2430_v44 = vld [vmem:[#allocation11 + $0xd0] ss:$8 sps:$4 sm:$0xff]  }
 0x28e   :  { %1857 = vmatprep.subr.bf16.mxu0 %v2444_v46  ;;  %v2433_v46 = vld [vmem:[#allocation11 + $0xe0] ss:$8 sps:$4 sm:$0xff]  }
 0x291   :  { %1858 = vmatpush1.bf16.msra.mxu0 %v2442_v47  ;;  %v2438_v47 = vld [vmem:[#allocation11 + $0xf4] ss:$8 sps:$4 sm:$0xff]  }
 0x292   :  { %1859 = vmatprep.subr.bf16.mxu0 %v2447_v48  ;;  %v2436_v48 = vld [vmem:[#allocation11 + $0xf0] ss:$8 sps:$4 sm:$0xff]  }
 0x295   :  { %1860 = vmatpush1.bf16.msra.mxu0 %v2445_v49  ;;  %v2471_v49 = vld [vmem:[#allocation14 + $0xa4] ss:$8 sps:$4 sm:$0xff]  }
 0x296   :  { %1861 = vmatprep.subr.bf16.mxu0 %v2450_v50  ;;  %v2469_v50 = vld [vmem:[#allocation14 + $0xa0] ss:$8 sps:$4 sm:$0xff]  }
 0x297   :  { %v856_v29 = vpop.f32.mrb[4].mxu1 }
 0x298   :  { %v2968_v30 = vadd.f32 %v856_v29, %v655_v27  ;;  %v858_v31 = vpop.f32.mrb[5].mxu1  ;;  %v2412_v29 = vld [vmem:[#allocation11 + $0x70] ss:$8 sps:$4 sm:$0xff]  }
 0x299   :  { %v2970_v32 = vadd.f32 %v858_v31, %v659_v28  ;;  %v860_v33 = vpop.f32.mrb[6].mxu1  ;;  %1862 = vmatpush1.bf16.msra.mxu0 %v2448_v51  ;;  %v2417_v31 = vld [vmem:[#allocation11 + $0x84] ss:$8 sps:$4 sm:$0xff]   ;;  %v2474_v51 = vld [vmem:[#allocation14 + $0xb4] ss:$8 sps:$4 sm:$0xff]  }
 0x29a   :  { %v2972_v34 = vadd.f32 %v860_v33, %v655_v27  ;;  %v862_v35 = vpop.f32.mrb[7].mxu1  ;;  %1863 = vmatprep.subr.bf16.mxu0 %v2453_v52  ;;  %v2409_v27 = vld [vmem:[#allocation11 + $0x60] ss:$8 sps:$4 sm:$0xff]   ;;  %v2420_v33 = vld [vmem:[#allocation11 + $0x94] ss:$8 sps:$4 sm:$0xff]  }
 0x29b   :  { %v2974_v36 = vadd.f32 %v862_v35, %v659_v28  ;;  %v2414_v28 = vld [vmem:[#allocation11 + $0x74] ss:$8 sps:$4 sm:$0xff]   ;;  %v2418_v35 = vld [vmem:[#allocation11 + $0x90] ss:$8 sps:$4 sm:$0xff]  }
 0x29c   :  { %v865_v37 = vpack.c.bf16 %v2972_v34, %v2968_v30  ;;  %v2472_v52 = vld [vmem:[#allocation14 + $0xb0] ss:$8 sps:$4 sm:$0xff]   ;;  %v2486_v30 = vld [vmem:[#allocation14 + $0xf4] ss:$8 sps:$4 sm:$0xff]  }
 0x29d   :  { %v866_v38 = vpack.c.bf16 %v2974_v36, %v2970_v32  ;;  %1864 = vmatpush1.bf16.msra.mxu0 %v2451_v53  ;;  %v2415_v32 = vld [vmem:[#allocation11 + $0x80] ss:$8 sps:$4 sm:$0xff]   ;;  %v2423_v36 = vld [vmem:[#allocation11 + $0xa4] ss:$8 sps:$4 sm:$0xff]   ;;  %v2484_v34 = vld [vmem:[#allocation14 + $0xf0] ss:$8 sps:$4 sm:$0xff]  }
 0x29e   :  { %1865 = vmatprep.subr.bf16.mxu0 %v2456_v54  ;;  %v2477_v53 = vld [vmem:[#allocation14 + $0xc4] ss:$8 sps:$4 sm:$0xff]   ;;  %v2475_v54 = vld [vmem:[#allocation14 + $0xc0] ss:$8 sps:$4 sm:$0xff]  }
 0x2a1   :  { %1866 = vmatpush1.bf16.msra.mxu0 %v2454_v55  ;;  %v2480_v55 = vld [vmem:[#allocation14 + $0xd4] ss:$8 sps:$4 sm:$0xff]  }
 0x2a2   :  { %1867 = vmatprep.subr.bf16.mxu0 %v2459_v56  ;;  %v2478_v56 = vld [vmem:[#allocation14 + $0xd0] ss:$8 sps:$4 sm:$0xff]  }
 0x2a5   :  { %1868 = vmatpush1.bf16.msra.mxu0 %v2457_v57  ;;  %v2483_v57 = vld [vmem:[#allocation14 + $0xe4] ss:$8 sps:$4 sm:$0xff]  }
 0x2a6   :  { %1869 = vmatprep.subr.bf16.mxu0 %v2462_v58  ;;  %v2481_v58 = vld [vmem:[#allocation14 + $0xe0] ss:$8 sps:$4 sm:$0xff]  }
 0x2a9   :  { %1870 = vmatpush1.bf16.msra.mxu0 %v2460_v61 }
 0x2aa   :  { %1871 = vmatprep.subr.bf16.mxu0 %v2465_v62 }
 0x2ad   :  { %1872 = vmatpush1.bf16.msra.mxu0 %v2463_v63 }
 0x2ae   :  { %1873 = vmatprep.subr.bf16.mxu0 %v2468_v0 }
 0x2b1   :  { %1874 = vmatpush1.bf16.msra.mxu0 %v2466_v1 }
 0x2b2   :  { %1875 = vmatprep.subr.bf16.mxu0 %v2471_v49 }
 0x2b5   :  { %1876 = vmatpush1.bf16.msra.mxu0 %v2469_v50 }
 0x2b6   :  { %1877 = vmatprep.subr.bf16.mxu0 %v2474_v51 }
 0x2b9   :  { %1878 = vmatpush1.bf16.msra.mxu0 %v2472_v52 }
 0x2ba   :  { %1879 = vmatprep.subr.bf16.mxu0 %v2477_v53 }
 0x2bd   :  { %1880 = vmatpush1.bf16.msra.mxu0 %v2475_v54 }
 0x2be   :  { %1881 = vmatprep.subr.bf16.mxu0 %v2480_v55 }
 0x2c1   :  { %1882 = vmatpush1.bf16.msra.mxu0 %v2478_v56 }
 0x2c2   :  { %1883 = vmatprep.subr.bf16.mxu0 %v2483_v57 }
 0x2c5   :  { %1884 = vmatpush1.bf16.msra.mxu0 %v2481_v58 }
 0x2c6   :  { %1885 = vmatprep.subr.bf16.mxu0 %v2486_v30 }
 0x2c9   :  { %1886 = vmatpush1.bf16.msra.mxu0 %v2484_v34 }
 0x35f   :  { %v1164_v4 = vpop.f32.mrb[8].mxu0 }
 0x360   :  { %v1166_v6 = vpop.f32.mrb[9].mxu0  ;;  %v1165_v8 = vadd.f32 %v1164_v4, %v1043_v3 }
 0x361   :  { %v1168_v7 = vpop.f32.mrb[10].mxu0  ;;  %v1167_v11 = vadd.f32 %v1166_v6, %v1047_v5 }
 0x362   :  { %v1169_v9 = vadd.f32 %v1168_v7, %v1043_v3  ;;  %v1170_v10 = vpop.f32.mrb[11].mxu0 }
 0x363   :  { %v1171_v12 = vadd.f32 %v1170_v10, %v1047_v5 }
 0x364   :  { %v1173_v13 = vpack.c.bf16 %v1169_v9, %v1165_v8 }
 0x365   :  { %v1174_v14 = vpack.c.bf16 %v1171_v12, %v1167_v11 }
 0x367   :  { %1399 = vmatprep.mubr.bf16.mxu1 %v1174_v14 }
 0x368   :  { %1400 = vmatmul.mubr.bf16.vlgmr.msra.gmra.mrb[8].mxu1 %v1173_v13 }
 0x369   :  { %1571 = vmatpush1.bf16.msra.mxu1 %v2391_v15  ;;  %1602 = vmatprep.mubr.bf16.mxu1 %v866_v38  ;;  %v2421_v38 = vld [vmem:[#allocation11 + $0xa0] ss:$8 sps:$4 sm:$0xff]  }
 0x36a   :  { %1572 = vmatprep.subr.bf16.mxu1 %v2396_v16 }
 0x36d   :  { %1573 = vmatpush1.bf16.msra.mxu1 %v2394_v17 }
 0x36e   :  { %1574 = vmatprep.subr.bf16.mxu1 %v2399_v18 }
 0x371   :  { %1575 = vmatpush1.bf16.msra.mxu1 %v2397_v19 }
 0x372   :  { %1576 = vmatprep.subr.bf16.mxu1 %v2402_v20 }
 0x375   :  { %1577 = vmatpush1.bf16.msra.mxu1 %v2400_v21 }
 0x376   :  { %1578 = vmatprep.subr.bf16.mxu1 %v2405_v22 }
 0x379   :  { %1579 = vmatpush1.bf16.msra.mxu1 %v2403_v23 }
 0x37a   :  { %1580 = vmatprep.subr.bf16.mxu1 %v2408_v24 }
 0x37d   :  { %1581 = vmatpush1.bf16.msra.mxu1 %v2406_v25 }
 0x37e   :  { %1582 = vmatprep.subr.bf16.mxu1 %v2411_v26 }
 0x381   :  { %1583 = vmatpush1.bf16.msra.mxu1 %v2409_v27 }
 0x382   :  { %1584 = vmatprep.subr.bf16.mxu1 %v2414_v28 }
 0x385   :  { %1585 = vmatpush1.bf16.msra.mxu1 %v2412_v29  ;;  %v1683_v29 = vld [vmem:[%s3029_s13] sm:$0x3]  ;;  %s2687_s13 = scalar_lea.vmem %s1908_s22, 512 }
 0x386   :  { %1586 = vmatprep.subr.bf16.mxu1 %v2417_v31  ;;  %v1688_v31 = vrot.slane %v1683_v29, %v2954_v59  ;;  %p2688_p8 = scmp.ne.s32.totalorder %s1908_s22, %s2687_s13  ;;  %p2693_p10 = scmp.lt.s32.totalorder %s2687_s13, %s2687_s13 }
 0x388   :  { %p2694_p11 = por %p2693_p10, %p2692_p9 }
 0x389   :  { %1587 = vmatpush1.bf16.msra.mxu1 %v2415_v32  ;;  %v1692_v32 = vrot.slane %v1683_v29, %v2956_v60 }
 0x38a   :  { %1588 = vmatprep.subr.bf16.mxu1 %v2420_v33  ;;  %p2695_p12 = pnand %p2694_p11, %p2688_p8 }
 0x38d   :  { %1589 = vmatpush1.bf16.msra.mxu1 %v2418_v35 }
 0x38e   :  { %1590 = vmatprep.subr.bf16.mxu1 %v2423_v36 }
 0x391   :  { %1591 = vmatpush1.bf16.msra.mxu1 %v2421_v38 }
 0x392   :  { %1592 = vmatprep.subr.bf16.mxu1 %v2426_v39 }
 0x395   :  { %1593 = vmatpush1.bf16.msra.mxu1 %v2424_v40 }
 0x396   :  { %1594 = vmatprep.subr.bf16.mxu1 %v2429_v41 }
 0x399   :  { %1595 = vmatpush1.bf16.msra.mxu1 %v2427_v42 }
 0x39a   :  { %1596 = vmatprep.subr.bf16.mxu1 %v2432_v43 }
 0x39d   :  { %1597 = vmatpush1.bf16.msra.mxu1 %v2430_v44 }
 0x39e   :  { %1598 = vmatprep.subr.bf16.mxu1 %v2435_v45 }
 0x3a1   :  { %1599 = vmatpush1.bf16.msra.mxu1 %v2433_v46 }
 0x3a2   :  { %1600 = vmatprep.subr.bf16.mxu1 %v2438_v47 }
 0x3a5   :  { %1601 = vmatpush1.bf16.msra.mxu1 %v2436_v48 }
 0x3a8   :  { %1603 = vmatmul.mubr.bf16.vlgmr.msra.gmra.mrb[8].mxu1 %v865_v37  ;;  %v1613_v37 = vld [vmem:[%s3027_s11] sm:$0x3] }
 0x3a9   :  { %v1618_v61 = vrot.slane %v1613_v37, %v2954_v59  ;;  %v1622_v62 = vrot.slane %v1613_v37, %v2956_v60 }
 0x47b   :  { %v1604_v63 = vpop.f32.mrb[8].mxu1 }
 0x47c   :  { %v1625_v0 = vadd.f32 %v1618_v61, %v1604_v63  ;;  %v1606_v1 = vpop.f32.mrb[9].mxu1 }
 0x47d   :  { %v1626_v2 = vadd.f32 %v1622_v62, %v1606_v1  ;;  %v1608_v3 = vpop.f32.mrb[10].mxu1 }
 0x47e   :  { %v1633_v4 = vmul.f32 0.70710677, %v1625_v0  ;;  %v1627_v5 = vadd.f32 %v1618_v61, %v1608_v3  ;;  %v1610_v6 = vpop.f32.mrb[11].mxu1  ;;  %v1629_v17 = vmul.f32 0.5, %v1625_v0 }
 0x47f   :  { %v1634_v7 = vmul.f32 0.70710677, %v1626_v2  ;;  %v1628_v8 = vadd.f32 %v1622_v62, %v1610_v6  ;;  %v1630_v20 = vmul.f32 0.5, %v1626_v2 }
 0x480   :  { %2503 = verf.f32 %v1633_v4  ;;  %v1635_v9 = vmul.f32 0.70710677, %v1627_v5  ;;  %v1631_v18 = vmul.f32 0.5, %v1627_v5 }
 0x481   :  { %2505 = verf.f32 %v1634_v7  ;;  %v1636_v10 = vmul.f32 0.70710677, %v1628_v8  ;;  %v1632_v21 = vmul.f32 0.5, %v1628_v8 }
 0x482   :  { %2507 = verf.f32 %v1635_v9 }
 0x483   :  { %2509 = verf.f32 %v1636_v10 }
 0x48a   :  { %v2504_v11 = vpop.eup %2503 }
 0x48b   :  { %v2506_v12 = vpop.eup %2505  ;;  %v1641_v13 = vadd.f32 1.0, %v2504_v11 }
 0x48c   :  { %v2508_v14 = vpop.eup %2507  ;;  %v1642_v15 = vadd.f32 1.0, %v2506_v12 }
 0x48d   :  { %v2510_v16 = vpop.eup %2509  ;;  %v1643_v19 = vadd.f32 1.0, %v2508_v14  ;;  %v1645_v23 = vmul.f32 %v1641_v13, %v1629_v17 }
 0x48e   :  { %v1644_v22 = vadd.f32 1.0, %v2510_v16  ;;  %v1646_v25 = vmul.f32 %v1642_v15, %v1630_v20 }
 0x48f   :  { %v1647_v24 = vmul.f32 %v1643_v19, %v1631_v18 }
 0x490   :  { %v1648_v26 = vmul.f32 %v1644_v22, %v1632_v21 }
 0x491   :  { %v1649_v27 = vpack.c.bf16 %v1647_v24, %v1645_v23 }
 0x492   :  { %v1650_v28 = vpack.c.bf16 %v1648_v26, %v1646_v25 }
 0x494   :  { %1887 = vmatprep.mubr.bf16.mxu0 %v1650_v28 }
 0x495   :  { %1888 = vmatmul.mubr.bf16.vlgmr.msra.gmra.mrb[12].mxu0 %v1649_v27 }
 0x568   :  { %v1889_v33 = vpop.f32.mrb[12].mxu0 }
 0x569   :  { %v1890_v35 = vadd.f32 %v1889_v33, %v1688_v31  ;;  %v1891_v36 = vpop.f32.mrb[13].mxu0 }
 0x56a   :  { %v1892_v38 = vadd.f32 %v1891_v36, %v1692_v32  ;;  %v1893_v39 = vpop.f32.mrb[14].mxu0 }
 0x56b   :  { %1898 = vst [vmem:[#allocation16] sm:$0xff] %v1890_v35  ;;  %v1894_v40 = vadd.f32 %v1893_v39, %v1688_v31  ;;  %v1895_v41 = vpop.f32.mrb[15].mxu0 }
 0x56c   :  { %1899 = vst [vmem:[#allocation16 + $0x8] sm:$0xff] %v1892_v38  ;;  %v1896_v42 = vadd.f32 %v1895_v41, %v1692_v32 }
 0x56d   :  { %1900 = vst [vmem:[#allocation16 + $0x10] sm:$0xff] %v1894_v40 }
 0x56e   :  { %1901 = vst [vmem:[#allocation16 + $0x18] sm:$0xff] %v1896_v42 }
 0x56f   :  { %2698 = shalt.err (!%p2695_p12)
}
 0x570   :  { %s2699_s23 = scalar_lea.hbm %s3030_s14, 512 }
 0x571   :  { %p2700_p13 = scmp.ne.s32.totalorder %s3030_s14, %s2699_s23  ;;  %p2703_p0 = scmp.lt.u32.totalorder %s2699_s23, %s3030_s14 }
 0x573   :  { %p2705_p1 = pnand %p2703_p0, %p2700_p13 }
 0x575   :  { %2708 = shalt.err (!%p2705_p1)
}
 0x576   :  { %1913 = dma.vmem_to_hbm [thread:$0]  %s1908_s22, 512, %s3030_s14, [#allocation4], %s2731_s9, %s2731_s9, %s2732_s25  }
 0x577   :  { %2719 = dma.done.wait [#allocation4], 512  }
 0x578   :  { %2720 = vsyncadd [#allocation4], 4294966784 }
 0x579   :  { %1917 = vsyncpa [#allocation3], 1 }
 0x57a   :  { %1918 = vsyncpa [#allocation6], 1 }
 0x57b   :  { %1919 = vsyncpa [#allocation9], 1 }
 0x57c   :  { %1920 = vsyncpa [#allocation12], 1 }
 0x57d   :  { %1921 = vsyncpa [#allocation15], 1 }
 0x57e   :  { %1922 = vsyncpa [#allocation4], 1 }

</bundles_post_ra>
